<compile_context>
chip_gen: v7x
topology: tpu7x:2x2x1
jax: 0.10.0
libtpu: 0.0.40
codegen_flags: <defaults>
</compile_context>

<pallas_src>
import jax
import jax.numpy as jnp
from jax.experimental import pallas as pl
from jax.experimental.pallas import tpu as pltpu

LANE = 128
SUBLANE = 16  # multiple of 16 so bf16 (packed-sublane) blocks are always legal


def _round_up(n, m):
    return ((n + m - 1) // m) * m


# --------------------------------------------------------------------------- #
# Kernel
# --------------------------------------------------------------------------- #
def actor_kernel(x_ref,
                 w0_ref, b0_ref,
                 w1_ref, b1_ref,
                 w2_ref, b2_ref,
                 w3_ref, b3_ref,
                 out_ref):
    # layer "input": Linear(F_in, 600) + ReLU.  MXU accumulates in f32; the
    # bias + ReLU + bf16 downcast are fused so the inter-layer activation is
    # materialized exactly once, in bf16.
    h = jnp.dot(x_ref[...], w0_ref[...], preferred_element_type=jnp.float32)
    h = jnp.maximum(h + b0_ref[...], 0.0).astype(jnp.bfloat16)
    # fc1: Linear(600, 400) + ReLU
    h = jnp.dot(h, w1_ref[...], preferred_element_type=jnp.float32)
    h = jnp.maximum(h + b1_ref[...], 0.0).astype(jnp.bfloat16)
    # fc2: Linear(400, 200) + ReLU
    h = jnp.dot(h, w2_ref[...], preferred_element_type=jnp.float32)
    h = jnp.maximum(h + b2_ref[...], 0.0).astype(jnp.bfloat16)
    # output: Linear(200, F_out) + tanh (EUP); bf16 lane-dense store
    h = jnp.dot(h, w3_ref[...], preferred_element_type=jnp.float32)
    out_ref[...] = jnp.tanh(h + b3_ref[...]).astype(out_ref.dtype)


# --------------------------------------------------------------------------- #
# One-time parameter preparation (NOT in the per-call hot path)
# --------------------------------------------------------------------------- #
def prepare_actor_params(params):
    """Pad every feature dim to a 128-lane multiple and cast weights to bf16.

    params: list of 4 (W [in, out] f32, b [1, out] f32) tuples.
    Returns (flat_params, dims, dims_p) where flat_params is the interleaved
    (w0, b0, w1, b1, ...) tuple consumed directly by actor_forward.
    """
    dims = [params[0][0].shape[0]] + [w.shape[1] for w, _ in params]
    dims_p = [_round_up(d, LANE) for d in dims]
    flat = []
    for i, (w, b) in enumerate(params):
        w_p = jnp.zeros((dims_p[i], dims_p[i + 1]), jnp.bfloat16)
        w_p = w_p.at[:dims[i], :dims[i + 1]].set(w.astype(jnp.bfloat16))
        b_p = jnp.zeros((1, dims_p[i + 1]), jnp.float32)
        b_p = b_p.at[:, :dims[i + 1]].set(b.astype(jnp.float32))
        flat += [w_p, b_p]
    flat = jax.block_until_ready(tuple(flat))
    return flat, tuple(dims), tuple(dims_p)


# --------------------------------------------------------------------------- #
# Forward
# --------------------------------------------------------------------------- #
def actor_forward(x, prepared, *, tm_max=1024, min_grid=2,
                  single_buffer_params=True):
    """x: [B, F_in] float32.  prepared: output of prepare_actor_params."""
    flat_params, dims, dims_p = prepared
    B, f_in = x.shape
    assert f_in == dims[0], (f_in, dims)
    f_out = dims[-1]

    # Balanced batch tiling: at least `min_grid` grid steps (so the "parallel"
    # axis feeds both v7x TensorCores) and tiles sized to minimize trailing-row
    # padding (e.g. B=1500 -> 2x752 rows instead of 2048).
    n_steps = max(min_grid, pl.cdiv(B, tm_max))
    tm = _round_up(pl.cdiv(B, n_steps), SUBLANE)
    b_pad = n_steps * tm

    # Hot-path padding: activations only (tiny compared to the weights).
    x_p = jnp.zeros((b_pad, dims_p[0]), jnp.bfloat16)
    x_p = x_p.at[:B, :f_in].set(x.astype(jnp.bfloat16))

    # Weights/biases are VMEM-resident (constant index_map) -> single-buffer
    # them so the pipeline does not allocate a pointless second copy (~1.2 MiB).
    param_kwargs = dict(pipeline_mode=pl.Buffered(1)) if single_buffer_params else {}

    in_specs = [pl.BlockSpec((tm, dims_p[0]), lambda i: (i, 0))]
    for li in range(4):
        in_specs.append(pl.BlockSpec((dims_p[li], dims_p[li + 1]),
                                     lambda i: (0, 0), **param_kwargs))
        in_specs.append(pl.BlockSpec((1, dims_p[li + 1]),
                                     lambda i: (0, 0), **param_kwargs))
    out_spec = pl.BlockSpec((tm, dims_p[-1]), lambda i: (i, 0))

    weight_elems = sum(dims_p[li] * dims_p[li + 1] for li in range(4))
    flops = 2 * b_pad * weight_elems
    bytes_accessed = (weight_elems * 2 + sum(dims_p[1:]) * 4
                      + b_pad * (dims_p[0] + dims_p[-1]) * 2)

    out = pl.pallas_call(
        actor_kernel,
        out_shape=jax.ShapeDtypeStruct((b_pad, dims_p[-1]), jnp.bfloat16),
        grid=(n_steps,),
        in_specs=in_specs,
        out_specs=out_spec,
        compiler_params=pltpu.CompilerParams(
            dimension_semantics=("parallel",),
            vmem_limit_bytes=48 * 1024 * 1024),
        cost_estimate=pl.CostEstimate(
            flops=flops,
            transcendentals=b_pad * dims_p[-1],
            bytes_accessed=bytes_accessed),
    )(x_p, *flat_params)
    return out[:B, :f_out].astype(jnp.float32)


# --------------------------------------------------------------------------- #
# Parameter init (mirrors the PyTorch module)
# --------------------------------------------------------------------------- #
def init_actor_params(key, input_shape, output_shape):
    """Hidden weights ~ U(-1/sqrt(out_features), +...) (weight_init uses
    weight.size()[0] == out_features), output weights ~ U(-3e-3, 3e-3);
    biases keep PyTorch's default U(-1/sqrt(in_features), +...)."""
    dims = [input_shape, 600, 400, 200, output_shape]
    params = []
    keys = jax.random.split(key, 8)
    for i in range(4):
        fan_in, fan_out = dims[i], dims[i + 1]
        w_lim = 1.0 / jnp.sqrt(jnp.float32(fan_out)) if i < 3 else jnp.float32(0.003)
        b_lim = 1.0 / jnp.sqrt(jnp.float32(fan_in))
        # weight stored as [in, out] (transpose of torch's [out, in])
        w = jax.random.uniform(keys[2 * i], (fan_in, fan_out),
                               minval=-w_lim, maxval=w_lim, dtype=jnp.float32)
        b = jax.random.uniform(keys[2 * i + 1], (1, fan_out),
                               minval=-b_lim, maxval=b_lim, dtype=jnp.float32)
        params.append((w, b))
    return params


# --------------------------------------------------------------------------- #
# References
# --------------------------------------------------------------------------- #
def reference_forward_bf16(x, params):
    """Same math as the kernel (bf16 inputs/weights/activations, f32 accumulate,
    bf16 output store) in plain JAX."""
    h = x.astype(jnp.bfloat16)
    for i, (w, b) in enumerate(params):
        z = jnp.dot(h, w.astype(jnp.bfloat16),
                    preferred_element_type=jnp.float32) + b
        if i == len(params) - 1:
            h = jnp.tanh(z).astype(jnp.bfloat16)
        else:
            h = jnp.maximum(z, 0.0).astype(jnp.bfloat16)
    return h.astype(jnp.float32)


def reference_forward_f32(x, params):
    h = x
    for i, (w, b) in enumerate(params):
        h = h @ w + b
        h = jnp.tanh(h) if i == len(params) - 1 else jnp.maximum(h, 0.0)
    return h


# --------------------------------------------------------------------------- #
if __name__ == "__main__":
    key = jax.random.PRNGKey(0)
    k_param, k_x = jax.random.split(key)

    batch = 2          # NOTE: at B=2 this is DMA/launch bound; batch env /
    input_shape = 32   # ensemble rows per call for real throughput.
    output_shape = 8

    params = init_actor_params(k_param, input_shape, output_shape)
    prepared = prepare_actor_params(params)   # one-time pad + bf16 cast

    x = jax.random.normal(k_x, (batch, input_shape), dtype=jnp.float32)

    try:
        out = jax.block_until_ready(actor_forward(x, prepared))
    except Exception:
        # Graceful fallback if this jax build rejects single-buffered BlockSpecs.
        out = jax.block_until_ready(
            actor_forward(x, prepared, single_buffer_params=False))

    ref_bf16 = reference_forward_bf16(x, params)
    ref_f32 = reference_forward_f32(x, params)

    assert out.shape == (batch, output_shape)
    # tight vs the bf16-emulated reference (same dtypes / f32 accumulation)
    assert jnp.allclose(out, ref_bf16, atol=1e-2, rtol=1e-2), "mismatch vs bf16 ref"
    # loose vs the pure-f32 reference (bf16 quantization error only)
    assert jnp.allclose(out, ref_f32, atol=5e-2, rtol=5e-2), "mismatch vs f32 ref"

    print("KERNEL_OK")
</pallas_src>

<mosaic_0001>
module attributes {stable_mosaic.version = 11 : i64} {
  func.func @actor_kernel(%arg0: i32, %arg1: memref<16x128xbf16, #tpu.memory_space<vmem>>, %arg2: memref<128x640xbf16, #tpu.memory_space<vmem>>, %arg3: memref<1x640xf32, #tpu.memory_space<vmem>>, %arg4: memref<640x512xbf16, #tpu.memory_space<vmem>>, %arg5: memref<1x512xf32, #tpu.memory_space<vmem>>, %arg6: memref<512x256xbf16, #tpu.memory_space<vmem>>, %arg7: memref<1x256xf32, #tpu.memory_space<vmem>>, %arg8: memref<256x128xbf16, #tpu.memory_space<vmem>>, %arg9: memref<1x128xf32, #tpu.memory_space<vmem>>, %arg10: memref<16x128xbf16, #tpu.memory_space<vmem>>) attributes {dimension_semantics = [#tpu.dimension_semantics<parallel>], iteration_bounds = array<i64: 2>, scalar_prefetch = 0 : i64, scratch_operands = 0 : i64, tpu.core_type = #tpu.core_type<tc>, window_params = [{transform_indices = @transform_0, window_bounds = array<i64: 16, 128>}, {pipeline_mode = #tpu.pipeline_mode<synchronous>, transform_indices = @transform_1, window_bounds = array<i64: 128, 640>}, {pipeline_mode = #tpu.pipeline_mode<synchronous>, transform_indices = @transform_2, window_bounds = array<i64: 1, 640>}, {pipeline_mode = #tpu.pipeline_mode<synchronous>, transform_indices = @transform_3, window_bounds = array<i64: 640, 512>}, {pipeline_mode = #tpu.pipeline_mode<synchronous>, transform_indices = @transform_4, window_bounds = array<i64: 1, 512>}, {pipeline_mode = #tpu.pipeline_mode<synchronous>, transform_indices = @transform_5, window_bounds = array<i64: 512, 256>}, {pipeline_mode = #tpu.pipeline_mode<synchronous>, transform_indices = @transform_6, window_bounds = array<i64: 1, 256>}, {pipeline_mode = #tpu.pipeline_mode<synchronous>, transform_indices = @transform_7, window_bounds = array<i64: 256, 128>}, {pipeline_mode = #tpu.pipeline_mode<synchronous>, transform_indices = @transform_8, window_bounds = array<i64: 1, 128>}, {transform_indices = @transform_9, window_bounds = array<i64: 16, 128>}]} {
    %c0 = arith.constant 0 : index
    %c0_0 = arith.constant 0 : index
    %0 = vector.load %arg1[%c0, %c0_0] : memref<16x128xbf16, #tpu.memory_space<vmem>>, vector<16x128xbf16>
    %c0_1 = arith.constant 0 : index
    %c0_2 = arith.constant 0 : index
    %1 = vector.load %arg2[%c0_1, %c0_2] : memref<128x640xbf16, #tpu.memory_space<vmem>>, vector<128x640xbf16>
    %cst = arith.constant dense<0.000000e+00> : vector<16x640xf32>
    %2 = tpu.matmul %0, %1, %cst {dimension_numbers = #tpu.dot_dimension_numbers<[1], [0], [0], [1], [0, 0, 1, 1], [], []>} : vector<16x128xbf16>, vector<128x640xbf16>, vector<16x640xf32> -> vector<16x640xf32>
    %c0_3 = arith.constant 0 : index
    %c0_4 = arith.constant 0 : index
    %3 = vector.load %arg3[%c0_3, %c0_4] : memref<1x640xf32, #tpu.memory_space<vmem>>, vector<1x640xf32>
    %4 = vector.broadcast %3 : vector<1x640xf32> to vector<16x640xf32>
    %5 = arith.addf %2, %4 : vector<16x640xf32>
    %cst_5 = arith.constant 0.000000e+00 : f32
    %6 = vector.broadcast %cst_5 : f32 to vector<16x640xf32>
    %7 = arith.maximumf %5, %6 : vector<16x640xf32>
    %8 = arith.truncf %7 : vector<16x640xf32> to vector<16x640xbf16>
    %c0_6 = arith.constant 0 : index
    %c0_7 = arith.constant 0 : index
    %9 = vector.load %arg4[%c0_6, %c0_7] : memref<640x512xbf16, #tpu.memory_space<vmem>>, vector<640x512xbf16>
    %cst_8 = arith.constant dense<0.000000e+00> : vector<16x512xf32>
    %10 = tpu.matmul %8, %9, %cst_8 {dimension_numbers = #tpu.dot_dimension_numbers<[1], [0], [0], [1], [0, 0, 1, 1], [], []>} : vector<16x640xbf16>, vector<640x512xbf16>, vector<16x512xf32> -> vector<16x512xf32>
    %c0_9 = arith.constant 0 : index
    %c0_10 = arith.constant 0 : index
    %11 = vector.load %arg5[%c0_9, %c0_10] : memref<1x512xf32, #tpu.memory_space<vmem>>, vector<1x512xf32>
    %12 = vector.broadcast %11 : vector<1x512xf32> to vector<16x512xf32>
    %13 = arith.addf %10, %12 : vector<16x512xf32>
    %cst_11 = arith.constant 0.000000e+00 : f32
    %14 = vector.broadcast %cst_11 : f32 to vector<16x512xf32>
    %15 = arith.maximumf %13, %14 : vector<16x512xf32>
    %16 = arith.truncf %15 : vector<16x512xf32> to vector<16x512xbf16>
    %c0_12 = arith.constant 0 : index
    %c0_13 = arith.constant 0 : index
    %17 = vector.load %arg6[%c0_12, %c0_13] : memref<512x256xbf16, #tpu.memory_space<vmem>>, vector<512x256xbf16>
    %cst_14 = arith.constant dense<0.000000e+00> : vector<16x256xf32>
    %18 = tpu.matmul %16, %17, %cst_14 {dimension_numbers = #tpu.dot_dimension_numbers<[1], [0], [0], [1], [0, 0, 1, 1], [], []>} : vector<16x512xbf16>, vector<512x256xbf16>, vector<16x256xf32> -> vector<16x256xf32>
    %c0_15 = arith.constant 0 : index
    %c0_16 = arith.constant 0 : index
    %19 = vector.load %arg7[%c0_15, %c0_16] : memref<1x256xf32, #tpu.memory_space<vmem>>, vector<1x256xf32>
    %20 = vector.broadcast %19 : vector<1x256xf32> to vector<16x256xf32>
    %21 = arith.addf %18, %20 : vector<16x256xf32>
    %cst_17 = arith.constant 0.000000e+00 : f32
    %22 = vector.broadcast %cst_17 : f32 to vector<16x256xf32>
    %23 = arith.maximumf %21, %22 : vector<16x256xf32>
    %24 = arith.truncf %23 : vector<16x256xf32> to vector<16x256xbf16>
    %c0_18 = arith.constant 0 : index
    %c0_19 = arith.constant 0 : index
    %25 = vector.load %arg8[%c0_18, %c0_19] : memref<256x128xbf16, #tpu.memory_space<vmem>>, vector<256x128xbf16>
    %cst_20 = arith.constant dense<0.000000e+00> : vector<16x128xf32>
    %26 = tpu.matmul %24, %25, %cst_20 {dimension_numbers = #tpu.dot_dimension_numbers<[1], [0], [0], [1], [0, 0, 1, 1], [], []>} : vector<16x256xbf16>, vector<256x128xbf16>, vector<16x128xf32> -> vector<16x128xf32>
    %c0_21 = arith.constant 0 : index
    %c0_22 = arith.constant 0 : index
    %27 = vector.load %arg9[%c0_21, %c0_22] : memref<1x128xf32, #tpu.memory_space<vmem>>, vector<1x128xf32>
    %28 = vector.broadcast %27 : vector<1x128xf32> to vector<16x128xf32>
    %29 = arith.addf %26, %28 : vector<16x128xf32>
    %30 = math.tanh %29 : vector<16x128xf32>
    %31 = arith.truncf %30 : vector<16x128xf32> to vector<16x128xbf16>
    %c0_23 = arith.constant 0 : index
    %c0_24 = arith.constant 0 : index
    %32 = vector.load %arg10[%c0_23, %c0_24] : memref<16x128xbf16, #tpu.memory_space<vmem>>, vector<16x128xbf16>
    tpu.vector_store %arg10[%c0_23, %c0_24], %31 {strides = array<i32>} : memref<16x128xbf16, #tpu.memory_space<vmem>>, vector<16x128xbf16>,
    return
  }
  func.func @transform_0(%arg0: i32) -> (i32, i32) {
    %c0_i32 = arith.constant 0 : i32
    %c0_i32_0 = arith.constant 0 : i32
    return %arg0, %c0_i32 : i32, i32
  }
  func.func @transform_1(%arg0: i32) -> (i32, i32) {
    %c0_i32 = arith.constant 0 : i32
    %c0_i32_0 = arith.constant 0 : i32
    %c0_i32_1 = arith.constant 0 : i32
    return %c0_i32, %c0_i32_0 : i32, i32
  }
  func.func @transform_2(%arg0: i32) -> (i32, i32) {
    %c0_i32 = arith.constant 0 : i32
    %c0_i32_0 = arith.constant 0 : i32
    %c0_i32_1 = arith.constant 0 : i32
    return %c0_i32, %c0_i32_0 : i32, i32
  }
  func.func @transform_3(%arg0: i32) -> (i32, i32) {
    %c0_i32 = arith.constant 0 : i32
    %c0_i32_0 = arith.constant 0 : i32
    %c0_i32_1 = arith.constant 0 : i32
    return %c0_i32, %c0_i32_0 : i32, i32
  }
  func.func @transform_4(%arg0: i32) -> (i32, i32) {
    %c0_i32 = arith.constant 0 : i32
    %c0_i32_0 = arith.constant 0 : i32
    %c0_i32_1 = arith.constant 0 : i32
    return %c0_i32, %c0_i32_0 : i32, i32
  }
  func.func @transform_5(%arg0: i32) -> (i32, i32) {
    %c0_i32 = arith.constant 0 : i32
    %c0_i32_0 = arith.constant 0 : i32
    %c0_i32_1 = arith.constant 0 : i32
    return %c0_i32, %c0_i32_0 : i32, i32
  }
  func.func @transform_6(%arg0: i32) -> (i32, i32) {
    %c0_i32 = arith.constant 0 : i32
    %c0_i32_0 = arith.constant 0 : i32
    %c0_i32_1 = arith.constant 0 : i32
    return %c0_i32, %c0_i32_0 : i32, i32
  }
  func.func @transform_7(%arg0: i32) -> (i32, i32) {
    %c0_i32 = arith.constant 0 : i32
    %c0_i32_0 = arith.constant 0 : i32
    %c0_i32_1 = arith.constant 0 : i32
    return %c0_i32, %c0_i32_0 : i32, i32
  }
  func.func @transform_8(%arg0: i32) -> (i32, i32) {
    %c0_i32 = arith.constant 0 : i32
    %c0_i32_0 = arith.constant 0 : i32
    %c0_i32_1 = arith.constant 0 : i32
    return %c0_i32, %c0_i32_0 : i32, i32
  }
  func.func @transform_9(%arg0: i32) -> (i32, i32) {
    %c0_i32 = arith.constant 0 : i32
    %c0_i32_0 = arith.constant 0 : i32
    return %arg0, %c0_i32 : i32, i32
  }
}

module attributes {stable_mosaic.version = 11 : i64} {
  func.func @actor_kernel(%arg0: i32, %arg1: memref<16x128xbf16, #tpu.memory_space<vmem>>, %arg2: memref<128x640xbf16, #tpu.memory_space<vmem>>, %arg3: memref<1x640xf32, #tpu.memory_space<vmem>>, %arg4: memref<640x512xbf16, #tpu.memory_space<vmem>>, %arg5: memref<1x512xf32, #tpu.memory_space<vmem>>, %arg6: memref<512x256xbf16, #tpu.memory_space<vmem>>, %arg7: memref<1x256xf32, #tpu.memory_space<vmem>>, %arg8: memref<256x128xbf16, #tpu.memory_space<vmem>>, %arg9: memref<1x128xf32, #tpu.memory_space<vmem>>, %arg10: memref<16x128xbf16, #tpu.memory_space<vmem>>) attributes {dimension_semantics = [#tpu.dimension_semantics<parallel>], iteration_bounds = array<i64: 2>, scalar_prefetch = 0 : i64, scratch_operands = 0 : i64, tpu.core_type = #tpu.core_type<tc>, window_params = [{transform_indices = @transform_0, window_bounds = array<i64: 16, 128>}, {pipeline_mode = #tpu.pipeline_mode<synchronous>, transform_indices = @transform_1, window_bounds = array<i64: 128, 640>}, {pipeline_mode = #tpu.pipeline_mode<synchronous>, transform_indices = @transform_2, window_bounds = array<i64: 1, 640>}, {pipeline_mode = #tpu.pipeline_mode<synchronous>, transform_indices = @transform_3, window_bounds = array<i64: 640, 512>}, {pipeline_mode = #tpu.pipeline_mode<synchronous>, transform_indices = @transform_4, window_bounds = array<i64: 1, 512>}, {pipeline_mode = #tpu.pipeline_mode<synchronous>, transform_indices = @transform_5, window_bounds = array<i64: 512, 256>}, {pipeline_mode = #tpu.pipeline_mode<synchronous>, transform_indices = @transform_6, window_bounds = array<i64: 1, 256>}, {pipeline_mode = #tpu.pipeline_mode<synchronous>, transform_indices = @transform_7, window_bounds = array<i64: 256, 128>}, {pipeline_mode = #tpu.pipeline_mode<synchronous>, transform_indices = @transform_8, window_bounds = array<i64: 1, 128>}, {transform_indices = @transform_9, window_bounds = array<i64: 16, 128>}]} {
    %c0 = arith.constant 0 : index
    %c0_0 = arith.constant 0 : index
    %0 = vector.load %arg1[%c0, %c0_0] : memref<16x128xbf16, #tpu.memory_space<vmem>>, vector<16x128xbf16>
    %c0_1 = arith.constant 0 : index
    %c0_2 = arith.constant 0 : index
    %1 = vector.load %arg2[%c0_1, %c0_2] : memref<128x640xbf16, #tpu.memory_space<vmem>>, vector<128x640xbf16>
    %cst = arith.constant dense<0.000000e+00> : vector<16x640xf32>
    %2 = tpu.matmul %0, %1, %cst {dimension_numbers = #tpu.dot_dimension_numbers<[1], [0], [0], [1], [0, 0, 1, 1], [], []>} : vector<16x128xbf16>, vector<128x640xbf16>, vector<16x640xf32> -> vector<16x640xf32>
    %c0_3 = arith.constant 0 : index
    %c0_4 = arith.constant 0 : index
    %3 = vector.load %arg3[%c0_3, %c0_4] : memref<1x640xf32, #tpu.memory_space<vmem>>, vector<1x640xf32>
    %4 = vector.broadcast %3 : vector<1x640xf32> to vector<16x640xf32>
    %5 = arith.addf %2, %4 : vector<16x640xf32>
    %cst_5 = arith.constant 0.000000e+00 : f32
    %6 = vector.broadcast %cst_5 : f32 to vector<16x640xf32>
    %7 = arith.maximumf %5, %6 : vector<16x640xf32>
    %8 = arith.truncf %7 : vector<16x640xf32> to vector<16x640xbf16>
    %c0_6 = arith.constant 0 : index
    %c0_7 = arith.constant 0 : index
    %9 = vector.load %arg4[%c0_6, %c0_7] : memref<640x512xbf16, #tpu.memory_space<vmem>>, vector<640x512xbf16>
    %cst_8 = arith.constant dense<0.000000e+00> : vector<16x512xf32>
    %10 = tpu.matmul %8, %9, %cst_8 {dimension_numbers = #tpu.dot_dimension_numbers<[1], [0], [0], [1], [0, 0, 1, 1], [], []>} : vector<16x640xbf16>, vector<640x512xbf16>, vector<16x512xf32> -> vector<16x512xf32>
    %c0_9 = arith.constant 0 : index
    %c0_10 = arith.constant 0 : index
    %11 = vector.load %arg5[%c0_9, %c0_10] : memref<1x512xf32, #tpu.memory_space<vmem>>, vector<1x512xf32>
    %12 = vector.broadcast %11 : vector<1x512xf32> to vector<16x512xf32>
    %13 = arith.addf %10, %12 : vector<16x512xf32>
    %cst_11 = arith.constant 0.000000e+00 : f32
    %14 = vector.broadcast %cst_11 : f32 to vector<16x512xf32>
    %15 = arith.maximumf %13, %14 : vector<16x512xf32>
    %16 = arith.truncf %15 : vector<16x512xf32> to vector<16x512xbf16>
    %c0_12 = arith.constant 0 : index
    %c0_13 = arith.constant 0 : index
    %17 = vector.load %arg6[%c0_12, %c0_13] : memref<512x256xbf16, #tpu.memory_space<vmem>>, vector<512x256xbf16>
    %cst_14 = arith.constant dense<0.000000e+00> : vector<16x256xf32>
    %18 = tpu.matmul %16, %17, %cst_14 {dimension_numbers = #tpu.dot_dimension_numbers<[1], [0], [0], [1], [0, 0, 1, 1], [], []>} : vector<16x512xbf16>, vector<512x256xbf16>, vector<16x256xf32> -> vector<16x256xf32>
    %c0_15 = arith.constant 0 : index
    %c0_16 = arith.constant 0 : index
    %19 = vector.load %arg7[%c0_15, %c0_16] : memref<1x256xf32, #tpu.memory_space<vmem>>, vector<1x256xf32>
    %20 = vector.broadcast %19 : vector<1x256xf32> to vector<16x256xf32>
    %21 = arith.addf %18, %20 : vector<16x256xf32>
    %cst_17 = arith.constant 0.000000e+00 : f32
    %22 = vector.broadcast %cst_17 : f32 to vector<16x256xf32>
    %23 = arith.maximumf %21, %22 : vector<16x256xf32>
    %24 = arith.truncf %23 : vector<16x256xf32> to vector<16x256xbf16>
    %c0_18 = arith.constant 0 : index
    %c0_19 = arith.constant 0 : index
    %25 = vector.load %arg8[%c0_18, %c0_19] : memref<256x128xbf16, #tpu.memory_space<vmem>>, vector<256x128xbf16>
    %cst_20 = arith.constant dense<0.000000e+00> : vector<16x128xf32>
    %26 = tpu.matmul %24, %25, %cst_20 {dimension_numbers = #tpu.dot_dimension_numbers<[1], [0], [0], [1], [0, 0, 1, 1], [], []>} : vector<16x256xbf16>, vector<256x128xbf16>, vector<16x128xf32> -> vector<16x128xf32>
    %c0_21 = arith.constant 0 : index
    %c0_22 = arith.constant 0 : index
    %27 = vector.load %arg9[%c0_21, %c0_22] : memref<1x128xf32, #tpu.memory_space<vmem>>, vector<1x128xf32>
    %28 = vector.broadcast %27 : vector<1x128xf32> to vector<16x128xf32>
    %29 = arith.addf %26, %28 : vector<16x128xf32>
    %30 = math.tanh %29 : vector<16x128xf32>
    %31 = arith.truncf %30 : vector<16x128xf32> to vector<16x128xbf16>
    %c0_23 = arith.constant 0 : index
    %c0_24 = arith.constant 0 : index
    %32 = vector.load %arg10[%c0_23, %c0_24] : memref<16x128xbf16, #tpu.memory_space<vmem>>, vector<16x128xbf16>
    tpu.vector_store %arg10[%c0_23, %c0_24], %31 {strides = array<i32>} : memref<16x128xbf16, #tpu.memory_space<vmem>>, vector<16x128xbf16>,
    return
  }
  func.func @transform_0(%arg0: i32) -> (i32, i32) {
    %c0_i32 = arith.constant 0 : i32
    %c0_i32_0 = arith.constant 0 : i32
    return %arg0, %c0_i32 : i32, i32
  }
  func.func @transform_1(%arg0: i32) -> (i32, i32) {
    %c0_i32 = arith.constant 0 : i32
    %c0_i32_0 = arith.constant 0 : i32
    %c0_i32_1 = arith.constant 0 : i32
    return %c0_i32, %c0_i32_0 : i32, i32
  }
  func.func @transform_2(%arg0: i32) -> (i32, i32) {
    %c0_i32 = arith.constant 0 : i32
    %c0_i32_0 = arith.constant 0 : i32
    %c0_i32_1 = arith.constant 0 : i32
    return %c0_i32, %c0_i32_0 : i32, i32
  }
  func.func @transform_3(%arg0: i32) -> (i32, i32) {
    %c0_i32 = arith.constant 0 : i32
    %c0_i32_0 = arith.constant 0 : i32
    %c0_i32_1 = arith.constant 0 : i32
    return %c0_i32, %c0_i32_0 : i32, i32
  }
  func.func @transform_4(%arg0: i32) -> (i32, i32) {
    %c0_i32 = arith.constant 0 : i32
    %c0_i32_0 = arith.constant 0 : i32
    %c0_i32_1 = arith.constant 0 : i32
    return %c0_i32, %c0_i32_0 : i32, i32
  }
  func.func @transform_5(%arg0: i32) -> (i32, i32) {
    %c0_i32 = arith.constant 0 : i32
    %c0_i32_0 = arith.constant 0 : i32
    %c0_i32_1 = arith.constant 0 : i32
    return %c0_i32, %c0_i32_0 : i32, i32
  }
  func.func @transform_6(%arg0: i32) -> (i32, i32) {
    %c0_i32 = arith.constant 0 : i32
    %c0_i32_0 = arith.constant 0 : i32
    %c0_i32_1 = arith.constant 0 : i32
    return %c0_i32, %c0_i32_0 : i32, i32
  }
  func.func @transform_7(%arg0: i32) -> (i32, i32) {
    %c0_i32 = arith.constant 0 : i32
    %c0_i32_0 = arith.constant 0 : i32
    %c0_i32_1 = arith.constant 0 : i32
    return %c0_i32, %c0_i32_0 : i32, i32
  }
  func.func @transform_8(%arg0: i32) -> (i32, i32) {
    %c0_i32 = arith.constant 0 : i32
    %c0_i32_0 = arith.constant 0 : i32
    %c0_i32_1 = arith.constant 0 : i32
    return %c0_i32, %c0_i32_0 : i32, i32
  }
  func.func @transform_9(%arg0: i32) -> (i32, i32) {
    %c0_i32 = arith.constant 0 : i32
    %c0_i32_0 = arith.constant 0 : i32
    return %arg0, %c0_i32 : i32, i32
  }
}

</mosaic_0001>

<bundles_post_ra>
// kernel: tpu_custom_call.1
= control target key start
LH: loop header
LB: loop body
LE: loop exit
PB: predicated region body
PF: predicated region fallthrough
CT: control target
= control target key end

     0   :  { %s4447_s0 = inlined_call_operand.hbm [shape: bf16[32,128], index: 0, kind: input, shape index: {}]   ;;  %s4448_s1 = inlined_call_operand.hbm [shape: bf16[128,640], index: 1, kind: input, shape index: {}]   ;;  %s4449_s2 = inlined_call_operand.vmem [shape: f32[1,640], index: 2, kind: input, shape index: {}]   ;;  %s4450_s3 = inlined_call_operand.hbm [shape: bf16[640,512], index: 3, kind: input, shape index: {}]   ;;  %s4451_s4 = inlined_call_operand.vmem [shape: f32[1,512], index: 4, kind: input, shape index: {}]   ;;  %s4452_s5 = inlined_call_operand.hbm [shape: bf16[512,256], index: 5, kind: input, shape index: {}]   ;;  %s4453_s6 = inlined_call_operand.vmem [shape: f32[1,256], index: 6, kind: input, shape index: {}]   ;;  %s4454_s7 = inlined_call_operand.hbm [shape: bf16[256,128], index: 7, kind: input, shape index: {}]   ;;  %s4455_s8 = inlined_call_operand.vmem [shape: f32[1,128], index: 8, kind: input, shape index: {}]   ;;  %s4456_s9 = inlined_call_operand.hbm [shape: bf16[32,128], index: 9, kind: output, shape index: {}]  }
   0x1   :  { %4462 = sst [smem:[#allocation18_spill]] %s4448_s1 }
   0x2   :  { %14 = vsyncpa [#allocation3], 0 }
   0x3   :  { %16 = vsyncpa [#allocation3 + $0x1], 0 }
   0x4   :  { %17 = vsyncpa [#allocation6], 0 }
   0x5   :  { %18 = vsyncpa [#allocation9], 0 }
   0x6   :  { %19 = vsyncpa [#allocation4], 0 }
   0x7   :  { %21 = vsyncpa [#allocation4 + $0x1], 0  ;;  %s4096_s30 = smov 0   ;;  %s4098_s10 = smov 0  }
   0x8   :  { %s4100_s11 = smov 0   ;;  %s4102_s12 = smov 0  }
   0x9 LB: > { %4463 = sst [smem:[#allocation16_spill]] %s4013_s30  ;;  %s4117_s13 = sadd.s32 4294967295, %s4025_s12   ;;  %s4025_s12 = sphi %s4102_s12, %s4487_s12   ;;  %s4021_s11 = sphi %s4100_s11, %s4486_s11   ;;  %s4017_s10 = sphi %s4098_s10, %s4485_s10   ;;  %s4013_s30 = sphi %s4096_s30, %s4484_s30  }
   0xa   : > { %s2898_s14 = sadd.s32 4294967294, %s4025_s12   ;;  %p47_p0 = scmp.ne.s32.totalorder %s4017_s10, %s4013_s30 }
   0xb   : > { %p4457_p1 = scmp.eq.s32.totalorder %s4117_s13, 0  ;;  %p245_p3 = scmp.eq.s32.totalorder %s2898_s14, 1 }
   0xc   : > { %p2899_p5 = scmp.ge.s32.totalorder %s4025_s12, 1  ;;  %p252_p7 = scmp.lt.s32.totalorder %s4025_s12, 3 }
   0xd   : > { %p4126_p4 = por %p4457_p1, %p47_p0  ;;  %p4131_p6 = por %p245_p3, %p47_p0 }
   0xe   : > { %p4136_p8 = pnand %p2899_p5, %p252_p7  ;;  %s4027_s18 = smov [#allocation5]  }
   0xf   : > { %s4464_s15 = scalar_select %p4126_p4, 1, 0 }
  0x10   : > { %s4465_s16 = scalar_select %p4131_p6, 1, 0 }
  0x11   : > { %s4467_s17 = scalar_select %p4136_p8, 1, 0 }
  0x12   : > { %4466 = sst [smem:[#allocation17_spill]] %s4465_s16  ;;  %s264_s19 = sshll.u32 %s4027_s18, 4  ;;  %s4140_s19 = int_to_ptr.vmem [resolvable:$true] %s264_s19 }
  0x13   : > { %p3316_p9 = pneg %p4136_p8  ;;  %s4028_s21 = smov [#allocation8]  }
  0x14   : > { %s296_s22 = sshll.u32 %s4028_s21, 4  ;;  %s4469_s1 = sld [smem:[#allocation18_spill]]  ;;  %s4151_s22 = int_to_ptr.vmem [resolvable:$true] %s296_s22 }
  0x15   : > { %p4147_p11 = pnand %p3316_p9, %p4457_p1 }
  0x17   : > { %p4161_p13 = pneg %p4147_p11 }
  0x1a   : > { %s3809_s25 = scalar_lea.hbm %s4469_s1, 5120 }
  0x1b   : > { %p3810_p12 = scmp.ne.s32.totalorder %s4469_s1, %s3809_s25  ;;  %p3816_p5 = scmp.lt.u32.totalorder %s3809_s25, %s4469_s1 }
  0x1d   : > { %p3812_p0 = pnand %p4161_p13, %p3810_p12 }
  0x1f   : > { %p3813_p3 = pneg %p3812_p0 }
  0x21   : > { %p3818_p7 = pnand %p3816_p5, %p3813_p3 }
  0x23   : > { %3821 = shalt.err (!%p3818_p7)
}
  0x24   : > { %s3822_s18 = scalar_lea.vmem %s4140_s19, 5120  ;;  %p3830_p2 = scmp.lt.s32.totalorder %s4140_s19, %s4140_s19 }
  0x25   : > { %p3823_p9 = scmp.ne.s32.totalorder %s4140_s19, %s3822_s18  ;;  %p3831_p6 = scmp.lt.s32.totalorder %s3822_s18, %s3822_s18 }
  0x27   : > { %p3825_p10 = pnand %p3823_p9, %p4161_p13  ;;  %p3832_p12 = por %p3831_p6, %p3830_p2 }
  0x29   : > { %p3826_p1 = pneg %p3825_p10 }
  0x2b   : > { %p3833_p0 = pnand %p3832_p12, %p3826_p1 }
  0x2d   : > { %3836 = shalt.err (!%p3833_p0)
}
  0x2e   : > { %s4029_s21 = smov 320   ;;  %s4030_s23 = smov 20  }
  0x2f   : > { %3319 = dma.hbm_to_vmem [thread:$0]  (!%p4147_p11), %s4469_s1, 5120, %s4140_s19, [#allocation6], %s4029_s21, %s4029_s21, %s4030_s23  }
  0x30   : > { %s3837_s29 = scalar_lea.hbm %s4452_s5, 8192 }
  0x31   : > { %p3838_p2 = scmp.ne.s32.totalorder %s4452_s5, %s3837_s29  ;;  %p3844_p10 = scmp.lt.u32.totalorder %s3837_s29, %s4452_s5 }
  0x33   : > { %p3840_p1 = pnand %p3838_p2, %p4161_p13 }
  0x35   : > { %p3841_p6 = pneg %p3840_p1 }
  0x37   : > { %p3846_p3 = pnand %p3844_p10, %p3841_p6 }
  0x39   : > { %3849 = shalt.err (!%p3846_p3)
}
  0x3a   : > { %s3850_s19 = scalar_lea.vmem %s4151_s22, 8192  ;;  %p3858_p12 = scmp.lt.s32.totalorder %s4151_s22, %s4151_s22 }
  0x3b   : > { %p3851_p5 = scmp.ne.s32.totalorder %s4151_s22, %s3850_s19  ;;  %p3859_p0 = scmp.lt.s32.totalorder %s3850_s19, %s3850_s19 }
  0x3d   : > { %p3853_p7 = pnand %p3851_p5, %p4161_p13  ;;  %p3860_p2 = por %p3859_p0, %p3858_p12 }
  0x3f   : > { %p3854_p9 = pneg %p3853_p7 }
  0x41   : > { %p3861_p1 = pnand %p3860_p2, %p3854_p9 }
  0x43   : > { %3864 = shalt.err (!%p3861_p1)
}
  0x44   : > { %s4031_s16 = smov 128   ;;  %s4032_s30 = smov 8  }
  0x45   : > { %3325 = dma.hbm_to_vmem [thread:$0]  (!%p4147_p11), %s4452_s5, 8192, %s4151_s22, [#allocation9], %s4031_s16, %s4031_s16, %s4032_s30  }
  0x46   : > { %s4033_s24 = smov [#allocation7]   ;;  %s3865_s29 = scalar_lea.hbm %s4450_s3, 20480 }
  0x47   : > { %s280_s25 = sshll.u32 %s4033_s24, 4  ;;  %p3866_p6 = scmp.ne.s32.totalorder %s4450_s3, %s3865_s29  ;;  %s281_s25 = int_to_ptr.vmem [resolvable:$true] %s280_s25 }
  0x48   : > { %p3872_p5 = scmp.lt.u32.totalorder %s3865_s29, %s4450_s3 }
  0x49   : > { %p3868_p10 = pnand %p3866_p6, %p4161_p13 }
  0x4b   : > { %p3869_p3 = pneg %p3868_p10 }
  0x4d   : > { %p3874_p7 = pnand %p3872_p5, %p3869_p3 }
  0x4f   : > { %3877 = shalt.err (!%p3874_p7)
}
  0x50   : > { %s3878_s22 = scalar_lea.vmem %s281_s25, 20480  ;;  %p3886_p2 = scmp.lt.s32.totalorder %s281_s25, %s281_s25 }
  0x51   : > { %p3879_p9 = scmp.ne.s32.totalorder %s281_s25, %s3878_s22  ;;  %p3887_p1 = scmp.lt.s32.totalorder %s3878_s22, %s3878_s22 }
  0x53   : > { %p3881_p12 = pnand %p3879_p9, %p4161_p13  ;;  %p3888_p4 = por %p3887_p1, %p3886_p2 }
  0x55   : > { %p3882_p0 = pneg %p3881_p12 }
  0x57   : > { %p3889_p8 = pnand %p3888_p4, %p3882_p0 }
  0x59   : > { %3892 = shalt.err (!%p3889_p8)
}
  0x5a   : > { %s4034_s16 = smov 256   ;;  %s4035_s30 = smov 16  }
  0x5b   : > { %3322 = dma.hbm_to_vmem [thread:$0]  (!%p4147_p11), %s4450_s3, 20480, %s281_s25, [#allocation6], %s4034_s16, %s4034_s16, %s4035_s30  }
  0x5c   : > { %s4036_s23 = smov [#allocation10]   ;;  %s3893_s29 = scalar_lea.hbm %s4454_s7, 2048 }
  0x5d   : > { %s312_s24 = sshll.u32 %s4036_s23, 4  ;;  %p3894_p4 = scmp.ne.s32.totalorder %s4454_s7, %s3893_s29  ;;  %s313_s24 = int_to_ptr.vmem [resolvable:$true] %s312_s24 }
  0x5e   : > { %p3900_p10 = scmp.lt.u32.totalorder %s3893_s29, %s4454_s7 }
  0x5f   : > { %p3896_p8 = pnand %p3894_p4, %p4161_p13 }
  0x61   : > { %p3897_p6 = pneg %p3896_p8 }
  0x63   : > { %p3902_p3 = pnand %p3900_p10, %p3897_p6 }
  0x65   : > { %3905 = shalt.err (!%p3902_p3)
}
  0x66   : > { %s3906_s25 = scalar_lea.vmem %s313_s24, 2048  ;;  %p3914_p12 = scmp.lt.s32.totalorder %s313_s24, %s313_s24 }
  0x67   : > { %p3907_p5 = scmp.ne.s32.totalorder %s313_s24, %s3906_s25  ;;  %p3915_p0 = scmp.lt.s32.totalorder %s3906_s25, %s3906_s25 }
  0x69   : > { %p3909_p7 = pnand %p3907_p5, %p4161_p13  ;;  %p3916_p2 = por %p3915_p0, %p3914_p12 }
  0x6b   : > { %p3910_p9 = pneg %p3909_p7 }
  0x6d   : > { %p3917_p1 = pnand %p3916_p2, %p3910_p9 }
  0x6f   : > { %3920 = shalt.err (!%p3917_p1)
}
  0x70   : > { %s4037_s16 = smov 64   ;;  %s4038_s28 = smov 4  }
  0x71   : > { %3328 = dma.hbm_to_vmem [thread:$0]  (!%p4147_p11), %s4454_s7, 2048, %s313_s24, [#allocation9], %s4037_s16, %s4037_s16, %s4038_s28  }
  0x72   : > { %s4245_s21 = sadd.s32 1, %s4025_s12   ;;  %s34_s26 = sadd.s32 1, %s4021_s11 }
  0x73   : > { %s31_s23 = ssub.s32 %s4025_s12, %s4245_s21  ;;  %p41_p4 = scmp.ne.s32.totalorder %s4021_s11, %s4017_s10 }
  0x74   : > { %p32_p13 = scmp.eq.s32.totalorder %s31_s23, 0  ;;  %p42_p8 = scmp.eq.s32.totalorder %s4025_s12, 0 }
  0x75   : > { %p4471_p10 = scmp.eq.s32.totalorder %s4117_s13, 1  ;;  %p3341_p5 = scmp.lt.s32.totalorder %s4025_s12, 2 }
  0x76   : > { %s4254_s27 = scalar_select %p32_p13, %s4021_s11, %s34_s26  }
  0x77   : > { %p43_p6 = por %p42_p8, %p41_p4  ;;  %p4258_p3 = por %p4471_p10, %p41_p4 }
  0x78   : > { %s329_s29 = sand.u32 1, %s4021_s11   ;;  %s3204_s24 = sshll.u32 %s4025_s12, 7 }
  0x79   : > { %s2905_s14 = sshll.u32 %s329_s29, 3  ;;  %s4268_s22 = scalar_lea.hbm %s4447_s0, %s3204_s24 }
  0x7a   : > { %s333_s25 = scalar_lea.vmem [#allocation2], %s2905_s14  ;;  %p4272_p11 = pnand %p3341_p5, %p43_p6 }
  0x7b   : > { %s340_s30 = sshll.u32 %s333_s25, 4  ;;  %s4276_s23 = scalar_lea.sflag [#allocation3], %s329_s29  ;;  %s4270_s30 = int_to_ptr.vmem [resolvable:$true] %s340_s30 }
  0x7c   : > { %s3921_s26 = scalar_lea.hbm %s4268_s22, 128  ;;  %p3923_p9 = pneg %p4272_p11 }
  0x7d   : > { %p3922_p7 = scmp.ne.s32.totalorder %s4268_s22, %s3921_s26  ;;  %s3926_s18 = scalar_lea.hbm %s4447_s0, 256 }
  0x7e   : > { %p3927_p2 = scmp.lt.u32.totalorder %s4268_s22, %s4447_s0  ;;  %p3928_p1 = scmp.lt.u32.totalorder %s3926_s18, %s3921_s26 }
  0x7f   : > { %p3924_p12 = pnand %p3923_p9, %p3922_p7  ;;  %p3930_p4 = scmp.lt.u32.totalorder %s3921_s26, %s4268_s22 }
  0x80   : > { %p3929_p13 = por %p3928_p1, %p3927_p2 }
  0x81   : > { %p3925_p0 = pneg %p3924_p12 }
  0x82   : > { %p3931_p8 = por %p3930_p4, %p3929_p13 }
  0x84   : > { %p3932_p6 = pnand %p3931_p8, %p3925_p0 }
  0x86   : > { %3935 = shalt.err (!%p3932_p6)
}
  0x87   : > { %s3936_s29 = scalar_lea.vmem %s4270_s30, 128  ;;  %s4039_s14 = smov [#allocation2]  }
  0x88   : > { %p3937_p10 = scmp.ne.s32.totalorder %s4270_s30, %s3936_s29  ;;  %s3941_s24 = sshll.u32 %s4039_s14, 4  ;;  %s3942_s24 = int_to_ptr.vmem [resolvable:$false] %s3941_s24 }
  0x89   : > { %s3943_s19 = scalar_lea.vmem %s3942_s24, 256  ;;  %p3944_p12 = scmp.lt.s32.totalorder %s4270_s30, %s3942_s24 }
  0x8a   : > { %p3939_p5 = pnand %p3937_p10, %p3923_p9  ;;  %p3945_p2 = scmp.lt.s32.totalorder %s3943_s19, %s3936_s29 }
  0x8c   : > { %p3940_p7 = pneg %p3939_p5  ;;  %p3946_p1 = por %p3945_p2, %p3944_p12 }
  0x8e   : > { %p3947_p13 = pnand %p3946_p1, %p3940_p7 }
  0x90   : > { %3950 = shalt.err (!%p3947_p13)
}
  0x91   : > { %3332 = dma.hbm_to_vmem [thread:$0]  (!%p4272_p11), %s4268_s22, 128, %s4270_s30, %s4276_s23, %s4037_s16, %s4037_s16, %s4038_s28  }
  0x92   : > { %p4474_p9 = scmp.ne.s32.totalorder %s4467_s17, 0 }
  0x93   : > { %s4310_s26 = sand.u32 (!%p4474_p9), 1, %s4017_s10   ;;  %p4475_p0 = scmp.ne.s32.totalorder (!%p4474_p9), %s4464_s15, 0 }
  0x94   : > { %352 = sbr.rel (%p4474_p9) target bundleno = 1269 (0x4f5), region = 56  ;;  %s2909_s18 = sshll.u32 (!%p4474_p9), %s4310_s26, 3 }
  0x95   : > { %s355_s25 = scalar_lea.sflag (!%p4474_p9), [#allocation3], %s4310_s26  ;;  %s4316_s1 = scalar_lea.vmem (!%p4474_p9), [#allocation2], %s2909_s18 }
  0x9b   : > { %3996 = dma.done.wait (%p4475_p0), %s355_s25, 128  }
  0x9c   : > { %3998 = vsyncadd (%p4475_p0), %s355_s25, 4294967168  ;;  %p4476_p11 = scmp.eq.s32.totalorder %s4117_s13, 0 }
  0x9e   : > { %4000 = dma.done.wait (%p4476_p11), [#allocation6], 25600   ;;  %p4477_p4 = pmov %p4476_p11 }
  0xa0   : > { %4002 = vsyncadd (%p4477_p4), [#allocation6], 4294941696  ;;  %p4478_p8 = pmov %p4477_p4 }
  0xa1   : > { %p4479_p6 = pmov %p4477_p4 }
  0xa2   : > { %4004 = dma.done.wait (%p4478_p8), [#allocation9], 10240  }
  0xa3   : > { %4006 = vsyncadd (%p4479_p6), [#allocation9], 4294957056  ;;  %v4040_v0 = vmov 0   ;;  %v3396_v1 = vld [vmem:[#allocation5 + $0x4] ss:$20 sps:$4 sm:$0xff]   ;;  %v4041_v53 = vmov 0.0  }
  0xa4   : > { %735 = vmatprep.mubr.bf16.mxu0 %v4040_v0  ;;  %v3398_v2 = vld [vmem:[#allocation5] ss:$20 sps:$4 sm:$0xff]   ;;  %703 = vmatprep.subr.bf16.mxu0 %v3396_v1  ;;  %v3401_v4 = vld [vmem:[#allocation5 + $0x28] ss:$20 sps:$4 sm:$0xff]   ;;  %v3404_v6 = vld [vmem:[#allocation5 + $0x50] ss:$20 sps:$4 sm:$0xff]  }
  0xa5   : > { %v3399_v3 = vld [vmem:[#allocation5 + $0x2c] ss:$20 sps:$4 sm:$0xff]   ;;  %704 = vmatpush1.bf16.msra.mxu0 %v3398_v2  ;;  %v3402_v5 = vld [vmem:[#allocation5 + $0x54] ss:$20 sps:$4 sm:$0xff]   ;;  %v3405_v7 = vld [vmem:[#allocation5 + $0x7c] ss:$20 sps:$4 sm:$0xff]  }
  0xa6   : > { %705 = vmatprep.subr.bf16.mxu0 %v3399_v3  ;;  %v3407_v8 = vld [vmem:[#allocation5 + $0x78] ss:$20 sps:$4 sm:$0xff]   ;;  %v3410_v10 = vld [vmem:[#allocation5 + $0xa0] ss:$20 sps:$4 sm:$0xff]   ;;  %v3413_v12 = vld [vmem:[#allocation5 + $0xc8] ss:$20 sps:$4 sm:$0xff]  }
  0xa7   : > { %v3408_v9 = vld [vmem:[#allocation5 + $0xa4] ss:$20 sps:$4 sm:$0xff]   ;;  %v3411_v11 = vld [vmem:[#allocation5 + $0xcc] ss:$20 sps:$4 sm:$0xff]   ;;  %v3414_v13 = vld [vmem:[#allocation5 + $0xf4] ss:$20 sps:$4 sm:$0xff]  }
  0xa8   : > { %v3416_v14 = vld [vmem:[#allocation5 + $0xf0] ss:$20 sps:$4 sm:$0xff]   ;;  %v3419_v16 = vld [vmem:[#allocation5 + $0x118] ss:$20 sps:$4 sm:$0xff]   ;;  %v3421_v19 = vld [vmem:[#allocation5 + $0x8] ss:$20 sps:$4 sm:$0xff]  }
  0xa9   : > { %706 = vmatpush1.bf16.msra.mxu0 %v3401_v4  ;;  %v3417_v15 = vld [vmem:[#allocation5 + $0x11c] ss:$20 sps:$4 sm:$0xff]   ;;  %v3423_v17 = vld [vmem:[#allocation5 + $0xc] ss:$20 sps:$4 sm:$0xff]   ;;  %v3453_v20 = vld [vmem:[#allocation7 + $0x4] ss:$16 sps:$4 sm:$0xff]  }
  0xaa   : > { %707 = vmatprep.subr.bf16.mxu0 %v3402_v5  ;;  %v4332_v18 = vld [vmem:[%s4316_s1] sm:$0xff]   ;;  %1827 = vmatprep.subr.bf16.mxu1 %v3453_v20  ;;  %v3435_v35 = vld [vmem:[#allocation5 + $0xac] ss:$20 sps:$4 sm:$0xff]   ;;  %vm4042_vm0 = vmmov 0   ;;  %s3207_s14 = sshll.u32 %s4117_s13, 7  ;;  %s408_s24 = scalar_lea.vmem [#allocation11], %s2909_s18 }
  0xab   : > { %v3426_v21 = vld [vmem:[#allocation5 + $0x34] ss:$20 sps:$4 sm:$0xff]   ;;  %v3458_v22 = vld [vmem:[#allocation7] ss:$16 sps:$4 sm:$0xff]   ;;  %v3427_v28 = vld [vmem:[#allocation5 + $0x58] ss:$20 sps:$4 sm:$0xff]   ;;  %s4401_s15 = scalar_lea.hbm %s4456_s9, %s3207_s14 }
  0xac   : > { %v3459_v23 = vld [vmem:[#allocation7 + $0x24] ss:$16 sps:$4 sm:$0xff]   ;;  %1828 = vmatpush1.bf16.msra.mxu1 %v3458_v22  ;;  %v3429_v25 = vld [vmem:[#allocation5 + $0x5c] ss:$20 sps:$4 sm:$0xff]   ;;  %v3439_v44 = vld [vmem:[#allocation5 + $0xf8] ss:$20 sps:$4 sm:$0xff]  }
  0xad   : > { %708 = vmatpush1.bf16.msra.mxu0 %v3404_v6  ;;  %v3424_v24 = vld [vmem:[#allocation5 + $0x30] ss:$20 sps:$4 sm:$0xff]   ;;  %1829 = vmatprep.subr.bf16.mxu1 %v3459_v23  ;;  %v3430_v33 = vld [vmem:[#allocation5 + $0x80] ss:$20 sps:$4 sm:$0xff]   ;;  %v3433_v36 = vld [vmem:[#allocation5 + $0xa8] ss:$20 sps:$4 sm:$0xff]  }
  0xae   : > { %709 = vmatprep.subr.bf16.mxu0 %v3405_v7  ;;  %v3464_v26 = vld [vmem:[#allocation7 + $0x20] ss:$16 sps:$4 sm:$0xff]   ;;  %v3465_v27 = vld [vmem:[#allocation7 + $0x44] ss:$16 sps:$4 sm:$0xff]   ;;  %v3446_v56 = vld [vmem:[#allocation5 + $0x38] ss:$20 sps:$4 sm:$0xff]  }
  0xaf   : > { %v3470_v29 = vld [vmem:[#allocation7 + $0x40] ss:$16 sps:$4 sm:$0xff]   ;;  %v3471_v30 = vld [vmem:[#allocation7 + $0x64] ss:$16 sps:$4 sm:$0xff]   ;;  %v3448_v62 = vld [vmem:[#allocation5 + $0x88] ss:$20 sps:$4 sm:$0xff]  }
  0xb0   : > { %1830 = vmatpush1.bf16.msra.mxu1 %v3464_v26  ;;  %v3432_v31 = vld [vmem:[#allocation5 + $0x84] ss:$20 sps:$4 sm:$0xff]   ;;  %v3476_v32 = vld [vmem:[#allocation7 + $0x60] ss:$16 sps:$4 sm:$0xff]   ;;  %v3438_v39 = vld [vmem:[#allocation5 + $0xd4] ss:$20 sps:$4 sm:$0xff]  }
  0xb1   : > { %710 = vmatpush1.bf16.msra.mxu0 %v3407_v8  ;;  %1831 = vmatprep.subr.bf16.mxu1 %v3465_v27  ;;  %v3477_v34 = vld [vmem:[#allocation7 + $0x84] ss:$16 sps:$4 sm:$0xff]   ;;  %v3482_v37 = vld [vmem:[#allocation7 + $0x80] ss:$16 sps:$4 sm:$0xff]   ;;  %v3450_v5 = vld [vmem:[#allocation5 + $0xd8] ss:$20 sps:$4 sm:$0xff]  }
  0xb2   : > { %711 = vmatprep.subr.bf16.mxu0 %v3408_v9  ;;  %v3483_v38 = vld [vmem:[#allocation7 + $0xa4] ss:$16 sps:$4 sm:$0xff]   ;;  %v3488_v40 = vld [vmem:[#allocation7 + $0xa0] ss:$16 sps:$4 sm:$0xff]   ;;  %v3452_v7 = vld [vmem:[#allocation5 + $0x128] ss:$20 sps:$4 sm:$0xff]  }
  0xb3   : > { %v3436_v41 = vld [vmem:[#allocation5 + $0xd0] ss:$20 sps:$4 sm:$0xff]   ;;  %v3442_v49 = vld [vmem:[#allocation5 + $0x120] ss:$20 sps:$4 sm:$0xff]   ;;  %v3457_v8 = vld [vmem:[#allocation7 + $0xc] ss:$16 sps:$4 sm:$0xff]  }
  0xb4   : > { %1832 = vmatpush1.bf16.msra.mxu1 %v3470_v29  ;;  %v3489_v42 = vld [vmem:[#allocation7 + $0xc4] ss:$16 sps:$4 sm:$0xff]   ;;  %v3441_v43 = vld [vmem:[#allocation5 + $0xfc] ss:$20 sps:$4 sm:$0xff]   ;;  %v3455_v9 = vld [vmem:[#allocation7 + $0x8] ss:$16 sps:$4 sm:$0xff]  }
  0xb5   : > { %712 = vmatpush1.bf16.msra.mxu0 %v3410_v10  ;;  %1833 = vmatprep.subr.bf16.mxu1 %v3471_v30  ;;  %v3494_v45 = vld [vmem:[#allocation7 + $0xc0] ss:$16 sps:$4 sm:$0xff]   ;;  %v3495_v46 = vld [vmem:[#allocation7 + $0xe4] ss:$16 sps:$4 sm:$0xff]   ;;  %v3463_v10 = vld [vmem:[#allocation7 + $0x2c] ss:$16 sps:$4 sm:$0xff]  }
  0xb6   : > { %713 = vmatprep.subr.bf16.mxu0 %v3411_v11  ;;  %v3444_v47 = vld [vmem:[#allocation5 + $0x124] ss:$20 sps:$4 sm:$0xff]   ;;  %v3500_v48 = vld [vmem:[#allocation7 + $0xe0] ss:$16 sps:$4 sm:$0xff]   ;;  %v3499_v23 = vld [vmem:[#allocation7 + $0xec] ss:$16 sps:$4 sm:$0xff]  }
  0xb7   : > { %v3501_v50 = vld [vmem:[#allocation7 + $0x104] ss:$16 sps:$4 sm:$0xff]   ;;  %v3506_v51 = vld [vmem:[#allocation7 + $0x100] ss:$16 sps:$4 sm:$0xff]   ;;  %v3461_v11 = vld [vmem:[#allocation7 + $0x28] ss:$16 sps:$4 sm:$0xff]  }
  0xb8   : > { %1834 = vmatpush1.bf16.msra.mxu1 %v3476_v32  ;;  %v3445_v52 = vld [vmem:[#allocation5 + $0x10] ss:$20 sps:$4 sm:$0xff]   ;;  %v3447_v59 = vld [vmem:[#allocation5 + $0x60] ss:$20 sps:$4 sm:$0xff]   ;;  %v3485_v20 = vld [vmem:[#allocation7 + $0xa8] ss:$16 sps:$4 sm:$0xff]  }
  0xb9   : > { %714 = vmatpush1.bf16.msra.mxu0 %v3413_v12  ;;  %1835 = vmatprep.subr.bf16.mxu1 %v3477_v34  ;;  %v3507_v54 = vld [vmem:[#allocation7 + $0x124] ss:$16 sps:$4 sm:$0xff]   ;;  %v3512_v55 = vld [vmem:[#allocation7 + $0x120] ss:$16 sps:$4 sm:$0xff]   ;;  %v3469_v12 = vld [vmem:[#allocation7 + $0x4c] ss:$16 sps:$4 sm:$0xff]  }
  0xba   : > { %715 = vmatprep.subr.bf16.mxu0 %v3414_v13  ;;  %v3513_v57 = vld [vmem:[#allocation7 + $0x144] ss:$16 sps:$4 sm:$0xff]   ;;  %v3518_v58 = vld [vmem:[#allocation7 + $0x140] ss:$16 sps:$4 sm:$0xff]   ;;  %v3467_v13 = vld [vmem:[#allocation7 + $0x48] ss:$16 sps:$4 sm:$0xff]  }
  0xbb   : > { %v3519_v60 = vld [vmem:[#allocation7 + $0x164] ss:$16 sps:$4 sm:$0xff]   ;;  %v3524_v61 = vld [vmem:[#allocation7 + $0x160] ss:$16 sps:$4 sm:$0xff]   ;;  %v3505_v27 = vld [vmem:[#allocation7 + $0x10c] ss:$16 sps:$4 sm:$0xff]  }
  0xbc   : > { %1836 = vmatpush1.bf16.msra.mxu1 %v3482_v37  ;;  %v3525_v63 = vld [vmem:[#allocation7 + $0x184] ss:$16 sps:$4 sm:$0xff]   ;;  %v3530_v1 = vld [vmem:[#allocation7 + $0x180] ss:$16 sps:$4 sm:$0xff]   ;;  %v3503_v30 = vld [vmem:[#allocation7 + $0x108] ss:$16 sps:$4 sm:$0xff]  }
  0xbd   : > { %716 = vmatpush1.bf16.msra.mxu0 %v3416_v14  ;;  %1837 = vmatprep.subr.bf16.mxu1 %v3483_v38  ;;  %v3449_v2 = vld [vmem:[#allocation5 + $0xb0] ss:$20 sps:$4 sm:$0xff]   ;;  %v3451_v6 = vld [vmem:[#allocation5 + $0x100] ss:$20 sps:$4 sm:$0xff]   ;;  %v3475_v14 = vld [vmem:[#allocation7 + $0x6c] ss:$16 sps:$4 sm:$0xff]  }
  0xbe   : > { %717 = vmatprep.subr.bf16.mxu0 %v3417_v15  ;;  %v3531_v3 = vld [vmem:[#allocation7 + $0x1a4] ss:$16 sps:$4 sm:$0xff]   ;;  %v3536_v4 = vld [vmem:[#allocation7 + $0x1a0] ss:$16 sps:$4 sm:$0xff]   ;;  %v3473_v15 = vld [vmem:[#allocation7 + $0x68] ss:$16 sps:$4 sm:$0xff]  }
  0xbf   : > { %v3537_v22 = vld [vmem:[#allocation7 + $0x1c4] ss:$16 sps:$4 sm:$0xff]   ;;  %v3509_v32 = vld [vmem:[#allocation7 + $0x128] ss:$16 sps:$4 sm:$0xff]   ;;  %v3529_v37 = vld [vmem:[#allocation7 + $0x18c] ss:$16 sps:$4 sm:$0xff]  }
  0xc0   : > { %1838 = vmatpush1.bf16.msra.mxu1 %v3488_v40  ;;  %v3543_v26 = vld [vmem:[#allocation7 + $0x1e4] ss:$16 sps:$4 sm:$0xff]   ;;  %v3515_v34 = vld [vmem:[#allocation7 + $0x148] ss:$16 sps:$4 sm:$0xff]   ;;  %s2787_s19 = sshll.u32 %s408_s24, 4  ;;  %s2774_s17 = scalar_lea.sflag [#allocation4], %s4310_s26  ;;  %s4403_s19 = int_to_ptr.vmem [resolvable:$true] %s2787_s19 }
  0xc1   : > { %718 = vmatpush1.bf16.msra.mxu0 %v3419_v16  ;;  %1839 = vmatprep.subr.bf16.mxu1 %v3489_v42  ;;  %v3481_v16 = vld [vmem:[#allocation7 + $0x8c] ss:$16 sps:$4 sm:$0xff]   ;;  %v3551_v29 = vld [vmem:[#allocation7 + $0x204] ss:$16 sps:$4 sm:$0xff]   ;;  %v3527_v38 = vld [vmem:[#allocation7 + $0x188] ss:$16 sps:$4 sm:$0xff]  }
  0xc2   : > { %746 = vmatprep.subr.bf16.mxu0 %v3423_v17  ;;  %v3479_v17 = vld [vmem:[#allocation7 + $0x88] ss:$16 sps:$4 sm:$0xff]   ;;  %s3951_s16 = scalar_lea.vmem %s4403_s19, 128  ;;  %s4043_s13 = smov [#allocation11]  }
  0xc3   : > { %v3533_v40 = vld [vmem:[#allocation7 + $0x1a8] ss:$16 sps:$4 sm:$0xff]   ;;  %p3952_p10 = scmp.ne.s32.totalorder %s4403_s19, %s3951_s16  ;;  %s3955_s18 = sshll.u32 %s4043_s13, 4  ;;  %s3956_s18 = int_to_ptr.vmem [resolvable:$false] %s3955_s18 }
  0xc4   : > { %736 = vmatmul.mubr.bf16.vlgmr.msra.gmra.mrb[0].mxu0 %v4332_v18  ;;  %1840 = vmatpush1.bf16.msra.mxu1 %v3494_v45  ;;  %v3539_v42 = vld [vmem:[#allocation7 + $0x1c8] ss:$16 sps:$4 sm:$0xff]   ;;  %v3554_v45 = vld [vmem:[#allocation7 + $0x20c] ss:$16 sps:$4 sm:$0xff]   ;;  %s3957_s28 = scalar_lea.vmem %s3956_s18, 256  ;;  %p3958_p12 = scmp.lt.s32.totalorder %s4403_s19, %s3956_s18 }
  0xc5   : > { %747 = vmatpush1.bf16.msra.mxu0 %v3421_v19  ;;  %778 = vmatprep.mubr.bf16.mxu0 %v4040_v0  ;;  %v3487_v19 = vld [vmem:[#allocation7 + $0xac] ss:$16 sps:$4 sm:$0xff]   ;;  %p3953_p5 = pnand %p3952_p10, %p4258_p3  ;;  %p3959_p2 = scmp.lt.s32.totalorder %s3957_s28, %s3951_s16 }
  0xc6   : > { %748 = vmatprep.subr.bf16.mxu0 %v3426_v21  ;;  %1841 = vmatprep.subr.bf16.mxu1 %v3495_v46  ;;  %v3493_v21 = vld [vmem:[#allocation7 + $0xcc] ss:$16 sps:$4 sm:$0xff]   ;;  %v464_v46 = vlaneseq }
  0xc7   : > { %p3954_p7 = pneg %p3953_p5  ;;  %p3960_p1 = por %p3959_p2, %p3958_p12 }
  0xc8   : > { %1842 = vmatpush1.bf16.msra.mxu1 %v3500_v48 }
  0xc9   : > { %749 = vmatpush1.bf16.msra.mxu0 %v3424_v24  ;;  %1843 = vmatprep.subr.bf16.mxu1 %v3501_v50  ;;  %v3542_v24 = vld [vmem:[#allocation7 + $0x1c0] ss:$16 sps:$4 sm:$0xff]   ;;  %p3961_p13 = pnand %p3960_p1, %p3954_p7 }
  0xca   : > { %750 = vmatprep.subr.bf16.mxu0 %v3429_v25  ;;  %v3497_v25 = vld [vmem:[#allocation7 + $0xe8] ss:$16 sps:$4 sm:$0xff]  }
  0xcc   : > { %1844 = vmatpush1.bf16.msra.mxu1 %v3506_v51 }
  0xcd   : > { %751 = vmatpush1.bf16.msra.mxu0 %v3427_v28  ;;  %1845 = vmatprep.subr.bf16.mxu1 %v3507_v54  ;;  %v3548_v28 = vld [vmem:[#allocation7 + $0x1e0] ss:$16 sps:$4 sm:$0xff]  }
  0xce   : > { %752 = vmatprep.subr.bf16.mxu0 %v3432_v31  ;;  %v3511_v31 = vld [vmem:[#allocation7 + $0x12c] ss:$16 sps:$4 sm:$0xff]  }
  0xd0   : > { %1846 = vmatpush1.bf16.msra.mxu1 %v3512_v55 }
  0xd1   : > { %753 = vmatpush1.bf16.msra.mxu0 %v3430_v33  ;;  %1847 = vmatprep.subr.bf16.mxu1 %v3513_v57  ;;  %v3517_v33 = vld [vmem:[#allocation7 + $0x14c] ss:$16 sps:$4 sm:$0xff]  }
  0xd2   : > { %754 = vmatprep.subr.bf16.mxu0 %v3435_v35  ;;  %v3523_v35 = vld [vmem:[#allocation7 + $0x16c] ss:$16 sps:$4 sm:$0xff]  }
  0xd4   : > { %1848 = vmatpush1.bf16.msra.mxu1 %v3518_v58 }
  0xd5   : > { %755 = vmatpush1.bf16.msra.mxu0 %v3433_v36  ;;  %1849 = vmatprep.subr.bf16.mxu1 %v3519_v60  ;;  %v3521_v36 = vld [vmem:[#allocation7 + $0x168] ss:$16 sps:$4 sm:$0xff]  }
  0xd6   : > { %756 = vmatprep.subr.bf16.mxu0 %v3438_v39  ;;  %v3535_v39 = vld [vmem:[#allocation7 + $0x1ac] ss:$16 sps:$4 sm:$0xff]  }
  0xd8   : > { %1850 = vmatpush1.bf16.msra.mxu1 %v3524_v61 }
  0xd9   : > { %757 = vmatpush1.bf16.msra.mxu0 %v3436_v41  ;;  %1851 = vmatprep.subr.bf16.mxu1 %v3525_v63  ;;  %v3541_v41 = vld [vmem:[#allocation7 + $0x1cc] ss:$16 sps:$4 sm:$0xff]  }
  0xda   : > { %758 = vmatprep.subr.bf16.mxu0 %v3441_v43  ;;  %v3547_v43 = vld [vmem:[#allocation7 + $0x1ec] ss:$16 sps:$4 sm:$0xff]  }
  0xdc   : > { %1852 = vmatpush1.bf16.msra.mxu1 %v3530_v1 }
  0xdd   : > { %759 = vmatpush1.bf16.msra.mxu0 %v3439_v44  ;;  %1853 = vmatprep.subr.bf16.mxu1 %v3531_v3  ;;  %v3545_v44 = vld [vmem:[#allocation7 + $0x1e8] ss:$16 sps:$4 sm:$0xff]  }
  0xde   : > { %760 = vmatprep.subr.bf16.mxu0 %v3444_v47  ;;  %v4338_v47 = vshrl.u32 %v464_v46, 7 }
  0xe0   : > { %1854 = vmatpush1.bf16.msra.mxu1 %v3536_v4  ;;  %v4341_v48 = vsub.s32 0, %v4338_v47  ;;  %v4349_v50 = vsub.s32 1, %v4338_v47  ;;  %v3549_v4 = vld [vmem:[#allocation7 + $0x200] ss:$16 sps:$4 sm:$0xff]  }
  0xe1   : > { %761 = vmatpush1.bf16.msra.mxu0 %v3442_v49  ;;  %1855 = vmatprep.subr.bf16.mxu1 %v3537_v22  ;;  %v4346_v49 = vld [vmem:[%s4449_s2] sm:$0x1f] }
  0xe2   : > { %3244 = vmatprep.subr.bf16.mxu0 %v4041_v53  ;;  %v467_v51 = vrot.slane %v4346_v49, %v4341_v48  ;;  %v3581_v22 = vld [vmem:[#allocation7 + $0x2a4] ss:$16 sps:$4 sm:$0xff]  }
  0xe4   : > { %779 = vmatmul.mubr.bf16.vlgmr.msra.gmra.mrb[4].mxu0 %v4332_v18  ;;  %1856 = vmatpush1.bf16.msra.mxu1 %v3542_v24  ;;  %v474_v24 = vsub.s32 2, %v4338_v47 }
  0xe5   : > { %3245 = vmatpush3.bf16.msra.mxu0 %v3445_v52  ;;  %3260 = vmatprep.mubr.msk.bf16.mxu0 %vm4042_vm0, %v4041_v53  ;;  %v471_v52 = vrot.slane %v4346_v49, %v4349_v50 }
  0xe6   : > { %3246 = vmatprep.subr.bf16.mxu0 %v4041_v53  ;;  %1857 = vmatprep.subr.bf16.mxu1 %v3543_v26  ;;  %v3579_v26 = vld [vmem:[#allocation7 + $0x2a0] ss:$16 sps:$4 sm:$0xff]  }
  0xe8   : > { %1858 = vmatpush1.bf16.msra.mxu1 %v3548_v28  ;;  %v3587_v28 = vld [vmem:[#allocation7 + $0x2c4] ss:$16 sps:$4 sm:$0xff]  }
  0xe9   : > { %3247 = vmatpush3.bf16.msra.mxu0 %v3446_v56  ;;  %1870 = vmatprep.subr.bf16.mxu1 %v3551_v29  ;;  %v3590_v29 = vld [vmem:[#allocation7 + $0x2cc] ss:$16 sps:$4 sm:$0xff]  }
  0xea   : > { %3248 = vmatprep.subr.bf16.mxu0 %v4041_v53 }
  0xed   : > { %3249 = vmatpush3.bf16.msra.mxu0 %v3447_v59 }
  0xee   : > { %3250 = vmatprep.subr.bf16.mxu0 %v4041_v53 }
  0xf1   : > { %3251 = vmatpush3.bf16.msra.mxu0 %v3448_v62 }
  0xf2   : > { %3252 = vmatprep.subr.bf16.mxu0 %v4041_v53 }
  0xf5   : > { %3253 = vmatpush3.bf16.msra.mxu0 %v3449_v2 }
  0xf6   : > { %3254 = vmatprep.subr.bf16.mxu0 %v4041_v53 }
  0xf9   : > { %3255 = vmatpush3.bf16.msra.mxu0 %v3450_v5  ;;  %v3552_v5 = vld [vmem:[#allocation7 + $0x208] ss:$16 sps:$4 sm:$0xff]  }
  0xfa   : > { %3256 = vmatprep.subr.bf16.mxu0 %v4041_v53 }
  0xfd   : > { %3257 = vmatpush3.bf16.msra.mxu0 %v3451_v6  ;;  %v3557_v6 = vld [vmem:[#allocation7 + $0x224] ss:$16 sps:$4 sm:$0xff]  }
  0xfe   : > { %3258 = vmatprep.subr.bf16.mxu0 %v4041_v53 }
 0x101   : > { %3259 = vmatpush3.bf16.msra.mxu0 %v3452_v7  ;;  %v3560_v7 = vld [vmem:[#allocation7 + $0x22c] ss:$16 sps:$4 sm:$0xff]  }
 0x102   : > { %1956 = vmatprep.subr.bf16.mxu0 %v3457_v8  ;;  %v3555_v8 = vld [vmem:[#allocation7 + $0x220] ss:$16 sps:$4 sm:$0xff]  }
 0x104   : > { %3261 = vmatmul.mubr.bf16.vlgmr.msra.gmra.mrb[8].mxu0 %v4332_v18  ;;  %v3491_v18 = vld [vmem:[#allocation7 + $0xc8] ss:$16 sps:$4 sm:$0xff]  }
 0x105   : > { %1957 = vmatpush1.bf16.msra.mxu0 %v3455_v9  ;;  %v3558_v9 = vld [vmem:[#allocation7 + $0x228] ss:$16 sps:$4 sm:$0xff]  }
 0x106   : > { %1958 = vmatprep.subr.bf16.mxu0 %v3463_v10  ;;  %v3563_v10 = vld [vmem:[#allocation7 + $0x244] ss:$16 sps:$4 sm:$0xff]  }
 0x109   : > { %1959 = vmatpush1.bf16.msra.mxu0 %v3461_v11  ;;  %v3566_v11 = vld [vmem:[#allocation7 + $0x24c] ss:$16 sps:$4 sm:$0xff]  }
 0x10a   : > { %1960 = vmatprep.subr.bf16.mxu0 %v3469_v12  ;;  %v3561_v12 = vld [vmem:[#allocation7 + $0x240] ss:$16 sps:$4 sm:$0xff]  }
 0x10d   : > { %1961 = vmatpush1.bf16.msra.mxu0 %v3467_v13  ;;  %v3564_v13 = vld [vmem:[#allocation7 + $0x248] ss:$16 sps:$4 sm:$0xff]  }
 0x10e   : > { %1962 = vmatprep.subr.bf16.mxu0 %v3475_v14  ;;  %v3569_v14 = vld [vmem:[#allocation7 + $0x264] ss:$16 sps:$4 sm:$0xff]  }
 0x111   : > { %1963 = vmatpush1.bf16.msra.mxu0 %v3473_v15  ;;  %v3572_v15 = vld [vmem:[#allocation7 + $0x26c] ss:$16 sps:$4 sm:$0xff]  }
 0x112   : > { %1964 = vmatprep.subr.bf16.mxu0 %v3481_v16  ;;  %v3567_v16 = vld [vmem:[#allocation7 + $0x260] ss:$16 sps:$4 sm:$0xff]  }
 0x115   : > { %1965 = vmatpush1.bf16.msra.mxu0 %v3479_v17  ;;  %v3570_v17 = vld [vmem:[#allocation7 + $0x268] ss:$16 sps:$4 sm:$0xff]  }
 0x116   : > { %1966 = vmatprep.subr.bf16.mxu0 %v3487_v19  ;;  %v3575_v19 = vld [vmem:[#allocation7 + $0x284] ss:$16 sps:$4 sm:$0xff]  }
 0x119   : > { %1967 = vmatpush1.bf16.msra.mxu0 %v3485_v20  ;;  %v3578_v20 = vld [vmem:[#allocation7 + $0x28c] ss:$16 sps:$4 sm:$0xff]  }
 0x11a   : > { %1968 = vmatprep.subr.bf16.mxu0 %v3493_v21  ;;  %v3573_v21 = vld [vmem:[#allocation7 + $0x280] ss:$16 sps:$4 sm:$0xff]  }
 0x11d   : > { %1969 = vmatpush1.bf16.msra.mxu0 %v3491_v18  ;;  %v3576_v18 = vld [vmem:[#allocation7 + $0x288] ss:$16 sps:$4 sm:$0xff]  }
 0x11e   : > { %1970 = vmatprep.subr.bf16.mxu0 %v3499_v23  ;;  %v3584_v23 = vld [vmem:[#allocation7 + $0x2ac] ss:$16 sps:$4 sm:$0xff]  }
 0x121   : > { %1971 = vmatpush1.bf16.msra.mxu0 %v3497_v25  ;;  %v478_v25 = vsub.s32 3, %v4338_v47 }
 0x122   : > { %1972 = vmatprep.subr.bf16.mxu0 %v3505_v27  ;;  %v3582_v27 = vld [vmem:[#allocation7 + $0x2a8] ss:$16 sps:$4 sm:$0xff]  }
 0x125   : > { %1973 = vmatpush1.bf16.msra.mxu0 %v3503_v30  ;;  %v475_v30 = vrot.slane %v4346_v49, %v474_v24 }
 0x126   : > { %1974 = vmatprep.subr.bf16.mxu0 %v3511_v31  ;;  %v479_v31 = vrot.slane %v4346_v49, %v478_v25 }
 0x129   : > { %1975 = vmatpush1.bf16.msra.mxu0 %v3509_v32  ;;  %v3585_v32 = vld [vmem:[#allocation7 + $0x2c0] ss:$16 sps:$4 sm:$0xff]  }
 0x12a   : > { %1976 = vmatprep.subr.bf16.mxu0 %v3517_v33  ;;  %v3588_v33 = vld [vmem:[#allocation7 + $0x2c8] ss:$16 sps:$4 sm:$0xff]  }
 0x12d   : > { %1977 = vmatpush1.bf16.msra.mxu0 %v3515_v34 }
 0x12e   : > { %1978 = vmatprep.subr.bf16.mxu0 %v3523_v35  ;;  %v3593_v35 = vld [vmem:[#allocation7 + $0x2e4] ss:$16 sps:$4 sm:$0xff]  }
 0x131   : > { %1979 = vmatpush1.bf16.msra.mxu0 %v3521_v36  ;;  %v3596_v36 = vld [vmem:[#allocation7 + $0x2ec] ss:$16 sps:$4 sm:$0xff]  }
 0x132   : > { %1980 = vmatprep.subr.bf16.mxu0 %v3529_v37 }
 0x135   : > { %1981 = vmatpush1.bf16.msra.mxu0 %v3527_v38 }
 0x136   : > { %1982 = vmatprep.subr.bf16.mxu0 %v3535_v39 }
 0x139   : > { %1983 = vmatpush1.bf16.msra.mxu0 %v3533_v40 }
 0x13a   : > { %1984 = vmatprep.subr.bf16.mxu0 %v3541_v41 }
 0x13d   : > { %1985 = vmatpush1.bf16.msra.mxu0 %v3539_v42 }
 0x13e   : > { %1986 = vmatprep.subr.bf16.mxu0 %v3547_v43 }
 0x141   : > { %1987 = vmatpush1.bf16.msra.mxu0 %v3545_v44  ;;  %v3591_v44 = vld [vmem:[#allocation7 + $0x2e0] ss:$16 sps:$4 sm:$0xff]  }
 0x142   : > { %1999 = vmatprep.subr.bf16.mxu0 %v3554_v45  ;;  %v3594_v45 = vld [vmem:[#allocation7 + $0x2e8] ss:$16 sps:$4 sm:$0xff]  }
 0x197   : > { %v737_v53 = vpop.f32.mrb[0].mxu0 }
 0x198   : > { %v738_v54 = vadd.f32 %v737_v53, %v467_v51  ;;  %v739_v55 = vpop.f32.mrb[1].mxu0  ;;  %v3602_v53 = vld [vmem:[#allocation7 + $0x30c] ss:$16 sps:$4 sm:$0xff]  }
 0x199   : > { %v740_v56 = vadd.f32 %v739_v55, %v471_v52  ;;  %v741_v57 = vpop.f32.mrb[2].mxu0 }
 0x19a   : > { %v742_v58 = vadd.f32 %v741_v57, %v467_v51  ;;  %v743_v59 = vpop.f32.mrb[3].mxu0  ;;  %v830_v61 = vmax.f32 %v738_v54, 0.0  ;;  %v3597_v57 = vld [vmem:[#allocation7 + $0x300] ss:$16 sps:$4 sm:$0xff]  }
 0x19b   : > { %v744_v60 = vadd.f32 %v743_v59, %v471_v52  ;;  %v831_v63 = vmax.f32 %v740_v56, 0.0  ;;  %v3599_v52 = vld [vmem:[#allocation7 + $0x304] ss:$16 sps:$4 sm:$0xff]  }
 0x19c   : > { %v835_v62 = vmax.f32 %v742_v58, 0.0  ;;  %v3600_v58 = vld [vmem:[#allocation7 + $0x308] ss:$16 sps:$4 sm:$0xff]  }
 0x19d   : > { %v836_v1 = vmax.f32 %v744_v60, 0.0  ;;  %v3605_v60 = vld [vmem:[#allocation7 + $0x324] ss:$16 sps:$4 sm:$0xff]  }
 0x19e   : > { %v840_v2 = vpack.c.bf16 %v835_v62, %v830_v61  ;;  %v3608_v61 = vld [vmem:[#allocation7 + $0x32c] ss:$16 sps:$4 sm:$0xff]   ;;  %v3603_v62 = vld [vmem:[#allocation7 + $0x320] ss:$16 sps:$4 sm:$0xff]  }
 0x19f   : > { %v841_v3 = vpack.c.bf16 %v836_v1, %v831_v63  ;;  %v3606_v63 = vld [vmem:[#allocation7 + $0x328] ss:$16 sps:$4 sm:$0xff]   ;;  %v3611_v1 = vld [vmem:[#allocation7 + $0x344] ss:$16 sps:$4 sm:$0xff]  }
 0x1a1   : > { %1859 = vmatprep.mubr.bf16.mxu1 %v841_v3  ;;  %1988 = vmatprep.mubr.bf16.mxu0 %v841_v3  ;;  %v3609_v3 = vld [vmem:[#allocation7 + $0x340] ss:$16 sps:$4 sm:$0xff]  }
 0x1a2   : > { %1860 = vmatmul.mubr.bf16.vlgmr.msra.gmra.mrb[0].mxu1 %v840_v2  ;;  %1989 = vmatmul.mubr.bf16.vlgmr.msra.gmra.mrb[12].mxu0 %v840_v2  ;;  %v3614_v2 = vld [vmem:[#allocation7 + $0x34c] ss:$16 sps:$4 sm:$0xff]  }
 0x1a3   : > { %1871 = vmatpush1.bf16.msra.mxu1 %v3549_v4  ;;  %2000 = vmatpush1.bf16.msra.mxu0 %v3552_v5  ;;  %v3612_v4 = vld [vmem:[#allocation7 + $0x348] ss:$16 sps:$4 sm:$0xff]   ;;  %v3617_v5 = vld [vmem:[#allocation7 + $0x364] ss:$16 sps:$4 sm:$0xff]  }
 0x1a4   : > { %1872 = vmatprep.subr.bf16.mxu1 %v3557_v6  ;;  %2001 = vmatprep.subr.bf16.mxu0 %v3560_v7  ;;  %v3620_v6 = vld [vmem:[#allocation7 + $0x36c] ss:$16 sps:$4 sm:$0xff]   ;;  %v3615_v7 = vld [vmem:[#allocation7 + $0x360] ss:$16 sps:$4 sm:$0xff]  }
 0x1a7   : > { %1873 = vmatpush1.bf16.msra.mxu1 %v3555_v8  ;;  %2002 = vmatpush1.bf16.msra.mxu0 %v3558_v9  ;;  %v3618_v8 = vld [vmem:[#allocation7 + $0x368] ss:$16 sps:$4 sm:$0xff]   ;;  %v3623_v9 = vld [vmem:[#allocation7 + $0x384] ss:$16 sps:$4 sm:$0xff]  }
 0x1a8   : > { %1874 = vmatprep.subr.bf16.mxu1 %v3563_v10  ;;  %2003 = vmatprep.subr.bf16.mxu0 %v3566_v11  ;;  %v3626_v10 = vld [vmem:[#allocation7 + $0x38c] ss:$16 sps:$4 sm:$0xff]   ;;  %v3621_v11 = vld [vmem:[#allocation7 + $0x380] ss:$16 sps:$4 sm:$0xff]  }
 0x1ab   : > { %1875 = vmatpush1.bf16.msra.mxu1 %v3561_v12  ;;  %2004 = vmatpush1.bf16.msra.mxu0 %v3564_v13  ;;  %v3624_v12 = vld [vmem:[#allocation7 + $0x388] ss:$16 sps:$4 sm:$0xff]   ;;  %v3629_v13 = vld [vmem:[#allocation7 + $0x3a4] ss:$16 sps:$4 sm:$0xff]  }
 0x1ac   : > { %1876 = vmatprep.subr.bf16.mxu1 %v3569_v14  ;;  %2005 = vmatprep.subr.bf16.mxu0 %v3572_v15  ;;  %v3632_v14 = vld [vmem:[#allocation7 + $0x3ac] ss:$16 sps:$4 sm:$0xff]   ;;  %v482_v15 = vsub.s32 4, %v4338_v47 }
 0x1af   : > { %1877 = vmatpush1.bf16.msra.mxu1 %v3567_v16  ;;  %2006 = vmatpush1.bf16.msra.mxu0 %v3570_v17  ;;  %v3627_v16 = vld [vmem:[#allocation7 + $0x3a0] ss:$16 sps:$4 sm:$0xff]   ;;  %v3630_v17 = vld [vmem:[#allocation7 + $0x3a8] ss:$16 sps:$4 sm:$0xff]  }
 0x1b0   : > { %1878 = vmatprep.subr.bf16.mxu1 %v3575_v19  ;;  %2007 = vmatprep.subr.bf16.mxu0 %v3578_v20  ;;  %v3635_v19 = vld [vmem:[#allocation7 + $0x3c4] ss:$16 sps:$4 sm:$0xff]   ;;  %v3638_v20 = vld [vmem:[#allocation7 + $0x3cc] ss:$16 sps:$4 sm:$0xff]  }
 0x1b3   : > { %1879 = vmatpush1.bf16.msra.mxu1 %v3573_v21  ;;  %2008 = vmatpush1.bf16.msra.mxu0 %v3576_v18  ;;  %v483_v21 = vrot.slane %v4346_v49, %v482_v15  ;;  %v3633_v18 = vld [vmem:[#allocation7 + $0x3c0] ss:$16 sps:$4 sm:$0xff]   ;;  %v3647_v49 = vld [vmem:[#allocation7 + $0x404] ss:$16 sps:$4 sm:$0xff]  }
 0x1b4   : > { %1880 = vmatprep.subr.bf16.mxu1 %v3581_v22  ;;  %2009 = vmatprep.subr.bf16.mxu0 %v3584_v23  ;;  %v3636_v22 = vld [vmem:[#allocation7 + $0x3c8] ss:$16 sps:$4 sm:$0xff]   ;;  %v3704_v15 = vld [vmem:[#allocation8 + $0x34] ss:$8 sps:$4 sm:$0xff]  }
 0x1b7   : > { %1881 = vmatpush1.bf16.msra.mxu1 %v3579_v26  ;;  %2010 = vmatpush1.bf16.msra.mxu0 %v3582_v27  ;;  %v780_v34 = vpop.f32.mrb[4].mxu0  ;;  %v3641_v26 = vld [vmem:[#allocation7 + $0x3e4] ss:$16 sps:$4 sm:$0xff]   ;;  %v3644_v27 = vld [vmem:[#allocation7 + $0x3ec] ss:$16 sps:$4 sm:$0xff]  }
 0x1b8   : > { %1882 = vmatprep.subr.bf16.mxu1 %v3587_v28  ;;  %2011 = vmatprep.subr.bf16.mxu0 %v3590_v29  ;;  %v781_v37 = vadd.f32 %v780_v34, %v475_v30  ;;  %v782_v38 = vpop.f32.mrb[5].mxu0  ;;  %v3639_v34 = vld [vmem:[#allocation7 + $0x3e0] ss:$16 sps:$4 sm:$0xff]  }
 0x1b9   : > { %v783_v39 = vadd.f32 %v782_v38, %v479_v31  ;;  %v784_v40 = vpop.f32.mrb[6].mxu0 }
 0x1ba   : > { %v832_v41 = vmax.f32 %v781_v37, 0.0  ;;  %v785_v42 = vadd.f32 %v784_v40, %v475_v30  ;;  %v786_v43 = vpop.f32.mrb[7].mxu0  ;;  %v3648_v40 = vld [vmem:[#allocation7 + $0x408] ss:$16 sps:$4 sm:$0xff]  }
 0x1bb   : > { %1883 = vmatpush1.bf16.msra.mxu1 %v3585_v32  ;;  %2012 = vmatpush1.bf16.msra.mxu0 %v3588_v33  ;;  %v833_v46 = vmax.f32 %v783_v39, 0.0  ;;  %v787_v51 = vadd.f32 %v786_v43, %v479_v31  ;;  %v3645_v39 = vld [vmem:[#allocation7 + $0x400] ss:$16 sps:$4 sm:$0xff]  }
 0x1bc   : > { %1884 = vmatprep.subr.bf16.mxu1 %v3593_v35  ;;  %2013 = vmatprep.subr.bf16.mxu0 %v3596_v36  ;;  %v837_v54 = vmax.f32 %v785_v42, 0.0  ;;  %v3642_v35 = vld [vmem:[#allocation7 + $0x3e8] ss:$16 sps:$4 sm:$0xff]   ;;  %v3650_v36 = vld [vmem:[#allocation7 + $0x40c] ss:$16 sps:$4 sm:$0xff]  }
 0x1bd   : > { %v838_v55 = vmax.f32 %v787_v51, 0.0  ;;  %v3656_v42 = vld [vmem:[#allocation7 + $0x42c] ss:$16 sps:$4 sm:$0xff]   ;;  %v3651_v43 = vld [vmem:[#allocation7 + $0x420] ss:$16 sps:$4 sm:$0xff]  }
 0x1be   : > { %v4363_v56 = vpack.c.bf16 %v837_v54, %v832_v41  ;;  %v3653_v41 = vld [vmem:[#allocation7 + $0x424] ss:$16 sps:$4 sm:$0xff]   ;;  %v3657_v51 = vld [vmem:[#allocation7 + $0x440] ss:$16 sps:$4 sm:$0xff]   ;;  %v3668_v54 = vld [vmem:[#allocation7 + $0x46c] ss:$16 sps:$4 sm:$0xff]  }
 0x1bf   : > { %1885 = vmatpush1.bf16.msra.mxu1 %v3591_v44  ;;  %2014 = vmatpush1.bf16.msra.mxu0 %v3594_v45  ;;  %v843_v59 = vpack.c.bf16 %v838_v55, %v833_v46  ;;  %v3654_v44 = vld [vmem:[#allocation7 + $0x428] ss:$16 sps:$4 sm:$0xff]   ;;  %v3659_v45 = vld [vmem:[#allocation7 + $0x444] ss:$16 sps:$4 sm:$0xff]   ;;  %v3662_v46 = vld [vmem:[#allocation7 + $0x44c] ss:$16 sps:$4 sm:$0xff]  }
 0x1c0   : > { %1886 = vmatprep.subr.bf16.mxu1 %v3599_v52  ;;  %2015 = vmatprep.subr.bf16.mxu0 %v3602_v53  ;;  %v3660_v52 = vld [vmem:[#allocation7 + $0x448] ss:$16 sps:$4 sm:$0xff]   ;;  %v3665_v53 = vld [vmem:[#allocation7 + $0x464] ss:$16 sps:$4 sm:$0xff]   ;;  %v3663_v55 = vld [vmem:[#allocation7 + $0x460] ss:$16 sps:$4 sm:$0xff]  }
 0x1c1   : > { %1902 = vmatprep.mubr.bf16.mxu1 %v843_v59  ;;  %2031 = vmatprep.mubr.bf16.mxu0 %v843_v59  ;;  %v3669_v59 = vld [vmem:[#allocation7 + $0x480] ss:$16 sps:$4 sm:$0xff]  }
 0x1c3   : > { %1887 = vmatpush1.bf16.msra.mxu1 %v3597_v57  ;;  %2016 = vmatpush1.bf16.msra.mxu0 %v3600_v58  ;;  %v3671_v57 = vld [vmem:[#allocation7 + $0x484] ss:$16 sps:$4 sm:$0xff]   ;;  %v3674_v58 = vld [vmem:[#allocation7 + $0x48c] ss:$16 sps:$4 sm:$0xff]  }
 0x1c4   : > { %1888 = vmatprep.subr.bf16.mxu1 %v3605_v60  ;;  %2017 = vmatprep.subr.bf16.mxu0 %v3608_v61  ;;  %v3677_v60 = vld [vmem:[#allocation7 + $0x4a4] ss:$16 sps:$4 sm:$0xff]   ;;  %v3680_v61 = vld [vmem:[#allocation7 + $0x4ac] ss:$16 sps:$4 sm:$0xff]  }
 0x1c7   : > { %1889 = vmatpush1.bf16.msra.mxu1 %v3603_v62  ;;  %2018 = vmatpush1.bf16.msra.mxu0 %v3606_v63  ;;  %v3675_v62 = vld [vmem:[#allocation7 + $0x4a0] ss:$16 sps:$4 sm:$0xff]   ;;  %v3678_v63 = vld [vmem:[#allocation7 + $0x4a8] ss:$16 sps:$4 sm:$0xff]  }
 0x1c8   : > { %1890 = vmatprep.subr.bf16.mxu1 %v3611_v1  ;;  %2019 = vmatprep.subr.bf16.mxu0 %v3614_v2  ;;  %v3683_v1 = vld [vmem:[#allocation7 + $0x4c4] ss:$16 sps:$4 sm:$0xff]   ;;  %v3686_v2 = vld [vmem:[#allocation7 + $0x4cc] ss:$16 sps:$4 sm:$0xff]  }
 0x1cb   : > { %1891 = vmatpush1.bf16.msra.mxu1 %v3609_v3  ;;  %2020 = vmatpush1.bf16.msra.mxu0 %v3612_v4  ;;  %v3681_v3 = vld [vmem:[#allocation7 + $0x4c0] ss:$16 sps:$4 sm:$0xff]   ;;  %v3684_v4 = vld [vmem:[#allocation7 + $0x4c8] ss:$16 sps:$4 sm:$0xff]  }
 0x1cc   : > { %1892 = vmatprep.subr.bf16.mxu1 %v3617_v5  ;;  %2021 = vmatprep.subr.bf16.mxu0 %v3620_v6  ;;  %v3689_v5 = vld [vmem:[#allocation7 + $0x4e4] ss:$16 sps:$4 sm:$0xff]   ;;  %v3692_v6 = vld [vmem:[#allocation7 + $0x4ec] ss:$16 sps:$4 sm:$0xff]  }
 0x1cf   : > { %1893 = vmatpush1.bf16.msra.mxu1 %v3615_v7  ;;  %2022 = vmatpush1.bf16.msra.mxu0 %v3618_v8  ;;  %v3687_v7 = vld [vmem:[#allocation7 + $0x4e0] ss:$16 sps:$4 sm:$0xff]   ;;  %v3690_v8 = vld [vmem:[#allocation7 + $0x4e8] ss:$16 sps:$4 sm:$0xff]  }
 0x1d0   : > { %1894 = vmatprep.subr.bf16.mxu1 %v3623_v9  ;;  %2023 = vmatprep.subr.bf16.mxu0 %v3626_v10  ;;  %v3695_v9 = vld [vmem:[#allocation8 + $0x4] ss:$8 sps:$4 sm:$0xff]   ;;  %v3693_v10 = vld [vmem:[#allocation8] ss:$8 sps:$4 sm:$0xff]  }
 0x1d3   : > { %1895 = vmatpush1.bf16.msra.mxu1 %v3621_v11  ;;  %2024 = vmatpush1.bf16.msra.mxu0 %v3624_v12  ;;  %v3698_v11 = vld [vmem:[#allocation8 + $0x14] ss:$8 sps:$4 sm:$0xff]   ;;  %v3696_v12 = vld [vmem:[#allocation8 + $0x10] ss:$8 sps:$4 sm:$0xff]  }
 0x1d4   : > { %1896 = vmatprep.subr.bf16.mxu1 %v3629_v13  ;;  %2025 = vmatprep.subr.bf16.mxu0 %v3632_v14  ;;  %v3701_v13 = vld [vmem:[#allocation8 + $0x24] ss:$8 sps:$4 sm:$0xff]   ;;  %v3699_v14 = vld [vmem:[#allocation8 + $0x20] ss:$8 sps:$4 sm:$0xff]  }
 0x1d7   : > { %1897 = vmatpush1.bf16.msra.mxu1 %v3627_v16  ;;  %2026 = vmatpush1.bf16.msra.mxu0 %v3630_v17  ;;  %v823_v23 = vpop.f32.mrb[8].mxu0  ;;  %v3702_v16 = vld [vmem:[#allocation8 + $0x30] ss:$8 sps:$4 sm:$0xff]   ;;  %v3707_v17 = vld [vmem:[#allocation8 + $0x44] ss:$8 sps:$4 sm:$0xff]  }
 0x1d8   : > { %1898 = vmatprep.subr.bf16.mxu1 %v3635_v19  ;;  %2027 = vmatprep.subr.bf16.mxu0 %v3638_v20  ;;  %v824_v28 = vadd.f32 %v823_v23, %v483_v21  ;;  %v3262_v29 = vpop.f32.mrb[9].mxu0  ;;  %v3705_v19 = vld [vmem:[#allocation8 + $0x40] ss:$8 sps:$4 sm:$0xff]   ;;  %v3710_v20 = vld [vmem:[#allocation8 + $0x54] ss:$8 sps:$4 sm:$0xff]  }
 0x1d9   : > { %v826_v30 = vpop.f32.mrb[10].mxu0  ;;  %v3716_v23 = vld [vmem:[#allocation8 + $0x74] ss:$8 sps:$4 sm:$0xff]  }
 0x1da   : > { %v834_v31 = vmax.f32 %v824_v28, 0.0  ;;  %v827_v32 = vadd.f32 %v826_v30, %v483_v21  ;;  %v3263_v33 = vpop.f32.mrb[11].mxu0  ;;  %v3708_v21 = vld [vmem:[#allocation8 + $0x50] ss:$8 sps:$4 sm:$0xff]   ;;  %v3717_v28 = vld [vmem:[#allocation8 + $0x80] ss:$8 sps:$4 sm:$0xff]  }
 0x1db   : > { %1899 = vmatpush1.bf16.msra.mxu1 %v3633_v18  ;;  %2028 = vmatpush1.bf16.msra.mxu0 %v3636_v22  ;;  %v3713_v18 = vld [vmem:[#allocation8 + $0x64] ss:$8 sps:$4 sm:$0xff]   ;;  %v3711_v22 = vld [vmem:[#allocation8 + $0x60] ss:$8 sps:$4 sm:$0xff]   ;;  %v3722_v29 = vld [vmem:[#allocation8 + $0x94] ss:$8 sps:$4 sm:$0xff]  }
 0x1dc   : > { %1900 = vmatprep.subr.bf16.mxu1 %v3641_v26  ;;  %2029 = vmatprep.subr.bf16.mxu0 %v3644_v27  ;;  %v839_v37 = vmax.f32 %v827_v32, 0.0  ;;  %v3714_v26 = vld [vmem:[#allocation8 + $0x70] ss:$8 sps:$4 sm:$0xff]   ;;  %v3719_v27 = vld [vmem:[#allocation8 + $0x84] ss:$8 sps:$4 sm:$0xff]  }
 0x1dd   : > { %v3720_v30 = vld [vmem:[#allocation8 + $0x90] ss:$8 sps:$4 sm:$0xff]   ;;  %v3723_v32 = vld [vmem:[#allocation8 + $0xa0] ss:$8 sps:$4 sm:$0xff]   ;;  %v3728_v33 = vld [vmem:[#allocation8 + $0xb4] ss:$8 sps:$4 sm:$0xff]  }
 0x1de   : > { %v4367_v38 = vpack.c.bf16 %v839_v37, %v834_v31  ;;  %v3725_v31 = vld [vmem:[#allocation8 + $0xa4] ss:$8 sps:$4 sm:$0xff]   ;;  %v3732_v37 = vld [vmem:[#allocation8 + $0xd0] ss:$8 sps:$4 sm:$0xff]  }
 0x1df   : > { %1901 = vmatpush1.bf16.msra.mxu1 %v3639_v34  ;;  %2030 = vmatpush1.bf16.msra.mxu0 %v3642_v35  ;;  %v3726_v34 = vld [vmem:[#allocation8 + $0xb0] ss:$8 sps:$4 sm:$0xff]   ;;  %v3731_v35 = vld [vmem:[#allocation8 + $0xc4] ss:$8 sps:$4 sm:$0xff]  }
 0x1e0   : > { %1913 = vmatprep.subr.bf16.mxu1 %v3647_v49  ;;  %2042 = vmatprep.subr.bf16.mxu0 %v3650_v36  ;;  %v3729_v49 = vld [vmem:[#allocation8 + $0xc0] ss:$8 sps:$4 sm:$0xff]   ;;  %v3734_v36 = vld [vmem:[#allocation8 + $0xd4] ss:$8 sps:$4 sm:$0xff]  }
 0x1e2   : > { %1903 = vmatmul.mubr.bf16.vlgmr.msra.gmra.mrb[0].mxu1 %v4363_v56  ;;  %2032 = vmatmul.mubr.bf16.vlgmr.msra.gmra.mrb[12].mxu0 %v4363_v56  ;;  %v3666_v56 = vld [vmem:[#allocation7 + $0x468] ss:$16 sps:$4 sm:$0xff]  }
 0x1e3   : > { %1914 = vmatpush1.bf16.msra.mxu1 %v3645_v39  ;;  %2043 = vmatpush1.bf16.msra.mxu0 %v3648_v40  ;;  %v3735_v39 = vld [vmem:[#allocation8 + $0xe0] ss:$8 sps:$4 sm:$0xff]   ;;  %v3740_v40 = vld [vmem:[#allocation8 + $0xf4] ss:$8 sps:$4 sm:$0xff]  }
 0x1e4   : > { %1915 = vmatprep.subr.bf16.mxu1 %v3653_v41  ;;  %2044 = vmatprep.subr.bf16.mxu0 %v3656_v42  ;;  %v3738_v41 = vld [vmem:[#allocation8 + $0xf0] ss:$8 sps:$4 sm:$0xff]   ;;  %v3743_v42 = vld [vmem:[#allocation8 + $0x104] ss:$8 sps:$4 sm:$0xff]  }
 0x1e5   : > { %1945 = vmatprep.mubr.bf16.mxu1 %v4040_v0  ;;  %2074 = vmatprep.mubr.bf16.mxu0 %v4040_v0  ;;  %v3672_v0 = vld [vmem:[#allocation7 + $0x488] ss:$16 sps:$4 sm:$0xff]  }
 0x1e7   : > { %1916 = vmatpush1.bf16.msra.mxu1 %v3651_v43  ;;  %2045 = vmatpush1.bf16.msra.mxu0 %v3654_v44  ;;  %v3789_v43 = vld [vmem:[#allocation10 + $0x40] sm:$0xff]  }
 0x1e8   : > { %1917 = vmatprep.subr.bf16.mxu1 %v3659_v45  ;;  %2046 = vmatprep.subr.bf16.mxu0 %v3662_v46  ;;  %v3790_v44 = vld [vmem:[#allocation10] sm:$0xff]   ;;  %v3791_v45 = vld [vmem:[#allocation10 + $0x48] sm:$0xff]  }
 0x1e9   : > { %v3792_v46 = vld [vmem:[#allocation10 + $0x8] sm:$0xff]  }
 0x1eb   : > { %1918 = vmatpush1.bf16.msra.mxu1 %v3657_v51  ;;  %2047 = vmatpush1.bf16.msra.mxu0 %v3660_v52  ;;  %v3793_v51 = vld [vmem:[#allocation10 + $0x50] sm:$0xff]  }
 0x1ec   : > { %1919 = vmatprep.subr.bf16.mxu1 %v3665_v53  ;;  %2048 = vmatprep.subr.bf16.mxu0 %v3668_v54  ;;  %v3794_v52 = vld [vmem:[#allocation10 + $0x10] sm:$0xff]   ;;  %v3795_v53 = vld [vmem:[#allocation10 + $0x58] sm:$0xff]  }
 0x1ed   : > { %v3796_v54 = vld [vmem:[#allocation10 + $0x18] sm:$0xff]  }
 0x1ef   : > { %1920 = vmatpush1.bf16.msra.mxu1 %v3663_v55  ;;  %2049 = vmatpush1.bf16.msra.mxu0 %v3666_v56  ;;  %v3797_v55 = vld [vmem:[#allocation10 + $0x60] sm:$0xff]  }
 0x1f0   : > { %1921 = vmatprep.subr.bf16.mxu1 %v3671_v57  ;;  %2050 = vmatprep.subr.bf16.mxu0 %v3674_v58  ;;  %v3798_v56 = vld [vmem:[#allocation10 + $0x20] sm:$0xff]   ;;  %v3799_v57 = vld [vmem:[#allocation10 + $0x68] sm:$0xff]   ;;  %v1005_v58 = vld [vmem:[%s4451_s4] sm:$0xf] }
 0x1f3   : > { %1922 = vmatpush1.bf16.msra.mxu1 %v3669_v59  ;;  %2051 = vmatpush1.bf16.msra.mxu0 %v3672_v0  ;;  %v1010_v59 = vrot.slane %v1005_v58, %v4341_v48  ;;  %v1018_v0 = vrot.slane %v1005_v58, %v474_v24 }
 0x1f4   : > { %1923 = vmatprep.subr.bf16.mxu1 %v3677_v60  ;;  %2052 = vmatprep.subr.bf16.mxu0 %v3680_v61  ;;  %v1014_v60 = vrot.slane %v1005_v58, %v4349_v50  ;;  %v1022_v61 = vrot.slane %v1005_v58, %v478_v25  ;;  %v3788_v58 = vld [vmem:[#allocation8 + $0x1f4] ss:$8 sps:$4 sm:$0xff]  }
 0x1f7   : > { %1924 = vmatpush1.bf16.msra.mxu1 %v3675_v62  ;;  %2053 = vmatpush1.bf16.msra.mxu0 %v3678_v63 }
 0x1f8   : > { %1925 = vmatprep.subr.bf16.mxu1 %v3683_v1  ;;  %2054 = vmatprep.subr.bf16.mxu0 %v3686_v2 }
 0x1fb   : > { %1926 = vmatpush1.bf16.msra.mxu1 %v3681_v3  ;;  %2055 = vmatpush1.bf16.msra.mxu0 %v3684_v4 }
 0x1fc   : > { %1927 = vmatprep.subr.bf16.mxu1 %v3689_v5  ;;  %2056 = vmatprep.subr.bf16.mxu0 %v3692_v6 }
 0x1ff   : > { %1928 = vmatpush1.bf16.msra.mxu1 %v3687_v7  ;;  %2057 = vmatpush1.bf16.msra.mxu0 %v3690_v8 }
 0x200   : > { %2493 = vmatprep.subr.bf16.mxu1 %v3695_v9  ;;  %3222 = vmatprep.subr.bf16.mxu0 %v3789_v43  ;;  %v3768_v43 = vld [vmem:[#allocation8 + $0x190] ss:$8 sps:$4 sm:$0xff]  }
 0x202   : > { %1946 = vmatmul.mubr.bf16.vlgmr.msra.gmra.mrb[0].mxu1 %v4367_v38  ;;  %2075 = vmatmul.mubr.bf16.vlgmr.msra.gmra.mrb[12].mxu0 %v4367_v38  ;;  %v3737_v38 = vld [vmem:[#allocation8 + $0xe4] ss:$8 sps:$4 sm:$0xff]  }
 0x203   : > { %2494 = vmatpush1.bf16.msra.mxu1 %v3693_v10  ;;  %3223 = vmatpush3.bf16.msra.mxu0 %v3790_v44  ;;  %v3773_v44 = vld [vmem:[#allocation8 + $0x1a4] ss:$8 sps:$4 sm:$0xff]  }
 0x204   : > { %2495 = vmatprep.subr.bf16.mxu1 %v3698_v11  ;;  %3224 = vmatprep.subr.bf16.mxu0 %v3791_v45  ;;  %v3771_v45 = vld [vmem:[#allocation8 + $0x1a0] ss:$8 sps:$4 sm:$0xff]  }
 0x207   : > { %2496 = vmatpush1.bf16.msra.mxu1 %v3696_v12  ;;  %3225 = vmatpush3.bf16.msra.mxu0 %v3792_v46  ;;  %v3776_v46 = vld [vmem:[#allocation8 + $0x1b4] ss:$8 sps:$4 sm:$0xff]  }
 0x208   : > { %2497 = vmatprep.subr.bf16.mxu1 %v3701_v13  ;;  %3226 = vmatprep.subr.bf16.mxu0 %v3793_v51  ;;  %v3774_v51 = vld [vmem:[#allocation8 + $0x1b0] ss:$8 sps:$4 sm:$0xff]  }
 0x20b   : > { %2498 = vmatpush1.bf16.msra.mxu1 %v3699_v14  ;;  %3227 = vmatpush3.bf16.msra.mxu0 %v3794_v52  ;;  %v3779_v52 = vld [vmem:[#allocation8 + $0x1c4] ss:$8 sps:$4 sm:$0xff]  }
 0x20c   : > { %2499 = vmatprep.subr.bf16.mxu1 %v3704_v15  ;;  %3228 = vmatprep.subr.bf16.mxu0 %v3795_v53  ;;  %v3777_v53 = vld [vmem:[#allocation8 + $0x1c0] ss:$8 sps:$4 sm:$0xff]  }
 0x20f   : > { %2500 = vmatpush1.bf16.msra.mxu1 %v3702_v16  ;;  %3229 = vmatpush3.bf16.msra.mxu0 %v3796_v54  ;;  %v3782_v54 = vld [vmem:[#allocation8 + $0x1d4] ss:$8 sps:$4 sm:$0xff]  }
 0x210   : > { %2501 = vmatprep.subr.bf16.mxu1 %v3707_v17  ;;  %3230 = vmatprep.subr.bf16.mxu0 %v3797_v55  ;;  %v3780_v55 = vld [vmem:[#allocation8 + $0x1d0] ss:$8 sps:$4 sm:$0xff]  }
 0x213   : > { %2502 = vmatpush1.bf16.msra.mxu1 %v3705_v19  ;;  %3231 = vmatpush3.bf16.msra.mxu0 %v3798_v56  ;;  %v3785_v56 = vld [vmem:[#allocation8 + $0x1e4] ss:$8 sps:$4 sm:$0xff]  }
 0x214   : > { %2503 = vmatprep.subr.bf16.mxu1 %v3710_v20  ;;  %3232 = vmatprep.subr.bf16.mxu0 %v3799_v57  ;;  %v3783_v57 = vld [vmem:[#allocation8 + $0x1e0] ss:$8 sps:$4 sm:$0xff]  }
 0x217   : > { %2504 = vmatpush1.bf16.msra.mxu1 %v3708_v21 }
 0x218   : > { %2505 = vmatprep.subr.bf16.mxu1 %v3713_v18 }
 0x21b   : > { %2506 = vmatpush1.bf16.msra.mxu1 %v3711_v22 }
 0x21c   : > { %2507 = vmatprep.subr.bf16.mxu1 %v3716_v23 }
 0x21f   : > { %2508 = vmatpush1.bf16.msra.mxu1 %v3714_v26  ;;  %v3741_v26 = vld [vmem:[#allocation8 + $0x100] ss:$8 sps:$4 sm:$0xff]  }
 0x220   : > { %2509 = vmatprep.subr.bf16.mxu1 %v3719_v27  ;;  %v3746_v27 = vld [vmem:[#allocation8 + $0x114] ss:$8 sps:$4 sm:$0xff]  }
 0x223   : > { %2510 = vmatpush1.bf16.msra.mxu1 %v3717_v28  ;;  %v3744_v28 = vld [vmem:[#allocation8 + $0x110] ss:$8 sps:$4 sm:$0xff]  }
 0x224   : > { %2511 = vmatprep.subr.bf16.mxu1 %v3722_v29  ;;  %v3749_v29 = vld [vmem:[#allocation8 + $0x124] ss:$8 sps:$4 sm:$0xff]  }
 0x227   : > { %2512 = vmatpush1.bf16.msra.mxu1 %v3720_v30  ;;  %v3747_v30 = vld [vmem:[#allocation8 + $0x120] ss:$8 sps:$4 sm:$0xff]  }
 0x228   : > { %2513 = vmatprep.subr.bf16.mxu1 %v3725_v31  ;;  %v3752_v31 = vld [vmem:[#allocation8 + $0x134] ss:$8 sps:$4 sm:$0xff]  }
 0x22b   : > { %2514 = vmatpush1.bf16.msra.mxu1 %v3723_v32  ;;  %v3750_v32 = vld [vmem:[#allocation8 + $0x130] ss:$8 sps:$4 sm:$0xff]  }
 0x22c   : > { %2515 = vmatprep.subr.bf16.mxu1 %v3728_v33  ;;  %v3755_v33 = vld [vmem:[#allocation8 + $0x144] ss:$8 sps:$4 sm:$0xff]  }
 0x22f   : > { %2516 = vmatpush1.bf16.msra.mxu1 %v3726_v34  ;;  %v3753_v34 = vld [vmem:[#allocation8 + $0x140] ss:$8 sps:$4 sm:$0xff]  }
 0x230   : > { %2517 = vmatprep.subr.bf16.mxu1 %v3731_v35  ;;  %v3758_v35 = vld [vmem:[#allocation8 + $0x154] ss:$8 sps:$4 sm:$0xff]  }
 0x233   : > { %2518 = vmatpush1.bf16.msra.mxu1 %v3729_v49  ;;  %v3756_v49 = vld [vmem:[#allocation8 + $0x150] ss:$8 sps:$4 sm:$0xff]  }
 0x234   : > { %2519 = vmatprep.subr.bf16.mxu1 %v3734_v36  ;;  %v3761_v36 = vld [vmem:[#allocation8 + $0x164] ss:$8 sps:$4 sm:$0xff]  }
 0x237   : > { %2520 = vmatpush1.bf16.msra.mxu1 %v3732_v37  ;;  %v3759_v37 = vld [vmem:[#allocation8 + $0x160] ss:$8 sps:$4 sm:$0xff]  }
 0x238   : > { %2521 = vmatprep.subr.bf16.mxu1 %v3737_v38  ;;  %v3764_v38 = vld [vmem:[#allocation8 + $0x174] ss:$8 sps:$4 sm:$0xff]  }
 0x23b   : > { %2522 = vmatpush1.bf16.msra.mxu1 %v3735_v39  ;;  %v3762_v39 = vld [vmem:[#allocation8 + $0x170] ss:$8 sps:$4 sm:$0xff]  }
 0x23c   : > { %2523 = vmatprep.subr.bf16.mxu1 %v3740_v40  ;;  %v3767_v40 = vld [vmem:[#allocation8 + $0x184] ss:$8 sps:$4 sm:$0xff]  }
 0x23f   : > { %2524 = vmatpush1.bf16.msra.mxu1 %v3738_v41  ;;  %v3765_v41 = vld [vmem:[#allocation8 + $0x180] ss:$8 sps:$4 sm:$0xff]  }
 0x240   : > { %2536 = vmatprep.subr.bf16.mxu1 %v3743_v42  ;;  %v3770_v42 = vld [vmem:[#allocation8 + $0x194] ss:$8 sps:$4 sm:$0xff]  }
 0x2d5   : > { %v1947_v62 = vpop.f32.mrb[0].mxu1  ;;  %v2076_v63 = vpop.f32.mrb[12].mxu0 }
 0x2d6   : > { %v3264_v1 = vadd.f32 %v1947_v62, %v1010_v59  ;;  %v3268_v2 = vadd.f32 %v2076_v63, %v1018_v0  ;;  %v1949_v3 = vpop.f32.mrb[1].mxu1  ;;  %v2078_v4 = vpop.f32.mrb[13].mxu0  ;;  %v3803_v62 = vld [vmem:[#allocation10 + $0x78] sm:$0xff]  }
 0x2d7   : > { %v3265_v5 = vadd.f32 %v1949_v3, %v1014_v60  ;;  %v3269_v6 = vadd.f32 %v2078_v4, %v1022_v61  ;;  %v1951_v7 = vpop.f32.mrb[2].mxu1  ;;  %v2080_v8 = vpop.f32.mrb[14].mxu0  ;;  %v3804_v63 = vld [vmem:[#allocation10 + $0x38] sm:$0xff]  }
 0x2d8   : > { %v3266_v9 = vadd.f32 %v1951_v7, %v1010_v59  ;;  %v3270_v10 = vadd.f32 %v2080_v8, %v1018_v0  ;;  %v1953_v11 = vpop.f32.mrb[3].mxu1  ;;  %v2082_v12 = vpop.f32.mrb[15].mxu0  ;;  %v2085_v14 = vmax.f32 %v3264_v1, 0.0  ;;  %v2087_v15 = vmax.f32 %v3268_v2, 0.0  ;;  %v3786_v59 = vld [vmem:[#allocation8 + $0x1f0] ss:$8 sps:$4 sm:$0xff]  }
 0x2d9   : > { %v3267_v24 = vadd.f32 %v1953_v11, %v1014_v60  ;;  %v3271_v13 = vadd.f32 %v2082_v12, %v1022_v61  ;;  %v2086_v16 = vmax.f32 %v3265_v5, 0.0  ;;  %v2088_v17 = vmax.f32 %v3269_v6, 0.0  ;;  %v3800_v0 = vld [vmem:[#allocation10 + $0x28] sm:$0xff]   ;;  %v3801_v60 = vld [vmem:[#allocation10 + $0x70] sm:$0xff]  }
 0x2da   : > { %v2089_v47 = vmax.f32 %v3266_v9, 0.0  ;;  %v2091_v25 = vmax.f32 %v3270_v10, 0.0  ;;  %3233 = vmatpush3.bf16.msra.mxu0 %v3800_v0  ;;  %v3802_v61 = vld [vmem:[#allocation10 + $0x30] sm:$0xff]  }
 0x2db   : > { %v2090_v19 = vmax.f32 %v3267_v24, 0.0  ;;  %v2092_v20 = vmax.f32 %v3271_v13, 0.0  ;;  %3234 = vmatprep.subr.bf16.mxu0 %v3801_v60  ;;  %v2161_v1 = vld [vmem:[%s4453_s6] sm:$0x3] }
 0x2dc   : > { %v2093_v21 = vpack.c.bf16 %v2089_v47, %v2085_v14  ;;  %v4384_v18 = vpack.c.bf16 %v2091_v25, %v2087_v15  ;;  %v2166_v2 = vrot.slane %v2161_v1, %v4341_v48  ;;  %v2170_v3 = vrot.slane %v2161_v1, %v4349_v50  ;;  %v3180_v50 = vld [vmem:[%s4455_s8] ss:$0 sm:$0xff] }
 0x2dd   : > { %v2094_v22 = vpack.c.bf16 %v2090_v19, %v2086_v16  ;;  %v2096_v23 = vpack.c.bf16 %v2092_v20, %v2088_v17 }
 0x2de   : > { %3235 = vmatpush3.bf16.msra.mxu0 %v3802_v61 }
 0x2df   : > { %2525 = vmatprep.mubr.bf16.mxu1 %v2094_v22  ;;  %3236 = vmatprep.subr.bf16.mxu0 %v3803_v62 }
 0x2e0   : > { %2526 = vmatmul.mubr.bf16.vlgmr.msra.gmra.mrb[4].mxu1 %v2093_v21 }
 0x2e1   : > { %2537 = vmatpush1.bf16.msra.mxu1 %v3741_v26  ;;  %2568 = vmatprep.mubr.bf16.mxu1 %v2096_v23 }
 0x2e2   : > { %2538 = vmatprep.subr.bf16.mxu1 %v3746_v27  ;;  %3237 = vmatpush3.bf16.msra.mxu0 %v3804_v63 }
 0x2e5   : > { %2539 = vmatpush1.bf16.msra.mxu1 %v3744_v28 }
 0x2e6   : > { %2540 = vmatprep.subr.bf16.mxu1 %v3749_v29 }
 0x2e9   : > { %2541 = vmatpush1.bf16.msra.mxu1 %v3747_v30 }
 0x2ea   : > { %2542 = vmatprep.subr.bf16.mxu1 %v3752_v31 }
 0x2ed   : > { %2543 = vmatpush1.bf16.msra.mxu1 %v3750_v32 }
 0x2ee   : > { %2544 = vmatprep.subr.bf16.mxu1 %v3755_v33 }
 0x2f1   : > { %2545 = vmatpush1.bf16.msra.mxu1 %v3753_v34 }
 0x2f2   : > { %2546 = vmatprep.subr.bf16.mxu1 %v3758_v35 }
 0x2f5   : > { %2547 = vmatpush1.bf16.msra.mxu1 %v3756_v49 }
 0x2f6   : > { %2548 = vmatprep.subr.bf16.mxu1 %v3761_v36 }
 0x2f9   : > { %2549 = vmatpush1.bf16.msra.mxu1 %v3759_v37 }
 0x2fa   : > { %2550 = vmatprep.subr.bf16.mxu1 %v3764_v38 }
 0x2fd   : > { %2551 = vmatpush1.bf16.msra.mxu1 %v3762_v39 }
 0x2fe   : > { %2552 = vmatprep.subr.bf16.mxu1 %v3767_v40 }
 0x301   : > { %2553 = vmatpush1.bf16.msra.mxu1 %v3765_v41 }
 0x302   : > { %2554 = vmatprep.subr.bf16.mxu1 %v3770_v42 }
 0x305   : > { %2555 = vmatpush1.bf16.msra.mxu1 %v3768_v43 }
 0x306   : > { %2556 = vmatprep.subr.bf16.mxu1 %v3773_v44 }
 0x309   : > { %2557 = vmatpush1.bf16.msra.mxu1 %v3771_v45 }
 0x30a   : > { %2558 = vmatprep.subr.bf16.mxu1 %v3776_v46 }
 0x30d   : > { %2559 = vmatpush1.bf16.msra.mxu1 %v3774_v51 }
 0x30e   : > { %2560 = vmatprep.subr.bf16.mxu1 %v3779_v52 }
 0x311   : > { %2561 = vmatpush1.bf16.msra.mxu1 %v3777_v53 }
 0x312   : > { %2562 = vmatprep.subr.bf16.mxu1 %v3782_v54 }
 0x315   : > { %2563 = vmatpush1.bf16.msra.mxu1 %v3780_v55 }
 0x316   : > { %2564 = vmatprep.subr.bf16.mxu1 %v3785_v56 }
 0x319   : > { %2565 = vmatpush1.bf16.msra.mxu1 %v3783_v57 }
 0x31a   : > { %2566 = vmatprep.subr.bf16.mxu1 %v3788_v58 }
 0x31d   : > { %2567 = vmatpush1.bf16.msra.mxu1 %v3786_v59 }
 0x320   : > { %2569 = vmatmul.mubr.bf16.vlgmr.msra.gmra.mrb[4].mxu1 %v4384_v18 }
 0x3f3   : > { %v2570_v4 = vpop.f32.mrb[4].mxu1 }
 0x3f4   : > { %v3272_v5 = vadd.f32 %v2570_v4, %v2166_v2  ;;  %v2572_v6 = vpop.f32.mrb[5].mxu1 }
 0x3f5   : > { %v3273_v7 = vadd.f32 %v2572_v6, %v2170_v3  ;;  %v2574_v8 = vpop.f32.mrb[6].mxu1 }
 0x3f6   : > { %v3274_v9 = vadd.f32 %v2574_v8, %v2166_v2  ;;  %v2576_v10 = vpop.f32.mrb[7].mxu1  ;;  %v2579_v12 = vmax.f32 %v3272_v5, 0.0 }
 0x3f7   : > { %v3275_v11 = vadd.f32 %v2576_v10, %v2170_v3  ;;  %v2580_v13 = vmax.f32 %v3273_v7, 0.0 }
 0x3f8   : > { %v2581_v24 = vmax.f32 %v3274_v9, 0.0 }
 0x3f9   : > { %v2582_v14 = vmax.f32 %v3275_v11, 0.0 }
 0x3fa   : > { %v2583_v15 = vpack.c.bf16 %v2581_v24, %v2579_v12 }
 0x3fb   : > { %v2584_v47 = vpack.c.bf16 %v2582_v14, %v2580_v13 }
 0x3fd   : > { %2752 = vmatprep.mubr.bf16.mxu0 %v2584_v47 }
 0x3fe   : > { %2753 = vmatmul.mubr.bf16.vlgmr.msra.gmra.mrb[16].mxu0 %v2583_v15 }
 0x4d1   : > { %v3238_v48 = vpop.f32.mrb[16].mxu0 }
 0x4d2   : > { %v3239_v25 = vpop.f32.mrb[17].mxu0 }
 0x4d3   : > { %v3240_v16 = vadd.f32 %v3239_v25, %v3238_v48  ;;  %v3241_v17 = vpop.f32.mrb[18].mxu0 }
 0x4d4   : > { %v3242_v19 = vpop.f32.mrb[19].mxu0 }
 0x4d5   : > { %v2755_v20 = vadd.f32 %v3240_v16, %v3180_v50  ;;  %v3243_v21 = vadd.f32 %v3242_v19, %v3241_v17 }
 0x4d7   : > { %v2758_v18 = vadd.f32 %v3243_v21, %v3180_v50  ;;  %3805 = vtanh.f32 %v2755_v20 }
 0x4d9   : > { %3807 = vtanh.f32 %v2758_v18 }
 0x4e1   : > { %v3806_v22 = vpop.eup %3805 }
 0x4e3   : > { %v3808_v23 = vpop.eup %3807 }
 0x4e4   : > { %v3211_v26 = vpack.c.bf16 %v3808_v23, %v3806_v22 }
 0x4e6   : > { %3212 = vst [vmem:[%s408_s24] sm:$0xff] %v3211_v26  }
 0x4e7   : > { %3964 = shalt.err (!%p3961_p13)
}
 0x4e8   : > { %s3965_s22 = scalar_lea.hbm %s4401_s15, 128  ;;  %s3969_s29 = scalar_lea.hbm %s4456_s9, 256 }
 0x4e9   : > { %p3966_p9 = scmp.ne.s32.totalorder %s4401_s15, %s3965_s22  ;;  %p3970_p4 = scmp.lt.u32.totalorder %s4401_s15, %s4456_s9 }
 0x4ea   : > { %p3971_p8 = scmp.lt.u32.totalorder %s3969_s29, %s3965_s22  ;;  %p3973_p10 = scmp.lt.u32.totalorder %s3965_s22, %s4401_s15 }
 0x4eb   : > { %p3967_p0 = pnand %p3966_p9, %p4258_p3 }
 0x4ec   : > { %p3972_p6 = por %p3971_p8, %p3970_p4 }
 0x4ed   : > { %p3968_p11 = pneg %p3967_p0 }
 0x4ee   : > { %p3974_p5 = por %p3973_p10, %p3972_p6 }
 0x4f0   : > { %p3975_p7 = pnand %p3974_p5, %p3968_p11 }
 0x4f2   : > { %3978 = shalt.err (!%p3975_p7)
}
 0x4f3   : > { %s4044_s25 = smov 64   ;;  %s4045_s1 = smov 4  }
 0x4f4   : > { %3314 = dma.vmem_to_hbm [thread:$0]  (%p4258_p3), %s4403_s19, 128, %s4401_s15, %s2774_s17, %s4044_s25, %s4044_s25, %s4045_s1  }
 0x4f5 PF: > { %s4480_s16 = sld [smem:[#allocation16_spill]]  ;;  %s4481_s13 = sld [smem:[#allocation17_spill]] }
 0x4f6   : > { %p4483_p2 = scmp.ge.s32.totalorder %s4025_s12, 2 }
 0x4fb   : > { %s2802_s18 = sand.u32 1, %s4480_s16   ;;  %p4482_p12 = scmp.ne.s32.totalorder %s4481_s13, 0 }
 0x4fc   : > { %s2803_s28 = scalar_lea.sflag [#allocation4], %s2802_s18 }
 0x4fd   : > { %p3334_p1 = pnand %p4483_p2, %p4482_p12 }
 0x4ff   : > { %4008 = dma.done.wait (!%p3334_p1), %s2803_s28, 128  }
 0x500   : > { %4010 = vsyncadd (!%p3334_p1), %s2803_s28, 4294967168  ;;  %p24_p13 = scmp.ge.s32.totalorder %s4245_s21, 4   ;;  %s4484_s30 = smov %s4017_s10 }
 0x501   : > { %s4485_s10 = smov %s4021_s11  ;;  %s4486_s11 = smov %s4254_s27 }
 0x502   : > { %s4487_s12 = smov %s4245_s21  ;;  %26 = sbr.rel (!%p24_p13) target bundleno = 9 (0x9), region = 117 }
 0x509   :  { %2808 = vsyncpa [#allocation3], 1 }
 0x50a   :  { %2810 = vsyncpa [#allocation3 + $0x1], 1 }
 0x50b   :  { %2811 = vsyncpa [#allocation6], 1 }
 0x50c   :  { %2812 = vsyncpa [#allocation9], 1 }
 0x50d   :  { %2813 = vsyncpa [#allocation4], 1 }
 0x50e   :  { %2815 = vsyncpa [#allocation4 + $0x1], 1 }

// kernel: tpu_custom_call.1
= control target key start
LH: loop header
LB: loop body
LE: loop exit
PB: predicated region body
PF: predicated region fallthrough
CT: control target
= control target key end

     0   :  { %s4447_s0 = inlined_call_operand.hbm [shape: bf16[32,128], index: 0, kind: input, shape index: {}]   ;;  %s4448_s1 = inlined_call_operand.hbm [shape: bf16[128,640], index: 1, kind: input, shape index: {}]   ;;  %s4449_s2 = inlined_call_operand.vmem [shape: f32[1,640], index: 2, kind: input, shape index: {}]   ;;  %s4450_s3 = inlined_call_operand.hbm [shape: bf16[640,512], index: 3, kind: input, shape index: {}]   ;;  %s4451_s4 = inlined_call_operand.vmem [shape: f32[1,512], index: 4, kind: input, shape index: {}]   ;;  %s4452_s5 = inlined_call_operand.hbm [shape: bf16[512,256], index: 5, kind: input, shape index: {}]   ;;  %s4453_s6 = inlined_call_operand.vmem [shape: f32[1,256], index: 6, kind: input, shape index: {}]   ;;  %s4454_s7 = inlined_call_operand.hbm [shape: bf16[256,128], index: 7, kind: input, shape index: {}]   ;;  %s4455_s8 = inlined_call_operand.vmem [shape: f32[1,128], index: 8, kind: input, shape index: {}]   ;;  %s4456_s9 = inlined_call_operand.hbm [shape: bf16[32,128], index: 9, kind: output, shape index: {}]  }
   0x1   :  { %4462 = sst [smem:[#allocation18_spill]] %s4448_s1 }
   0x2   :  { %14 = vsyncpa [#allocation3], 0 }
   0x3   :  { %16 = vsyncpa [#allocation3 + $0x1], 0 }
   0x4   :  { %17 = vsyncpa [#allocation6], 0 }
   0x5   :  { %18 = vsyncpa [#allocation9], 0 }
   0x6   :  { %19 = vsyncpa [#allocation4], 0 }
   0x7   :  { %21 = vsyncpa [#allocation4 + $0x1], 0  ;;  %s4096_s30 = smov 0   ;;  %s4098_s10 = smov 0  }
   0x8   :  { %s4100_s11 = smov 0   ;;  %s4102_s12 = smov 0  }
   0x9 LB: > { %4463 = sst [smem:[#allocation16_spill]] %s4013_s30  ;;  %s4117_s13 = sadd.s32 4294967295, %s4025_s12   ;;  %s4025_s12 = sphi %s4102_s12, %s4487_s12   ;;  %s4021_s11 = sphi %s4100_s11, %s4486_s11   ;;  %s4017_s10 = sphi %s4098_s10, %s4485_s10   ;;  %s4013_s30 = sphi %s4096_s30, %s4484_s30  }
   0xa   : > { %s2898_s14 = sadd.s32 4294967294, %s4025_s12   ;;  %p47_p0 = scmp.ne.s32.totalorder %s4017_s10, %s4013_s30 }
   0xb   : > { %p4457_p1 = scmp.eq.s32.totalorder %s4117_s13, 0  ;;  %p245_p3 = scmp.eq.s32.totalorder %s2898_s14, 1 }
   0xc   : > { %p2899_p5 = scmp.ge.s32.totalorder %s4025_s12, 1  ;;  %p252_p7 = scmp.lt.s32.totalorder %s4025_s12, 3 }
   0xd   : > { %p4126_p4 = por %p4457_p1, %p47_p0  ;;  %p4131_p6 = por %p245_p3, %p47_p0 }
   0xe   : > { %p4136_p8 = pnand %p2899_p5, %p252_p7  ;;  %s4027_s18 = smov [#allocation5]  }
   0xf   : > { %s4464_s15 = scalar_select %p4126_p4, 1, 0 }
  0x10   : > { %s4465_s16 = scalar_select %p4131_p6, 1, 0 }
  0x11   : > { %s4467_s17 = scalar_select %p4136_p8, 1, 0 }
  0x12   : > { %4466 = sst [smem:[#allocation17_spill]] %s4465_s16  ;;  %s264_s19 = sshll.u32 %s4027_s18, 4  ;;  %s4140_s19 = int_to_ptr.vmem [resolvable:$true] %s264_s19 }
  0x13   : > { %p3316_p9 = pneg %p4136_p8  ;;  %s4028_s21 = smov [#allocation8]  }
  0x14   : > { %s296_s22 = sshll.u32 %s4028_s21, 4  ;;  %s4469_s1 = sld [smem:[#allocation18_spill]]  ;;  %s4151_s22 = int_to_ptr.vmem [resolvable:$true] %s296_s22 }
  0x15   : > { %p4147_p11 = pnand %p3316_p9, %p4457_p1 }
  0x17   : > { %p4161_p13 = pneg %p4147_p11 }
  0x1a   : > { %s3809_s25 = scalar_lea.hbm %s4469_s1, 5120 }
  0x1b   : > { %p3810_p12 = scmp.ne.s32.totalorder %s4469_s1, %s3809_s25  ;;  %p3816_p5 = scmp.lt.u32.totalorder %s3809_s25, %s4469_s1 }
  0x1d   : > { %p3812_p0 = pnand %p4161_p13, %p3810_p12 }
  0x1f   : > { %p3813_p3 = pneg %p3812_p0 }
  0x21   : > { %p3818_p7 = pnand %p3816_p5, %p3813_p3 }
  0x23   : > { %3821 = shalt.err (!%p3818_p7)
}
  0x24   : > { %s3822_s18 = scalar_lea.vmem %s4140_s19, 5120  ;;  %p3830_p2 = scmp.lt.s32.totalorder %s4140_s19, %s4140_s19 }
  0x25   : > { %p3823_p9 = scmp.ne.s32.totalorder %s4140_s19, %s3822_s18  ;;  %p3831_p6 = scmp.lt.s32.totalorder %s3822_s18, %s3822_s18 }
  0x27   : > { %p3825_p10 = pnand %p3823_p9, %p4161_p13  ;;  %p3832_p12 = por %p3831_p6, %p3830_p2 }
  0x29   : > { %p3826_p1 = pneg %p3825_p10 }
  0x2b   : > { %p3833_p0 = pnand %p3832_p12, %p3826_p1 }
  0x2d   : > { %3836 = shalt.err (!%p3833_p0)
}
  0x2e   : > { %s4029_s21 = smov 320   ;;  %s4030_s23 = smov 20  }
  0x2f   : > { %3319 = dma.hbm_to_vmem [thread:$0]  (!%p4147_p11), %s4469_s1, 5120, %s4140_s19, [#allocation6], %s4029_s21, %s4029_s21, %s4030_s23  }
  0x30   : > { %s3837_s29 = scalar_lea.hbm %s4452_s5, 8192 }
  0x31   : > { %p3838_p2 = scmp.ne.s32.totalorder %s4452_s5, %s3837_s29  ;;  %p3844_p10 = scmp.lt.u32.totalorder %s3837_s29, %s4452_s5 }
  0x33   : > { %p3840_p1 = pnand %p3838_p2, %p4161_p13 }
  0x35   : > { %p3841_p6 = pneg %p3840_p1 }
  0x37   : > { %p3846_p3 = pnand %p3844_p10, %p3841_p6 }
  0x39   : > { %3849 = shalt.err (!%p3846_p3)
}
  0x3a   : > { %s3850_s19 = scalar_lea.vmem %s4151_s22, 8192  ;;  %p3858_p12 = scmp.lt.s32.totalorder %s4151_s22, %s4151_s22 }
  0x3b   : > { %p3851_p5 = scmp.ne.s32.totalorder %s4151_s22, %s3850_s19  ;;  %p3859_p0 = scmp.lt.s32.totalorder %s3850_s19, %s3850_s19 }
  0x3d   : > { %p3853_p7 = pnand %p3851_p5, %p4161_p13  ;;  %p3860_p2 = por %p3859_p0, %p3858_p12 }
  0x3f   : > { %p3854_p9 = pneg %p3853_p7 }
  0x41   : > { %p3861_p1 = pnand %p3860_p2, %p3854_p9 }
  0x43   : > { %3864 = shalt.err (!%p3861_p1)
}
  0x44   : > { %s4031_s16 = smov 128   ;;  %s4032_s30 = smov 8  }
  0x45   : > { %3325 = dma.hbm_to_vmem [thread:$0]  (!%p4147_p11), %s4452_s5, 8192, %s4151_s22, [#allocation9], %s4031_s16, %s4031_s16, %s4032_s30  }
  0x46   : > { %s4033_s24 = smov [#allocation7]   ;;  %s3865_s29 = scalar_lea.hbm %s4450_s3, 20480 }
  0x47   : > { %s280_s25 = sshll.u32 %s4033_s24, 4  ;;  %p3866_p6 = scmp.ne.s32.totalorder %s4450_s3, %s3865_s29  ;;  %s281_s25 = int_to_ptr.vmem [resolvable:$true] %s280_s25 }
  0x48   : > { %p3872_p5 = scmp.lt.u32.totalorder %s3865_s29, %s4450_s3 }
  0x49   : > { %p3868_p10 = pnand %p3866_p6, %p4161_p13 }
  0x4b   : > { %p3869_p3 = pneg %p3868_p10 }
  0x4d   : > { %p3874_p7 = pnand %p3872_p5, %p3869_p3 }
  0x4f   : > { %3877 = shalt.err (!%p3874_p7)
}
  0x50   : > { %s3878_s22 = scalar_lea.vmem %s281_s25, 20480  ;;  %p3886_p2 = scmp.lt.s32.totalorder %s281_s25, %s281_s25 }
  0x51   : > { %p3879_p9 = scmp.ne.s32.totalorder %s281_s25, %s3878_s22  ;;  %p3887_p1 = scmp.lt.s32.totalorder %s3878_s22, %s3878_s22 }
  0x53   : > { %p3881_p12 = pnand %p3879_p9, %p4161_p13  ;;  %p3888_p4 = por %p3887_p1, %p3886_p2 }
  0x55   : > { %p3882_p0 = pneg %p3881_p12 }
  0x57   : > { %p3889_p8 = pnand %p3888_p4, %p3882_p0 }
  0x59   : > { %3892 = shalt.err (!%p3889_p8)
}
  0x5a   : > { %s4034_s16 = smov 256   ;;  %s4035_s30 = smov 16  }
  0x5b   : > { %3322 = dma.hbm_to_vmem [thread:$0]  (!%p4147_p11), %s4450_s3, 20480, %s281_s25, [#allocation6], %s4034_s16, %s4034_s16, %s4035_s30  }
  0x5c   : > { %s4036_s23 = smov [#allocation10]   ;;  %s3893_s29 = scalar_lea.hbm %s4454_s7, 2048 }
  0x5d   : > { %s312_s24 = sshll.u32 %s4036_s23, 4  ;;  %p3894_p4 = scmp.ne.s32.totalorder %s4454_s7, %s3893_s29  ;;  %s313_s24 = int_to_ptr.vmem [resolvable:$true] %s312_s24 }
  0x5e   : > { %p3900_p10 = scmp.lt.u32.totalorder %s3893_s29, %s4454_s7 }
  0x5f   : > { %p3896_p8 = pnand %p3894_p4, %p4161_p13 }
  0x61   : > { %p3897_p6 = pneg %p3896_p8 }
  0x63   : > { %p3902_p3 = pnand %p3900_p10, %p3897_p6 }
  0x65   : > { %3905 = shalt.err (!%p3902_p3)
}
  0x66   : > { %s3906_s25 = scalar_lea.vmem %s313_s24, 2048  ;;  %p3914_p12 = scmp.lt.s32.totalorder %s313_s24, %s313_s24 }
  0x67   : > { %p3907_p5 = scmp.ne.s32.totalorder %s313_s24, %s3906_s25  ;;  %p3915_p0 = scmp.lt.s32.totalorder %s3906_s25, %s3906_s25 }
  0x69   : > { %p3909_p7 = pnand %p3907_p5, %p4161_p13  ;;  %p3916_p2 = por %p3915_p0, %p3914_p12 }
  0x6b   : > { %p3910_p9 = pneg %p3909_p7 }
  0x6d   : > { %p3917_p1 = pnand %p3916_p2, %p3910_p9 }
  0x6f   : > { %3920 = shalt.err (!%p3917_p1)
}
  0x70   : > { %s4037_s16 = smov 64   ;;  %s4038_s28 = smov 4  }
  0x71   : > { %3328 = dma.hbm_to_vmem [thread:$0]  (!%p4147_p11), %s4454_s7, 2048, %s313_s24, [#allocation9], %s4037_s16, %s4037_s16, %s4038_s28  }
  0x72   : > { %s4245_s21 = sadd.s32 1, %s4025_s12   ;;  %s34_s26 = sadd.s32 1, %s4021_s11 }
  0x73   : > { %s31_s23 = ssub.s32 %s4025_s12, %s4245_s21  ;;  %p41_p4 = scmp.ne.s32.totalorder %s4021_s11, %s4017_s10 }
  0x74   : > { %p32_p13 = scmp.eq.s32.totalorder %s31_s23, 0  ;;  %p42_p8 = scmp.eq.s32.totalorder %s4025_s12, 0 }
  0x75   : > { %p4471_p10 = scmp.eq.s32.totalorder %s4117_s13, 1  ;;  %p3341_p5 = scmp.lt.s32.totalorder %s4025_s12, 2 }
  0x76   : > { %s4254_s27 = scalar_select %p32_p13, %s4021_s11, %s34_s26  }
  0x77   : > { %p43_p6 = por %p42_p8, %p41_p4  ;;  %p4258_p3 = por %p4471_p10, %p41_p4 }
  0x78   : > { %s329_s29 = sand.u32 1, %s4021_s11   ;;  %s3204_s24 = sshll.u32 %s4025_s12, 7 }
  0x79   : > { %s2905_s14 = sshll.u32 %s329_s29, 3  ;;  %s4268_s22 = scalar_lea.hbm %s4447_s0, %s3204_s24 }
  0x7a   : > { %s333_s25 = scalar_lea.vmem [#allocation2], %s2905_s14  ;;  %p4272_p11 = pnand %p3341_p5, %p43_p6 }
  0x7b   : > { %s340_s30 = sshll.u32 %s333_s25, 4  ;;  %s4276_s23 = scalar_lea.sflag [#allocation3], %s329_s29  ;;  %s4270_s30 = int_to_ptr.vmem [resolvable:$true] %s340_s30 }
  0x7c   : > { %s3921_s26 = scalar_lea.hbm %s4268_s22, 128  ;;  %p3923_p9 = pneg %p4272_p11 }
  0x7d   : > { %p3922_p7 = scmp.ne.s32.totalorder %s4268_s22, %s3921_s26  ;;  %s3926_s18 = scalar_lea.hbm %s4447_s0, 256 }
  0x7e   : > { %p3927_p2 = scmp.lt.u32.totalorder %s4268_s22, %s4447_s0  ;;  %p3928_p1 = scmp.lt.u32.totalorder %s3926_s18, %s3921_s26 }
  0x7f   : > { %p3924_p12 = pnand %p3923_p9, %p3922_p7  ;;  %p3930_p4 = scmp.lt.u32.totalorder %s3921_s26, %s4268_s22 }
  0x80   : > { %p3929_p13 = por %p3928_p1, %p3927_p2 }
  0x81   : > { %p3925_p0 = pneg %p3924_p12 }
  0x82   : > { %p3931_p8 = por %p3930_p4, %p3929_p13 }
  0x84   : > { %p3932_p6 = pnand %p3931_p8, %p3925_p0 }
  0x86   : > { %3935 = shalt.err (!%p3932_p6)
}
  0x87   : > { %s3936_s29 = scalar_lea.vmem %s4270_s30, 128  ;;  %s4039_s14 = smov [#allocation2]  }
  0x88   : > { %p3937_p10 = scmp.ne.s32.totalorder %s4270_s30, %s3936_s29  ;;  %s3941_s24 = sshll.u32 %s4039_s14, 4  ;;  %s3942_s24 = int_to_ptr.vmem [resolvable:$false] %s3941_s24 }
  0x89   : > { %s3943_s19 = scalar_lea.vmem %s3942_s24, 256  ;;  %p3944_p12 = scmp.lt.s32.totalorder %s4270_s30, %s3942_s24 }
  0x8a   : > { %p3939_p5 = pnand %p3937_p10, %p3923_p9  ;;  %p3945_p2 = scmp.lt.s32.totalorder %s3943_s19, %s3936_s29 }
  0x8c   : > { %p3940_p7 = pneg %p3939_p5  ;;  %p3946_p1 = por %p3945_p2, %p3944_p12 }
  0x8e   : > { %p3947_p13 = pnand %p3946_p1, %p3940_p7 }
  0x90   : > { %3950 = shalt.err (!%p3947_p13)
}
  0x91   : > { %3332 = dma.hbm_to_vmem [thread:$0]  (!%p4272_p11), %s4268_s22, 128, %s4270_s30, %s4276_s23, %s4037_s16, %s4037_s16, %s4038_s28  }
  0x92   : > { %p4474_p9 = scmp.ne.s32.totalorder %s4467_s17, 0 }
  0x93   : > { %s4310_s26 = sand.u32 (!%p4474_p9), 1, %s4017_s10   ;;  %p4475_p0 = scmp.ne.s32.totalorder (!%p4474_p9), %s4464_s15, 0 }
  0x94   : > { %352 = sbr.rel (%p4474_p9) target bundleno = 1269 (0x4f5), region = 56  ;;  %s2909_s18 = sshll.u32 (!%p4474_p9), %s4310_s26, 3 }
  0x95   : > { %s355_s25 = scalar_lea.sflag (!%p4474_p9), [#allocation3], %s4310_s26  ;;  %s4316_s1 = scalar_lea.vmem (!%p4474_p9), [#allocation2], %s2909_s18 }
  0x9b   : > { %3996 = dma.done.wait (%p4475_p0), %s355_s25, 128  }
  0x9c   : > { %3998 = vsyncadd (%p4475_p0), %s355_s25, 4294967168  ;;  %p4476_p11 = scmp.eq.s32.totalorder %s4117_s13, 0 }
  0x9e   : > { %4000 = dma.done.wait (%p4476_p11), [#allocation6], 25600   ;;  %p4477_p4 = pmov %p4476_p11 }
  0xa0   : > { %4002 = vsyncadd (%p4477_p4), [#allocation6], 4294941696  ;;  %p4478_p8 = pmov %p4477_p4 }
  0xa1   : > { %p4479_p6 = pmov %p4477_p4 }
  0xa2   : > { %4004 = dma.done.wait (%p4478_p8), [#allocation9], 10240  }
  0xa3   : > { %4006 = vsyncadd (%p4479_p6), [#allocation9], 4294957056  ;;  %v4040_v0 = vmov 0   ;;  %v3396_v1 = vld [vmem:[#allocation5 + $0x4] ss:$20 sps:$4 sm:$0xff]   ;;  %v4041_v53 = vmov 0.0  }
  0xa4   : > { %735 = vmatprep.mubr.bf16.mxu0 %v4040_v0  ;;  %v3398_v2 = vld [vmem:[#allocation5] ss:$20 sps:$4 sm:$0xff]   ;;  %703 = vmatprep.subr.bf16.mxu0 %v3396_v1  ;;  %v3401_v4 = vld [vmem:[#allocation5 + $0x28] ss:$20 sps:$4 sm:$0xff]   ;;  %v3404_v6 = vld [vmem:[#allocation5 + $0x50] ss:$20 sps:$4 sm:$0xff]  }
  0xa5   : > { %v3399_v3 = vld [vmem:[#allocation5 + $0x2c] ss:$20 sps:$4 sm:$0xff]   ;;  %704 = vmatpush1.bf16.msra.mxu0 %v3398_v2  ;;  %v3402_v5 = vld [vmem:[#allocation5 + $0x54] ss:$20 sps:$4 sm:$0xff]   ;;  %v3405_v7 = vld [vmem:[#allocation5 + $0x7c] ss:$20 sps:$4 sm:$0xff]  }
  0xa6   : > { %705 = vmatprep.subr.bf16.mxu0 %v3399_v3  ;;  %v3407_v8 = vld [vmem:[#allocation5 + $0x78] ss:$20 sps:$4 sm:$0xff]   ;;  %v3410_v10 = vld [vmem:[#allocation5 + $0xa0] ss:$20 sps:$4 sm:$0xff]   ;;  %v3413_v12 = vld [vmem:[#allocation5 + $0xc8] ss:$20 sps:$4 sm:$0xff]  }
  0xa7   : > { %v3408_v9 = vld [vmem:[#allocation5 + $0xa4] ss:$20 sps:$4 sm:$0xff]   ;;  %v3411_v11 = vld [vmem:[#allocation5 + $0xcc] ss:$20 sps:$4 sm:$0xff]   ;;  %v3414_v13 = vld [vmem:[#allocation5 + $0xf4] ss:$20 sps:$4 sm:$0xff]  }
  0xa8   : > { %v3416_v14 = vld [vmem:[#allocation5 + $0xf0] ss:$20 sps:$4 sm:$0xff]   ;;  %v3419_v16 = vld [vmem:[#allocation5 + $0x118] ss:$20 sps:$4 sm:$0xff]   ;;  %v3421_v19 = vld [vmem:[#allocation5 + $0x8] ss:$20 sps:$4 sm:$0xff]  }
  0xa9   : > { %706 = vmatpush1.bf16.msra.mxu0 %v3401_v4  ;;  %v3417_v15 = vld [vmem:[#allocation5 + $0x11c] ss:$20 sps:$4 sm:$0xff]   ;;  %v3423_v17 = vld [vmem:[#allocation5 + $0xc] ss:$20 sps:$4 sm:$0xff]   ;;  %v3453_v20 = vld [vmem:[#allocation7 + $0x4] ss:$16 sps:$4 sm:$0xff]  }
  0xaa   : > { %707 = vmatprep.subr.bf16.mxu0 %v3402_v5  ;;  %v4332_v18 = vld [vmem:[%s4316_s1] sm:$0xff]   ;;  %1827 = vmatprep.subr.bf16.mxu1 %v3453_v20  ;;  %v3435_v35 = vld [vmem:[#allocation5 + $0xac] ss:$20 sps:$4 sm:$0xff]   ;;  %vm4042_vm0 = vmmov 0   ;;  %s3207_s14 = sshll.u32 %s4117_s13, 7  ;;  %s408_s24 = scalar_lea.vmem [#allocation11], %s2909_s18 }
  0xab   : > { %v3426_v21 = vld [vmem:[#allocation5 + $0x34] ss:$20 sps:$4 sm:$0xff]   ;;  %v3458_v22 = vld [vmem:[#allocation7] ss:$16 sps:$4 sm:$0xff]   ;;  %v3427_v28 = vld [vmem:[#allocation5 + $0x58] ss:$20 sps:$4 sm:$0xff]   ;;  %s4401_s15 = scalar_lea.hbm %s4456_s9, %s3207_s14 }
  0xac   : > { %v3459_v23 = vld [vmem:[#allocation7 + $0x24] ss:$16 sps:$4 sm:$0xff]   ;;  %1828 = vmatpush1.bf16.msra.mxu1 %v3458_v22  ;;  %v3429_v25 = vld [vmem:[#allocation5 + $0x5c] ss:$20 sps:$4 sm:$0xff]   ;;  %v3439_v44 = vld [vmem:[#allocation5 + $0xf8] ss:$20 sps:$4 sm:$0xff]  }
  0xad   : > { %708 = vmatpush1.bf16.msra.mxu0 %v3404_v6  ;;  %v3424_v24 = vld [vmem:[#allocation5 + $0x30] ss:$20 sps:$4 sm:$0xff]   ;;  %1829 = vmatprep.subr.bf16.mxu1 %v3459_v23  ;;  %v3430_v33 = vld [vmem:[#allocation5 + $0x80] ss:$20 sps:$4 sm:$0xff]   ;;  %v3433_v36 = vld [vmem:[#allocation5 + $0xa8] ss:$20 sps:$4 sm:$0xff]  }
  0xae   : > { %709 = vmatprep.subr.bf16.mxu0 %v3405_v7  ;;  %v3464_v26 = vld [vmem:[#allocation7 + $0x20] ss:$16 sps:$4 sm:$0xff]   ;;  %v3465_v27 = vld [vmem:[#allocation7 + $0x44] ss:$16 sps:$4 sm:$0xff]   ;;  %v3446_v56 = vld [vmem:[#allocation5 + $0x38] ss:$20 sps:$4 sm:$0xff]  }
  0xaf   : > { %v3470_v29 = vld [vmem:[#allocation7 + $0x40] ss:$16 sps:$4 sm:$0xff]   ;;  %v3471_v30 = vld [vmem:[#allocation7 + $0x64] ss:$16 sps:$4 sm:$0xff]   ;;  %v3448_v62 = vld [vmem:[#allocation5 + $0x88] ss:$20 sps:$4 sm:$0xff]  }
  0xb0   : > { %1830 = vmatpush1.bf16.msra.mxu1 %v3464_v26  ;;  %v3432_v31 = vld [vmem:[#allocation5 + $0x84] ss:$20 sps:$4 sm:$0xff]   ;;  %v3476_v32 = vld [vmem:[#allocation7 + $0x60] ss:$16 sps:$4 sm:$0xff]   ;;  %v3438_v39 = vld [vmem:[#allocation5 + $0xd4] ss:$20 sps:$4 sm:$0xff]  }
  0xb1   : > { %710 = vmatpush1.bf16.msra.mxu0 %v3407_v8  ;;  %1831 = vmatprep.subr.bf16.mxu1 %v3465_v27  ;;  %v3477_v34 = vld [vmem:[#allocation7 + $0x84] ss:$16 sps:$4 sm:$0xff]   ;;  %v3482_v37 = vld [vmem:[#allocation7 + $0x80] ss:$16 sps:$4 sm:$0xff]   ;;  %v3450_v5 = vld [vmem:[#allocation5 + $0xd8] ss:$20 sps:$4 sm:$0xff]  }
  0xb2   : > { %711 = vmatprep.subr.bf16.mxu0 %v3408_v9  ;;  %v3483_v38 = vld [vmem:[#allocation7 + $0xa4] ss:$16 sps:$4 sm:$0xff]   ;;  %v3488_v40 = vld [vmem:[#allocation7 + $0xa0] ss:$16 sps:$4 sm:$0xff]   ;;  %v3452_v7 = vld [vmem:[#allocation5 + $0x128] ss:$20 sps:$4 sm:$0xff]  }
  0xb3   : > { %v3436_v41 = vld [vmem:[#allocation5 + $0xd0] ss:$20 sps:$4 sm:$0xff]   ;;  %v3442_v49 = vld [vmem:[#allocation5 + $0x120] ss:$20 sps:$4 sm:$0xff]   ;;  %v3457_v8 = vld [vmem:[#allocation7 + $0xc] ss:$16 sps:$4 sm:$0xff]  }
  0xb4   : > { %1832 = vmatpush1.bf16.msra.mxu1 %v3470_v29  ;;  %v3489_v42 = vld [vmem:[#allocation7 + $0xc4] ss:$16 sps:$4 sm:$0xff]   ;;  %v3441_v43 = vld [vmem:[#allocation5 + $0xfc] ss:$20 sps:$4 sm:$0xff]   ;;  %v3455_v9 = vld [vmem:[#allocation7 + $0x8] ss:$16 sps:$4 sm:$0xff]  }
  0xb5   : > { %712 = vmatpush1.bf16.msra.mxu0 %v3410_v10  ;;  %1833 = vmatprep.subr.bf16.mxu1 %v3471_v30  ;;  %v3494_v45 = vld [vmem:[#allocation7 + $0xc0] ss:$16 sps:$4 sm:$0xff]   ;;  %v3495_v46 = vld [vmem:[#allocation7 + $0xe4] ss:$16 sps:$4 sm:$0xff]   ;;  %v3463_v10 = vld [vmem:[#allocation7 + $0x2c] ss:$16 sps:$4 sm:$0xff]  }
  0xb6   : > { %713 = vmatprep.subr.bf16.mxu0 %v3411_v11  ;;  %v3444_v47 = vld [vmem:[#allocation5 + $0x124] ss:$20 sps:$4 sm:$0xff]   ;;  %v3500_v48 = vld [vmem:[#allocation7 + $0xe0] ss:$16 sps:$4 sm:$0xff]   ;;  %v3499_v23 = vld [vmem:[#allocation7 + $0xec] ss:$16 sps:$4 sm:$0xff]  }
  0xb7   : > { %v3501_v50 = vld [vmem:[#allocation7 + $0x104] ss:$16 sps:$4 sm:$0xff]   ;;  %v3506_v51 = vld [vmem:[#allocation7 + $0x100] ss:$16 sps:$4 sm:$0xff]   ;;  %v3461_v11 = vld [vmem:[#allocation7 + $0x28] ss:$16 sps:$4 sm:$0xff]  }
  0xb8   : > { %1834 = vmatpush1.bf16.msra.mxu1 %v3476_v32  ;;  %v3445_v52 = vld [vmem:[#allocation5 + $0x10] ss:$20 sps:$4 sm:$0xff]   ;;  %v3447_v59 = vld [vmem:[#allocation5 + $0x60] ss:$20 sps:$4 sm:$0xff]   ;;  %v3485_v20 = vld [vmem:[#allocation7 + $0xa8] ss:$16 sps:$4 sm:$0xff]  }
  0xb9   : > { %714 = vmatpush1.bf16.msra.mxu0 %v3413_v12  ;;  %1835 = vmatprep.subr.bf16.mxu1 %v3477_v34  ;;  %v3507_v54 = vld [vmem:[#allocation7 + $0x124] ss:$16 sps:$4 sm:$0xff]   ;;  %v3512_v55 = vld [vmem:[#allocation7 + $0x120] ss:$16 sps:$4 sm:$0xff]   ;;  %v3469_v12 = vld [vmem:[#allocation7 + $0x4c] ss:$16 sps:$4 sm:$0xff]  }
  0xba   : > { %715 = vmatprep.subr.bf16.mxu0 %v3414_v13  ;;  %v3513_v57 = vld [vmem:[#allocation7 + $0x144] ss:$16 sps:$4 sm:$0xff]   ;;  %v3518_v58 = vld [vmem:[#allocation7 + $0x140] ss:$16 sps:$4 sm:$0xff]   ;;  %v3467_v13 = vld [vmem:[#allocation7 + $0x48] ss:$16 sps:$4 sm:$0xff]  }
  0xbb   : > { %v3519_v60 = vld [vmem:[#allocation7 + $0x164] ss:$16 sps:$4 sm:$0xff]   ;;  %v3524_v61 = vld [vmem:[#allocation7 + $0x160] ss:$16 sps:$4 sm:$0xff]   ;;  %v3505_v27 = vld [vmem:[#allocation7 + $0x10c] ss:$16 sps:$4 sm:$0xff]  }
  0xbc   : > { %1836 = vmatpush1.bf16.msra.mxu1 %v3482_v37  ;;  %v3525_v63 = vld [vmem:[#allocation7 + $0x184] ss:$16 sps:$4 sm:$0xff]   ;;  %v3530_v1 = vld [vmem:[#allocation7 + $0x180] ss:$16 sps:$4 sm:$0xff]   ;;  %v3503_v30 = vld [vmem:[#allocation7 + $0x108] ss:$16 sps:$4 sm:$0xff]  }
  0xbd   : > { %716 = vmatpush1.bf16.msra.mxu0 %v3416_v14  ;;  %1837 = vmatprep.subr.bf16.mxu1 %v3483_v38  ;;  %v3449_v2 = vld [vmem:[#allocation5 + $0xb0] ss:$20 sps:$4 sm:$0xff]   ;;  %v3451_v6 = vld [vmem:[#allocation5 + $0x100] ss:$20 sps:$4 sm:$0xff]   ;;  %v3475_v14 = vld [vmem:[#allocation7 + $0x6c] ss:$16 sps:$4 sm:$0xff]  }
  0xbe   : > { %717 = vmatprep.subr.bf16.mxu0 %v3417_v15  ;;  %v3531_v3 = vld [vmem:[#allocation7 + $0x1a4] ss:$16 sps:$4 sm:$0xff]   ;;  %v3536_v4 = vld [vmem:[#allocation7 + $0x1a0] ss:$16 sps:$4 sm:$0xff]   ;;  %v3473_v15 = vld [vmem:[#allocation7 + $0x68] ss:$16 sps:$4 sm:$0xff]  }
  0xbf   : > { %v3537_v22 = vld [vmem:[#allocation7 + $0x1c4] ss:$16 sps:$4 sm:$0xff]   ;;  %v3509_v32 = vld [vmem:[#allocation7 + $0x128] ss:$16 sps:$4 sm:$0xff]   ;;  %v3529_v37 = vld [vmem:[#allocation7 + $0x18c] ss:$16 sps:$4 sm:$0xff]  }
  0xc0   : > { %1838 = vmatpush1.bf16.msra.mxu1 %v3488_v40  ;;  %v3543_v26 = vld [vmem:[#allocation7 + $0x1e4] ss:$16 sps:$4 sm:$0xff]   ;;  %v3515_v34 = vld [vmem:[#allocation7 + $0x148] ss:$16 sps:$4 sm:$0xff]   ;;  %s2787_s19 = sshll.u32 %s408_s24, 4  ;;  %s2774_s17 = scalar_lea.sflag [#allocation4], %s4310_s26  ;;  %s4403_s19 = int_to_ptr.vmem [resolvable:$true] %s2787_s19 }
  0xc1   : > { %718 = vmatpush1.bf16.msra.mxu0 %v3419_v16  ;;  %1839 = vmatprep.subr.bf16.mxu1 %v3489_v42  ;;  %v3481_v16 = vld [vmem:[#allocation7 + $0x8c] ss:$16 sps:$4 sm:$0xff]   ;;  %v3551_v29 = vld [vmem:[#allocation7 + $0x204] ss:$16 sps:$4 sm:$0xff]   ;;  %v3527_v38 = vld [vmem:[#allocation7 + $0x188] ss:$16 sps:$4 sm:$0xff]  }
  0xc2   : > { %746 = vmatprep.subr.bf16.mxu0 %v3423_v17  ;;  %v3479_v17 = vld [vmem:[#allocation7 + $0x88] ss:$16 sps:$4 sm:$0xff]   ;;  %s3951_s16 = scalar_lea.vmem %s4403_s19, 128  ;;  %s4043_s13 = smov [#allocation11]  }
  0xc3   : > { %v3533_v40 = vld [vmem:[#allocation7 + $0x1a8] ss:$16 sps:$4 sm:$0xff]   ;;  %p3952_p10 = scmp.ne.s32.totalorder %s4403_s19, %s3951_s16  ;;  %s3955_s18 = sshll.u32 %s4043_s13, 4  ;;  %s3956_s18 = int_to_ptr.vmem [resolvable:$false] %s3955_s18 }
  0xc4   : > { %736 = vmatmul.mubr.bf16.vlgmr.msra.gmra.mrb[0].mxu0 %v4332_v18  ;;  %1840 = vmatpush1.bf16.msra.mxu1 %v3494_v45  ;;  %v3539_v42 = vld [vmem:[#allocation7 + $0x1c8] ss:$16 sps:$4 sm:$0xff]   ;;  %v3554_v45 = vld [vmem:[#allocation7 + $0x20c] ss:$16 sps:$4 sm:$0xff]   ;;  %s3957_s28 = scalar_lea.vmem %s3956_s18, 256  ;;  %p3958_p12 = scmp.lt.s32.totalorder %s4403_s19, %s3956_s18 }
  0xc5   : > { %747 = vmatpush1.bf16.msra.mxu0 %v3421_v19  ;;  %778 = vmatprep.mubr.bf16.mxu0 %v4040_v0  ;;  %v3487_v19 = vld [vmem:[#allocation7 + $0xac] ss:$16 sps:$4 sm:$0xff]   ;;  %p3953_p5 = pnand %p3952_p10, %p4258_p3  ;;  %p3959_p2 = scmp.lt.s32.totalorder %s3957_s28, %s3951_s16 }
  0xc6   : > { %748 = vmatprep.subr.bf16.mxu0 %v3426_v21  ;;  %1841 = vmatprep.subr.bf16.mxu1 %v3495_v46  ;;  %v3493_v21 = vld [vmem:[#allocation7 + $0xcc] ss:$16 sps:$4 sm:$0xff]   ;;  %v464_v46 = vlaneseq }
  0xc7   : > { %p3954_p7 = pneg %p3953_p5  ;;  %p3960_p1 = por %p3959_p2, %p3958_p12 }
  0xc8   : > { %1842 = vmatpush1.bf16.msra.mxu1 %v3500_v48 }
  0xc9   : > { %749 = vmatpush1.bf16.msra.mxu0 %v3424_v24  ;;  %1843 = vmatprep.subr.bf16.mxu1 %v3501_v50  ;;  %v3542_v24 = vld [vmem:[#allocation7 + $0x1c0] ss:$16 sps:$4 sm:$0xff]   ;;  %p3961_p13 = pnand %p3960_p1, %p3954_p7 }
  0xca   : > { %750 = vmatprep.subr.bf16.mxu0 %v3429_v25  ;;  %v3497_v25 = vld [vmem:[#allocation7 + $0xe8] ss:$16 sps:$4 sm:$0xff]  }
  0xcc   : > { %1844 = vmatpush1.bf16.msra.mxu1 %v3506_v51 }
  0xcd   : > { %751 = vmatpush1.bf16.msra.mxu0 %v3427_v28  ;;  %1845 = vmatprep.subr.bf16.mxu1 %v3507_v54  ;;  %v3548_v28 = vld [vmem:[#allocation7 + $0x1e0] ss:$16 sps:$4 sm:$0xff]  }
  0xce   : > { %752 = vmatprep.subr.bf16.mxu0 %v3432_v31  ;;  %v3511_v31 = vld [vmem:[#allocation7 + $0x12c] ss:$16 sps:$4 sm:$0xff]  }
  0xd0   : > { %1846 = vmatpush1.bf16.msra.mxu1 %v3512_v55 }
  0xd1   : > { %753 = vmatpush1.bf16.msra.mxu0 %v3430_v33  ;;  %1847 = vmatprep.subr.bf16.mxu1 %v3513_v57  ;;  %v3517_v33 = vld [vmem:[#allocation7 + $0x14c] ss:$16 sps:$4 sm:$0xff]  }
  0xd2   : > { %754 = vmatprep.subr.bf16.mxu0 %v3435_v35  ;;  %v3523_v35 = vld [vmem:[#allocation7 + $0x16c] ss:$16 sps:$4 sm:$0xff]  }
  0xd4   : > { %1848 = vmatpush1.bf16.msra.mxu1 %v3518_v58 }
  0xd5   : > { %755 = vmatpush1.bf16.msra.mxu0 %v3433_v36  ;;  %1849 = vmatprep.subr.bf16.mxu1 %v3519_v60  ;;  %v3521_v36 = vld [vmem:[#allocation7 + $0x168] ss:$16 sps:$4 sm:$0xff]  }
  0xd6   : > { %756 = vmatprep.subr.bf16.mxu0 %v3438_v39  ;;  %v3535_v39 = vld [vmem:[#allocation7 + $0x1ac] ss:$16 sps:$4 sm:$0xff]  }
  0xd8   : > { %1850 = vmatpush1.bf16.msra.mxu1 %v3524_v61 }
  0xd9   : > { %757 = vmatpush1.bf16.msra.mxu0 %v3436_v41  ;;  %1851 = vmatprep.subr.bf16.mxu1 %v3525_v63  ;;  %v3541_v41 = vld [vmem:[#allocation7 + $0x1cc] ss:$16 sps:$4 sm:$0xff]  }
  0xda   : > { %758 = vmatprep.subr.bf16.mxu0 %v3441_v43  ;;  %v3547_v43 = vld [vmem:[#allocation7 + $0x1ec] ss:$16 sps:$4 sm:$0xff]  }
  0xdc   : > { %1852 = vmatpush1.bf16.msra.mxu1 %v3530_v1 }
  0xdd   : > { %759 = vmatpush1.bf16.msra.mxu0 %v3439_v44  ;;  %1853 = vmatprep.subr.bf16.mxu1 %v3531_v3  ;;  %v3545_v44 = vld [vmem:[#allocation7 + $0x1e8] ss:$16 sps:$4 sm:$0xff]  }
  0xde   : > { %760 = vmatprep.subr.bf16.mxu0 %v3444_v47  ;;  %v4338_v47 = vshrl.u32 %v464_v46, 7 }
  0xe0   : > { %1854 = vmatpush1.bf16.msra.mxu1 %v3536_v4  ;;  %v4341_v48 = vsub.s32 0, %v4338_v47  ;;  %v4349_v50 = vsub.s32 1, %v4338_v47  ;;  %v3549_v4 = vld [vmem:[#allocation7 + $0x200] ss:$16 sps:$4 sm:$0xff]  }
  0xe1   : > { %761 = vmatpush1.bf16.msra.mxu0 %v3442_v49  ;;  %1855 = vmatprep.subr.bf16.mxu1 %v3537_v22  ;;  %v4346_v49 = vld [vmem:[%s4449_s2] sm:$0x1f] }
  0xe2   : > { %3244 = vmatprep.subr.bf16.mxu0 %v4041_v53  ;;  %v467_v51 = vrot.slane %v4346_v49, %v4341_v48  ;;  %v3581_v22 = vld [vmem:[#allocation7 + $0x2a4] ss:$16 sps:$4 sm:$0xff]  }
  0xe4   : > { %779 = vmatmul.mubr.bf16.vlgmr.msra.gmra.mrb[4].mxu0 %v4332_v18  ;;  %1856 = vmatpush1.bf16.msra.mxu1 %v3542_v24  ;;  %v474_v24 = vsub.s32 2, %v4338_v47 }
  0xe5   : > { %3245 = vmatpush3.bf16.msra.mxu0 %v3445_v52  ;;  %3260 = vmatprep.mubr.msk.bf16.mxu0 %vm4042_vm0, %v4041_v53  ;;  %v471_v52 = vrot.slane %v4346_v49, %v4349_v50 }
  0xe6   : > { %3246 = vmatprep.subr.bf16.mxu0 %v4041_v53  ;;  %1857 = vmatprep.subr.bf16.mxu1 %v3543_v26  ;;  %v3579_v26 = vld [vmem:[#allocation7 + $0x2a0] ss:$16 sps:$4 sm:$0xff]  }
  0xe8   : > { %1858 = vmatpush1.bf16.msra.mxu1 %v3548_v28  ;;  %v3587_v28 = vld [vmem:[#allocation7 + $0x2c4] ss:$16 sps:$4 sm:$0xff]  }
  0xe9   : > { %3247 = vmatpush3.bf16.msra.mxu0 %v3446_v56  ;;  %1870 = vmatprep.subr.bf16.mxu1 %v3551_v29  ;;  %v3590_v29 = vld [vmem:[#allocation7 + $0x2cc] ss:$16 sps:$4 sm:$0xff]  }
  0xea   : > { %3248 = vmatprep.subr.bf16.mxu0 %v4041_v53 }
  0xed   : > { %3249 = vmatpush3.bf16.msra.mxu0 %v3447_v59 }
  0xee   : > { %3250 = vmatprep.subr.bf16.mxu0 %v4041_v53 }
  0xf1   : > { %3251 = vmatpush3.bf16.msra.mxu0 %v3448_v62 }
  0xf2   : > { %3252 = vmatprep.subr.bf16.mxu0 %v4041_v53 }
  0xf5   : > { %3253 = vmatpush3.bf16.msra.mxu0 %v3449_v2 }
  0xf6   : > { %3254 = vmatprep.subr.bf16.mxu0 %v4041_v53 }
  0xf9   : > { %3255 = vmatpush3.bf16.msra.mxu0 %v3450_v5  ;;  %v3552_v5 = vld [vmem:[#allocation7 + $0x208] ss:$16 sps:$4 sm:$0xff]  }
  0xfa   : > { %3256 = vmatprep.subr.bf16.mxu0 %v4041_v53 }
  0xfd   : > { %3257 = vmatpush3.bf16.msra.mxu0 %v3451_v6  ;;  %v3557_v6 = vld [vmem:[#allocation7 + $0x224] ss:$16 sps:$4 sm:$0xff]  }
  0xfe   : > { %3258 = vmatprep.subr.bf16.mxu0 %v4041_v53 }
 0x101   : > { %3259 = vmatpush3.bf16.msra.mxu0 %v3452_v7  ;;  %v3560_v7 = vld [vmem:[#allocation7 + $0x22c] ss:$16 sps:$4 sm:$0xff]  }
 0x102   : > { %1956 = vmatprep.subr.bf16.mxu0 %v3457_v8  ;;  %v3555_v8 = vld [vmem:[#allocation7 + $0x220] ss:$16 sps:$4 sm:$0xff]  }
 0x104   : > { %3261 = vmatmul.mubr.bf16.vlgmr.msra.gmra.mrb[8].mxu0 %v4332_v18  ;;  %v3491_v18 = vld [vmem:[#allocation7 + $0xc8] ss:$16 sps:$4 sm:$0xff]  }
 0x105   : > { %1957 = vmatpush1.bf16.msra.mxu0 %v3455_v9  ;;  %v3558_v9 = vld [vmem:[#allocation7 + $0x228] ss:$16 sps:$4 sm:$0xff]  }
 0x106   : > { %1958 = vmatprep.subr.bf16.mxu0 %v3463_v10  ;;  %v3563_v10 = vld [vmem:[#allocation7 + $0x244] ss:$16 sps:$4 sm:$0xff]  }
 0x109   : > { %1959 = vmatpush1.bf16.msra.mxu0 %v3461_v11  ;;  %v3566_v11 = vld [vmem:[#allocation7 + $0x24c] ss:$16 sps:$4 sm:$0xff]  }
 0x10a   : > { %1960 = vmatprep.subr.bf16.mxu0 %v3469_v12  ;;  %v3561_v12 = vld [vmem:[#allocation7 + $0x240] ss:$16 sps:$4 sm:$0xff]  }
 0x10d   : > { %1961 = vmatpush1.bf16.msra.mxu0 %v3467_v13  ;;  %v3564_v13 = vld [vmem:[#allocation7 + $0x248] ss:$16 sps:$4 sm:$0xff]  }
 0x10e   : > { %1962 = vmatprep.subr.bf16.mxu0 %v3475_v14  ;;  %v3569_v14 = vld [vmem:[#allocation7 + $0x264] ss:$16 sps:$4 sm:$0xff]  }
 0x111   : > { %1963 = vmatpush1.bf16.msra.mxu0 %v3473_v15  ;;  %v3572_v15 = vld [vmem:[#allocation7 + $0x26c] ss:$16 sps:$4 sm:$0xff]  }
 0x112   : > { %1964 = vmatprep.subr.bf16.mxu0 %v3481_v16  ;;  %v3567_v16 = vld [vmem:[#allocation7 + $0x260] ss:$16 sps:$4 sm:$0xff]  }
 0x115   : > { %1965 = vmatpush1.bf16.msra.mxu0 %v3479_v17  ;;  %v3570_v17 = vld [vmem:[#allocation7 + $0x268] ss:$16 sps:$4 sm:$0xff]  }
 0x116   : > { %1966 = vmatprep.subr.bf16.mxu0 %v3487_v19  ;;  %v3575_v19 = vld [vmem:[#allocation7 + $0x284] ss:$16 sps:$4 sm:$0xff]  }
 0x119   : > { %1967 = vmatpush1.bf16.msra.mxu0 %v3485_v20  ;;  %v3578_v20 = vld [vmem:[#allocation7 + $0x28c] ss:$16 sps:$4 sm:$0xff]  }
 0x11a   : > { %1968 = vmatprep.subr.bf16.mxu0 %v3493_v21  ;;  %v3573_v21 = vld [vmem:[#allocation7 + $0x280] ss:$16 sps:$4 sm:$0xff]  }
 0x11d   : > { %1969 = vmatpush1.bf16.msra.mxu0 %v3491_v18  ;;  %v3576_v18 = vld [vmem:[#allocation7 + $0x288] ss:$16 sps:$4 sm:$0xff]  }
 0x11e   : > { %1970 = vmatprep.subr.bf16.mxu0 %v3499_v23  ;;  %v3584_v23 = vld [vmem:[#allocation7 + $0x2ac] ss:$16 sps:$4 sm:$0xff]  }
 0x121   : > { %1971 = vmatpush1.bf16.msra.mxu0 %v3497_v25  ;;  %v478_v25 = vsub.s32 3, %v4338_v47 }
 0x122   : > { %1972 = vmatprep.subr.bf16.mxu0 %v3505_v27  ;;  %v3582_v27 = vld [vmem:[#allocation7 + $0x2a8] ss:$16 sps:$4 sm:$0xff]  }
 0x125   : > { %1973 = vmatpush1.bf16.msra.mxu0 %v3503_v30  ;;  %v475_v30 = vrot.slane %v4346_v49, %v474_v24 }
 0x126   : > { %1974 = vmatprep.subr.bf16.mxu0 %v3511_v31  ;;  %v479_v31 = vrot.slane %v4346_v49, %v478_v25 }
 0x129   : > { %1975 = vmatpush1.bf16.msra.mxu0 %v3509_v32  ;;  %v3585_v32 = vld [vmem:[#allocation7 + $0x2c0] ss:$16 sps:$4 sm:$0xff]  }
 0x12a   : > { %1976 = vmatprep.subr.bf16.mxu0 %v3517_v33  ;;  %v3588_v33 = vld [vmem:[#allocation7 + $0x2c8] ss:$16 sps:$4 sm:$0xff]  }
 0x12d   : > { %1977 = vmatpush1.bf16.msra.mxu0 %v3515_v34 }
 0x12e   : > { %1978 = vmatprep.subr.bf16.mxu0 %v3523_v35  ;;  %v3593_v35 = vld [vmem:[#allocation7 + $0x2e4] ss:$16 sps:$4 sm:$0xff]  }
 0x131   : > { %1979 = vmatpush1.bf16.msra.mxu0 %v3521_v36  ;;  %v3596_v36 = vld [vmem:[#allocation7 + $0x2ec] ss:$16 sps:$4 sm:$0xff]  }
 0x132   : > { %1980 = vmatprep.subr.bf16.mxu0 %v3529_v37 }
 0x135   : > { %1981 = vmatpush1.bf16.msra.mxu0 %v3527_v38 }
 0x136   : > { %1982 = vmatprep.subr.bf16.mxu0 %v3535_v39 }
 0x139   : > { %1983 = vmatpush1.bf16.msra.mxu0 %v3533_v40 }
 0x13a   : > { %1984 = vmatprep.subr.bf16.mxu0 %v3541_v41 }
 0x13d   : > { %1985 = vmatpush1.bf16.msra.mxu0 %v3539_v42 }
 0x13e   : > { %1986 = vmatprep.subr.bf16.mxu0 %v3547_v43 }
 0x141   : > { %1987 = vmatpush1.bf16.msra.mxu0 %v3545_v44  ;;  %v3591_v44 = vld [vmem:[#allocation7 + $0x2e0] ss:$16 sps:$4 sm:$0xff]  }
 0x142   : > { %1999 = vmatprep.subr.bf16.mxu0 %v3554_v45  ;;  %v3594_v45 = vld [vmem:[#allocation7 + $0x2e8] ss:$16 sps:$4 sm:$0xff]  }
 0x197   : > { %v737_v53 = vpop.f32.mrb[0].mxu0 }
 0x198   : > { %v738_v54 = vadd.f32 %v737_v53, %v467_v51  ;;  %v739_v55 = vpop.f32.mrb[1].mxu0  ;;  %v3602_v53 = vld [vmem:[#allocation7 + $0x30c] ss:$16 sps:$4 sm:$0xff]  }
 0x199   : > { %v740_v56 = vadd.f32 %v739_v55, %v471_v52  ;;  %v741_v57 = vpop.f32.mrb[2].mxu0 }
 0x19a   : > { %v742_v58 = vadd.f32 %v741_v57, %v467_v51  ;;  %v743_v59 = vpop.f32.mrb[3].mxu0  ;;  %v830_v61 = vmax.f32 %v738_v54, 0.0  ;;  %v3597_v57 = vld [vmem:[#allocation7 + $0x300] ss:$16 sps:$4 sm:$0xff]  }
 0x19b   : > { %v744_v60 = vadd.f32 %v743_v59, %v471_v52  ;;  %v831_v63 = vmax.f32 %v740_v56, 0.0  ;;  %v3599_v52 = vld [vmem:[#allocation7 + $0x304] ss:$16 sps:$4 sm:$0xff]  }
 0x19c   : > { %v835_v62 = vmax.f32 %v742_v58, 0.0  ;;  %v3600_v58 = vld [vmem:[#allocation7 + $0x308] ss:$16 sps:$4 sm:$0xff]  }
 0x19d   : > { %v836_v1 = vmax.f32 %v744_v60, 0.0  ;;  %v3605_v60 = vld [vmem:[#allocation7 + $0x324] ss:$16 sps:$4 sm:$0xff]  }
 0x19e   : > { %v840_v2 = vpack.c.bf16 %v835_v62, %v830_v61  ;;  %v3608_v61 = vld [vmem:[#allocation7 + $0x32c] ss:$16 sps:$4 sm:$0xff]   ;;  %v3603_v62 = vld [vmem:[#allocation7 + $0x320] ss:$16 sps:$4 sm:$0xff]  }
 0x19f   : > { %v841_v3 = vpack.c.bf16 %v836_v1, %v831_v63  ;;  %v3606_v63 = vld [vmem:[#allocation7 + $0x328] ss:$16 sps:$4 sm:$0xff]   ;;  %v3611_v1 = vld [vmem:[#allocation7 + $0x344] ss:$16 sps:$4 sm:$0xff]  }
 0x1a1   : > { %1859 = vmatprep.mubr.bf16.mxu1 %v841_v3  ;;  %1988 = vmatprep.mubr.bf16.mxu0 %v841_v3  ;;  %v3609_v3 = vld [vmem:[#allocation7 + $0x340] ss:$16 sps:$4 sm:$0xff]  }
 0x1a2   : > { %1860 = vmatmul.mubr.bf16.vlgmr.msra.gmra.mrb[0].mxu1 %v840_v2  ;;  %1989 = vmatmul.mubr.bf16.vlgmr.msra.gmra.mrb[12].mxu0 %v840_v2  ;;  %v3614_v2 = vld [vmem:[#allocation7 + $0x34c] ss:$16 sps:$4 sm:$0xff]  }
 0x1a3   : > { %1871 = vmatpush1.bf16.msra.mxu1 %v3549_v4  ;;  %2000 = vmatpush1.bf16.msra.mxu0 %v3552_v5  ;;  %v3612_v4 = vld [vmem:[#allocation7 + $0x348] ss:$16 sps:$4 sm:$0xff]   ;;  %v3617_v5 = vld [vmem:[#allocation7 + $0x364] ss:$16 sps:$4 sm:$0xff]  }
 0x1a4   : > { %1872 = vmatprep.subr.bf16.mxu1 %v3557_v6  ;;  %2001 = vmatprep.subr.bf16.mxu0 %v3560_v7  ;;  %v3620_v6 = vld [vmem:[#allocation7 + $0x36c] ss:$16 sps:$4 sm:$0xff]   ;;  %v3615_v7 = vld [vmem:[#allocation7 + $0x360] ss:$16 sps:$4 sm:$0xff]  }
 0x1a7   : > { %1873 = vmatpush1.bf16.msra.mxu1 %v3555_v8  ;;  %2002 = vmatpush1.bf16.msra.mxu0 %v3558_v9  ;;  %v3618_v8 = vld [vmem:[#allocation7 + $0x368] ss:$16 sps:$4 sm:$0xff]   ;;  %v3623_v9 = vld [vmem:[#allocation7 + $0x384] ss:$16 sps:$4 sm:$0xff]  }
 0x1a8   : > { %1874 = vmatprep.subr.bf16.mxu1 %v3563_v10  ;;  %2003 = vmatprep.subr.bf16.mxu0 %v3566_v11  ;;  %v3626_v10 = vld [vmem:[#allocation7 + $0x38c] ss:$16 sps:$4 sm:$0xff]   ;;  %v3621_v11 = vld [vmem:[#allocation7 + $0x380] ss:$16 sps:$4 sm:$0xff]  }
 0x1ab   : > { %1875 = vmatpush1.bf16.msra.mxu1 %v3561_v12  ;;  %2004 = vmatpush1.bf16.msra.mxu0 %v3564_v13  ;;  %v3624_v12 = vld [vmem:[#allocation7 + $0x388] ss:$16 sps:$4 sm:$0xff]   ;;  %v3629_v13 = vld [vmem:[#allocation7 + $0x3a4] ss:$16 sps:$4 sm:$0xff]  }
 0x1ac   : > { %1876 = vmatprep.subr.bf16.mxu1 %v3569_v14  ;;  %2005 = vmatprep.subr.bf16.mxu0 %v3572_v15  ;;  %v3632_v14 = vld [vmem:[#allocation7 + $0x3ac] ss:$16 sps:$4 sm:$0xff]   ;;  %v482_v15 = vsub.s32 4, %v4338_v47 }
 0x1af   : > { %1877 = vmatpush1.bf16.msra.mxu1 %v3567_v16  ;;  %2006 = vmatpush1.bf16.msra.mxu0 %v3570_v17  ;;  %v3627_v16 = vld [vmem:[#allocation7 + $0x3a0] ss:$16 sps:$4 sm:$0xff]   ;;  %v3630_v17 = vld [vmem:[#allocation7 + $0x3a8] ss:$16 sps:$4 sm:$0xff]  }
 0x1b0   : > { %1878 = vmatprep.subr.bf16.mxu1 %v3575_v19  ;;  %2007 = vmatprep.subr.bf16.mxu0 %v3578_v20  ;;  %v3635_v19 = vld [vmem:[#allocation7 + $0x3c4] ss:$16 sps:$4 sm:$0xff]   ;;  %v3638_v20 = vld [vmem:[#allocation7 + $0x3cc] ss:$16 sps:$4 sm:$0xff]  }
 0x1b3   : > { %1879 = vmatpush1.bf16.msra.mxu1 %v3573_v21  ;;  %2008 = vmatpush1.bf16.msra.mxu0 %v3576_v18  ;;  %v483_v21 = vrot.slane %v4346_v49, %v482_v15  ;;  %v3633_v18 = vld [vmem:[#allocation7 + $0x3c0] ss:$16 sps:$4 sm:$0xff]   ;;  %v3647_v49 = vld [vmem:[#allocation7 + $0x404] ss:$16 sps:$4 sm:$0xff]  }
 0x1b4   : > { %1880 = vmatprep.subr.bf16.mxu1 %v3581_v22  ;;  %2009 = vmatprep.subr.bf16.mxu0 %v3584_v23  ;;  %v3636_v22 = vld [vmem:[#allocation7 + $0x3c8] ss:$16 sps:$4 sm:$0xff]   ;;  %v3704_v15 = vld [vmem:[#allocation8 + $0x34] ss:$8 sps:$4 sm:$0xff]  }
 0x1b7   : > { %1881 = vmatpush1.bf16.msra.mxu1 %v3579_v26  ;;  %2010 = vmatpush1.bf16.msra.mxu0 %v3582_v27  ;;  %v780_v34 = vpop.f32.mrb[4].mxu0  ;;  %v3641_v26 = vld [vmem:[#allocation7 + $0x3e4] ss:$16 sps:$4 sm:$0xff]   ;;  %v3644_v27 = vld [vmem:[#allocation7 + $0x3ec] ss:$16 sps:$4 sm:$0xff]  }
 0x1b8   : > { %1882 = vmatprep.subr.bf16.mxu1 %v3587_v28  ;;  %2011 = vmatprep.subr.bf16.mxu0 %v3590_v29  ;;  %v781_v37 = vadd.f32 %v780_v34, %v475_v30  ;;  %v782_v38 = vpop.f32.mrb[5].mxu0  ;;  %v3639_v34 = vld [vmem:[#allocation7 + $0x3e0] ss:$16 sps:$4 sm:$0xff]  }
 0x1b9   : > { %v783_v39 = vadd.f32 %v782_v38, %v479_v31  ;;  %v784_v40 = vpop.f32.mrb[6].mxu0 }
 0x1ba   : > { %v832_v41 = vmax.f32 %v781_v37, 0.0  ;;  %v785_v42 = vadd.f32 %v784_v40, %v475_v30  ;;  %v786_v43 = vpop.f32.mrb[7].mxu0  ;;  %v3648_v40 = vld [vmem:[#allocation7 + $0x408] ss:$16 sps:$4 sm:$0xff]  }
 0x1bb   : > { %1883 = vmatpush1.bf16.msra.mxu1 %v3585_v32  ;;  %2012 = vmatpush1.bf16.msra.mxu0 %v3588_v33  ;;  %v833_v46 = vmax.f32 %v783_v39, 0.0  ;;  %v787_v51 = vadd.f32 %v786_v43, %v479_v31  ;;  %v3645_v39 = vld [vmem:[#allocation7 + $0x400] ss:$16 sps:$4 sm:$0xff]  }
 0x1bc   : > { %1884 = vmatprep.subr.bf16.mxu1 %v3593_v35  ;;  %2013 = vmatprep.subr.bf16.mxu0 %v3596_v36  ;;  %v837_v54 = vmax.f32 %v785_v42, 0.0  ;;  %v3642_v35 = vld [vmem:[#allocation7 + $0x3e8] ss:$16 sps:$4 sm:$0xff]   ;;  %v3650_v36 = vld [vmem:[#allocation7 + $0x40c] ss:$16 sps:$4 sm:$0xff]  }
 0x1bd   : > { %v838_v55 = vmax.f32 %v787_v51, 0.0  ;;  %v3656_v42 = vld [vmem:[#allocation7 + $0x42c] ss:$16 sps:$4 sm:$0xff]   ;;  %v3651_v43 = vld [vmem:[#allocation7 + $0x420] ss:$16 sps:$4 sm:$0xff]  }
 0x1be   : > { %v4363_v56 = vpack.c.bf16 %v837_v54, %v832_v41  ;;  %v3653_v41 = vld [vmem:[#allocation7 + $0x424] ss:$16 sps:$4 sm:$0xff]   ;;  %v3657_v51 = vld [vmem:[#allocation7 + $0x440] ss:$16 sps:$4 sm:$0xff]   ;;  %v3668_v54 = vld [vmem:[#allocation7 + $0x46c] ss:$16 sps:$4 sm:$0xff]  }
 0x1bf   : > { %1885 = vmatpush1.bf16.msra.mxu1 %v3591_v44  ;;  %2014 = vmatpush1.bf16.msra.mxu0 %v3594_v45  ;;  %v843_v59 = vpack.c.bf16 %v838_v55, %v833_v46  ;;  %v3654_v44 = vld [vmem:[#allocation7 + $0x428] ss:$16 sps:$4 sm:$0xff]   ;;  %v3659_v45 = vld [vmem:[#allocation7 + $0x444] ss:$16 sps:$4 sm:$0xff]   ;;  %v3662_v46 = vld [vmem:[#allocation7 + $0x44c] ss:$16 sps:$4 sm:$0xff]  }
 0x1c0   : > { %1886 = vmatprep.subr.bf16.mxu1 %v3599_v52  ;;  %2015 = vmatprep.subr.bf16.mxu0 %v3602_v53  ;;  %v3660_v52 = vld [vmem:[#allocation7 + $0x448] ss:$16 sps:$4 sm:$0xff]   ;;  %v3665_v53 = vld [vmem:[#allocation7 + $0x464] ss:$16 sps:$4 sm:$0xff]   ;;  %v3663_v55 = vld [vmem:[#allocation7 + $0x460] ss:$16 sps:$4 sm:$0xff]  }
 0x1c1   : > { %1902 = vmatprep.mubr.bf16.mxu1 %v843_v59  ;;  %2031 = vmatprep.mubr.bf16.mxu0 %v843_v59  ;;  %v3669_v59 = vld [vmem:[#allocation7 + $0x480] ss:$16 sps:$4 sm:$0xff]  }
 0x1c3   : > { %1887 = vmatpush1.bf16.msra.mxu1 %v3597_v57  ;;  %2016 = vmatpush1.bf16.msra.mxu0 %v3600_v58  ;;  %v3671_v57 = vld [vmem:[#allocation7 + $0x484] ss:$16 sps:$4 sm:$0xff]   ;;  %v3674_v58 = vld [vmem:[#allocation7 + $0x48c] ss:$16 sps:$4 sm:$0xff]  }
 0x1c4   : > { %1888 = vmatprep.subr.bf16.mxu1 %v3605_v60  ;;  %2017 = vmatprep.subr.bf16.mxu0 %v3608_v61  ;;  %v3677_v60 = vld [vmem:[#allocation7 + $0x4a4] ss:$16 sps:$4 sm:$0xff]   ;;  %v3680_v61 = vld [vmem:[#allocation7 + $0x4ac] ss:$16 sps:$4 sm:$0xff]  }
 0x1c7   : > { %1889 = vmatpush1.bf16.msra.mxu1 %v3603_v62  ;;  %2018 = vmatpush1.bf16.msra.mxu0 %v3606_v63  ;;  %v3675_v62 = vld [vmem:[#allocation7 + $0x4a0] ss:$16 sps:$4 sm:$0xff]   ;;  %v3678_v63 = vld [vmem:[#allocation7 + $0x4a8] ss:$16 sps:$4 sm:$0xff]  }
 0x1c8   : > { %1890 = vmatprep.subr.bf16.mxu1 %v3611_v1  ;;  %2019 = vmatprep.subr.bf16.mxu0 %v3614_v2  ;;  %v3683_v1 = vld [vmem:[#allocation7 + $0x4c4] ss:$16 sps:$4 sm:$0xff]   ;;  %v3686_v2 = vld [vmem:[#allocation7 + $0x4cc] ss:$16 sps:$4 sm:$0xff]  }
 0x1cb   : > { %1891 = vmatpush1.bf16.msra.mxu1 %v3609_v3  ;;  %2020 = vmatpush1.bf16.msra.mxu0 %v3612_v4  ;;  %v3681_v3 = vld [vmem:[#allocation7 + $0x4c0] ss:$16 sps:$4 sm:$0xff]   ;;  %v3684_v4 = vld [vmem:[#allocation7 + $0x4c8] ss:$16 sps:$4 sm:$0xff]  }
 0x1cc   : > { %1892 = vmatprep.subr.bf16.mxu1 %v3617_v5  ;;  %2021 = vmatprep.subr.bf16.mxu0 %v3620_v6  ;;  %v3689_v5 = vld [vmem:[#allocation7 + $0x4e4] ss:$16 sps:$4 sm:$0xff]   ;;  %v3692_v6 = vld [vmem:[#allocation7 + $0x4ec] ss:$16 sps:$4 sm:$0xff]  }
 0x1cf   : > { %1893 = vmatpush1.bf16.msra.mxu1 %v3615_v7  ;;  %2022 = vmatpush1.bf16.msra.mxu0 %v3618_v8  ;;  %v3687_v7 = vld [vmem:[#allocation7 + $0x4e0] ss:$16 sps:$4 sm:$0xff]   ;;  %v3690_v8 = vld [vmem:[#allocation7 + $0x4e8] ss:$16 sps:$4 sm:$0xff]  }
 0x1d0   : > { %1894 = vmatprep.subr.bf16.mxu1 %v3623_v9  ;;  %2023 = vmatprep.subr.bf16.mxu0 %v3626_v10  ;;  %v3695_v9 = vld [vmem:[#allocation8 + $0x4] ss:$8 sps:$4 sm:$0xff]   ;;  %v3693_v10 = vld [vmem:[#allocation8] ss:$8 sps:$4 sm:$0xff]  }
 0x1d3   : > { %1895 = vmatpush1.bf16.msra.mxu1 %v3621_v11  ;;  %2024 = vmatpush1.bf16.msra.mxu0 %v3624_v12  ;;  %v3698_v11 = vld [vmem:[#allocation8 + $0x14] ss:$8 sps:$4 sm:$0xff]   ;;  %v3696_v12 = vld [vmem:[#allocation8 + $0x10] ss:$8 sps:$4 sm:$0xff]  }
 0x1d4   : > { %1896 = vmatprep.subr.bf16.mxu1 %v3629_v13  ;;  %2025 = vmatprep.subr.bf16.mxu0 %v3632_v14  ;;  %v3701_v13 = vld [vmem:[#allocation8 + $0x24] ss:$8 sps:$4 sm:$0xff]   ;;  %v3699_v14 = vld [vmem:[#allocation8 + $0x20] ss:$8 sps:$4 sm:$0xff]  }
 0x1d7   : > { %1897 = vmatpush1.bf16.msra.mxu1 %v3627_v16  ;;  %2026 = vmatpush1.bf16.msra.mxu0 %v3630_v17  ;;  %v823_v23 = vpop.f32.mrb[8].mxu0  ;;  %v3702_v16 = vld [vmem:[#allocation8 + $0x30] ss:$8 sps:$4 sm:$0xff]   ;;  %v3707_v17 = vld [vmem:[#allocation8 + $0x44] ss:$8 sps:$4 sm:$0xff]  }
 0x1d8   : > { %1898 = vmatprep.subr.bf16.mxu1 %v3635_v19  ;;  %2027 = vmatprep.subr.bf16.mxu0 %v3638_v20  ;;  %v824_v28 = vadd.f32 %v823_v23, %v483_v21  ;;  %v3262_v29 = vpop.f32.mrb[9].mxu0  ;;  %v3705_v19 = vld [vmem:[#allocation8 + $0x40] ss:$8 sps:$4 sm:$0xff]   ;;  %v3710_v20 = vld [vmem:[#allocation8 + $0x54] ss:$8 sps:$4 sm:$0xff]  }
 0x1d9   : > { %v826_v30 = vpop.f32.mrb[10].mxu0  ;;  %v3716_v23 = vld [vmem:[#allocation8 + $0x74] ss:$8 sps:$4 sm:$0xff]  }
 0x1da   : > { %v834_v31 = vmax.f32 %v824_v28, 0.0  ;;  %v827_v32 = vadd.f32 %v826_v30, %v483_v21  ;;  %v3263_v33 = vpop.f32.mrb[11].mxu0  ;;  %v3708_v21 = vld [vmem:[#allocation8 + $0x50] ss:$8 sps:$4 sm:$0xff]   ;;  %v3717_v28 = vld [vmem:[#allocation8 + $0x80] ss:$8 sps:$4 sm:$0xff]  }
 0x1db   : > { %1899 = vmatpush1.bf16.msra.mxu1 %v3633_v18  ;;  %2028 = vmatpush1.bf16.msra.mxu0 %v3636_v22  ;;  %v3713_v18 = vld [vmem:[#allocation8 + $0x64] ss:$8 sps:$4 sm:$0xff]   ;;  %v3711_v22 = vld [vmem:[#allocation8 + $0x60] ss:$8 sps:$4 sm:$0xff]   ;;  %v3722_v29 = vld [vmem:[#allocation8 + $0x94] ss:$8 sps:$4 sm:$0xff]  }
 0x1dc   : > { %1900 = vmatprep.subr.bf16.mxu1 %v3641_v26  ;;  %2029 = vmatprep.subr.bf16.mxu0 %v3644_v27  ;;  %v839_v37 = vmax.f32 %v827_v32, 0.0  ;;  %v3714_v26 = vld [vmem:[#allocation8 + $0x70] ss:$8 sps:$4 sm:$0xff]   ;;  %v3719_v27 = vld [vmem:[#allocation8 + $0x84] ss:$8 sps:$4 sm:$0xff]  }
 0x1dd   : > { %v3720_v30 = vld [vmem:[#allocation8 + $0x90] ss:$8 sps:$4 sm:$0xff]   ;;  %v3723_v32 = vld [vmem:[#allocation8 + $0xa0] ss:$8 sps:$4 sm:$0xff]   ;;  %v3728_v33 = vld [vmem:[#allocation8 + $0xb4] ss:$8 sps:$4 sm:$0xff]  }
 0x1de   : > { %v4367_v38 = vpack.c.bf16 %v839_v37, %v834_v31  ;;  %v3725_v31 = vld [vmem:[#allocation8 + $0xa4] ss:$8 sps:$4 sm:$0xff]   ;;  %v3732_v37 = vld [vmem:[#allocation8 + $0xd0] ss:$8 sps:$4 sm:$0xff]  }
 0x1df   : > { %1901 = vmatpush1.bf16.msra.mxu1 %v3639_v34  ;;  %2030 = vmatpush1.bf16.msra.mxu0 %v3642_v35  ;;  %v3726_v34 = vld [vmem:[#allocation8 + $0xb0] ss:$8 sps:$4 sm:$0xff]   ;;  %v3731_v35 = vld [vmem:[#allocation8 + $0xc4] ss:$8 sps:$4 sm:$0xff]  }
 0x1e0   : > { %1913 = vmatprep.subr.bf16.mxu1 %v3647_v49  ;;  %2042 = vmatprep.subr.bf16.mxu0 %v3650_v36  ;;  %v3729_v49 = vld [vmem:[#allocation8 + $0xc0] ss:$8 sps:$4 sm:$0xff]   ;;  %v3734_v36 = vld [vmem:[#allocation8 + $0xd4] ss:$8 sps:$4 sm:$0xff]  }
 0x1e2   : > { %1903 = vmatmul.mubr.bf16.vlgmr.msra.gmra.mrb[0].mxu1 %v4363_v56  ;;  %2032 = vmatmul.mubr.bf16.vlgmr.msra.gmra.mrb[12].mxu0 %v4363_v56  ;;  %v3666_v56 = vld [vmem:[#allocation7 + $0x468] ss:$16 sps:$4 sm:$0xff]  }
 0x1e3   : > { %1914 = vmatpush1.bf16.msra.mxu1 %v3645_v39  ;;  %2043 = vmatpush1.bf16.msra.mxu0 %v3648_v40  ;;  %v3735_v39 = vld [vmem:[#allocation8 + $0xe0] ss:$8 sps:$4 sm:$0xff]   ;;  %v3740_v40 = vld [vmem:[#allocation8 + $0xf4] ss:$8 sps:$4 sm:$0xff]  }
 0x1e4   : > { %1915 = vmatprep.subr.bf16.mxu1 %v3653_v41  ;;  %2044 = vmatprep.subr.bf16.mxu0 %v3656_v42  ;;  %v3738_v41 = vld [vmem:[#allocation8 + $0xf0] ss:$8 sps:$4 sm:$0xff]   ;;  %v3743_v42 = vld [vmem:[#allocation8 + $0x104] ss:$8 sps:$4 sm:$0xff]  }
 0x1e5   : > { %1945 = vmatprep.mubr.bf16.mxu1 %v4040_v0  ;;  %2074 = vmatprep.mubr.bf16.mxu0 %v4040_v0  ;;  %v3672_v0 = vld [vmem:[#allocation7 + $0x488] ss:$16 sps:$4 sm:$0xff]  }
 0x1e7   : > { %1916 = vmatpush1.bf16.msra.mxu1 %v3651_v43  ;;  %2045 = vmatpush1.bf16.msra.mxu0 %v3654_v44  ;;  %v3789_v43 = vld [vmem:[#allocation10 + $0x40] sm:$0xff]  }
 0x1e8   : > { %1917 = vmatprep.subr.bf16.mxu1 %v3659_v45  ;;  %2046 = vmatprep.subr.bf16.mxu0 %v3662_v46  ;;  %v3790_v44 = vld [vmem:[#allocation10] sm:$0xff]   ;;  %v3791_v45 = vld [vmem:[#allocation10 + $0x48] sm:$0xff]  }
 0x1e9   : > { %v3792_v46 = vld [vmem:[#allocation10 + $0x8] sm:$0xff]  }
 0x1eb   : > { %1918 = vmatpush1.bf16.msra.mxu1 %v3657_v51  ;;  %2047 = vmatpush1.bf16.msra.mxu0 %v3660_v52  ;;  %v3793_v51 = vld [vmem:[#allocation10 + $0x50] sm:$0xff]  }
 0x1ec   : > { %1919 = vmatprep.subr.bf16.mxu1 %v3665_v53  ;;  %2048 = vmatprep.subr.bf16.mxu0 %v3668_v54  ;;  %v3794_v52 = vld [vmem:[#allocation10 + $0x10] sm:$0xff]   ;;  %v3795_v53 = vld [vmem:[#allocation10 + $0x58] sm:$0xff]  }
 0x1ed   : > { %v3796_v54 = vld [vmem:[#allocation10 + $0x18] sm:$0xff]  }
 0x1ef   : > { %1920 = vmatpush1.bf16.msra.mxu1 %v3663_v55  ;;  %2049 = vmatpush1.bf16.msra.mxu0 %v3666_v56  ;;  %v3797_v55 = vld [vmem:[#allocation10 + $0x60] sm:$0xff]  }
 0x1f0   : > { %1921 = vmatprep.subr.bf16.mxu1 %v3671_v57  ;;  %2050 = vmatprep.subr.bf16.mxu0 %v3674_v58  ;;  %v3798_v56 = vld [vmem:[#allocation10 + $0x20] sm:$0xff]   ;;  %v3799_v57 = vld [vmem:[#allocation10 + $0x68] sm:$0xff]   ;;  %v1005_v58 = vld [vmem:[%s4451_s4] sm:$0xf] }
 0x1f3   : > { %1922 = vmatpush1.bf16.msra.mxu1 %v3669_v59  ;;  %2051 = vmatpush1.bf16.msra.mxu0 %v3672_v0  ;;  %v1010_v59 = vrot.slane %v1005_v58, %v4341_v48  ;;  %v1018_v0 = vrot.slane %v1005_v58, %v474_v24 }
 0x1f4   : > { %1923 = vmatprep.subr.bf16.mxu1 %v3677_v60  ;;  %2052 = vmatprep.subr.bf16.mxu0 %v3680_v61  ;;  %v1014_v60 = vrot.slane %v1005_v58, %v4349_v50  ;;  %v1022_v61 = vrot.slane %v1005_v58, %v478_v25  ;;  %v3788_v58 = vld [vmem:[#allocation8 + $0x1f4] ss:$8 sps:$4 sm:$0xff]  }
 0x1f7   : > { %1924 = vmatpush1.bf16.msra.mxu1 %v3675_v62  ;;  %2053 = vmatpush1.bf16.msra.mxu0 %v3678_v63 }
 0x1f8   : > { %1925 = vmatprep.subr.bf16.mxu1 %v3683_v1  ;;  %2054 = vmatprep.subr.bf16.mxu0 %v3686_v2 }
 0x1fb   : > { %1926 = vmatpush1.bf16.msra.mxu1 %v3681_v3  ;;  %2055 = vmatpush1.bf16.msra.mxu0 %v3684_v4 }
 0x1fc   : > { %1927 = vmatprep.subr.bf16.mxu1 %v3689_v5  ;;  %2056 = vmatprep.subr.bf16.mxu0 %v3692_v6 }
 0x1ff   : > { %1928 = vmatpush1.bf16.msra.mxu1 %v3687_v7  ;;  %2057 = vmatpush1.bf16.msra.mxu0 %v3690_v8 }
 0x200   : > { %2493 = vmatprep.subr.bf16.mxu1 %v3695_v9  ;;  %3222 = vmatprep.subr.bf16.mxu0 %v3789_v43  ;;  %v3768_v43 = vld [vmem:[#allocation8 + $0x190] ss:$8 sps:$4 sm:$0xff]  }
 0x202   : > { %1946 = vmatmul.mubr.bf16.vlgmr.msra.gmra.mrb[0].mxu1 %v4367_v38  ;;  %2075 = vmatmul.mubr.bf16.vlgmr.msra.gmra.mrb[12].mxu0 %v4367_v38  ;;  %v3737_v38 = vld [vmem:[#allocation8 + $0xe4] ss:$8 sps:$4 sm:$0xff]  }
 0x203   : > { %2494 = vmatpush1.bf16.msra.mxu1 %v3693_v10  ;;  %3223 = vmatpush3.bf16.msra.mxu0 %v3790_v44  ;;  %v3773_v44 = vld [vmem:[#allocation8 + $0x1a4] ss:$8 sps:$4 sm:$0xff]  }
 0x204   : > { %2495 = vmatprep.subr.bf16.mxu1 %v3698_v11  ;;  %3224 = vmatprep.subr.bf16.mxu0 %v3791_v45  ;;  %v3771_v45 = vld [vmem:[#allocation8 + $0x1a0] ss:$8 sps:$4 sm:$0xff]  }
 0x207   : > { %2496 = vmatpush1.bf16.msra.mxu1 %v3696_v12  ;;  %3225 = vmatpush3.bf16.msra.mxu0 %v3792_v46  ;;  %v3776_v46 = vld [vmem:[#allocation8 + $0x1b4] ss:$8 sps:$4 sm:$0xff]  }
 0x208   : > { %2497 = vmatprep.subr.bf16.mxu1 %v3701_v13  ;;  %3226 = vmatprep.subr.bf16.mxu0 %v3793_v51  ;;  %v3774_v51 = vld [vmem:[#allocation8 + $0x1b0] ss:$8 sps:$4 sm:$0xff]  }
 0x20b   : > { %2498 = vmatpush1.bf16.msra.mxu1 %v3699_v14  ;;  %3227 = vmatpush3.bf16.msra.mxu0 %v3794_v52  ;;  %v3779_v52 = vld [vmem:[#allocation8 + $0x1c4] ss:$8 sps:$4 sm:$0xff]  }
 0x20c   : > { %2499 = vmatprep.subr.bf16.mxu1 %v3704_v15  ;;  %3228 = vmatprep.subr.bf16.mxu0 %v3795_v53  ;;  %v3777_v53 = vld [vmem:[#allocation8 + $0x1c0] ss:$8 sps:$4 sm:$0xff]  }
 0x20f   : > { %2500 = vmatpush1.bf16.msra.mxu1 %v3702_v16  ;;  %3229 = vmatpush3.bf16.msra.mxu0 %v3796_v54  ;;  %v3782_v54 = vld [vmem:[#allocation8 + $0x1d4] ss:$8 sps:$4 sm:$0xff]  }
 0x210   : > { %2501 = vmatprep.subr.bf16.mxu1 %v3707_v17  ;;  %3230 = vmatprep.subr.bf16.mxu0 %v3797_v55  ;;  %v3780_v55 = vld [vmem:[#allocation8 + $0x1d0] ss:$8 sps:$4 sm:$0xff]  }
 0x213   : > { %2502 = vmatpush1.bf16.msra.mxu1 %v3705_v19  ;;  %3231 = vmatpush3.bf16.msra.mxu0 %v3798_v56  ;;  %v3785_v56 = vld [vmem:[#allocation8 + $0x1e4] ss:$8 sps:$4 sm:$0xff]  }
 0x214   : > { %2503 = vmatprep.subr.bf16.mxu1 %v3710_v20  ;;  %3232 = vmatprep.subr.bf16.mxu0 %v3799_v57  ;;  %v3783_v57 = vld [vmem:[#allocation8 + $0x1e0] ss:$8 sps:$4 sm:$0xff]  }
 0x217   : > { %2504 = vmatpush1.bf16.msra.mxu1 %v3708_v21 }
 0x218   : > { %2505 = vmatprep.subr.bf16.mxu1 %v3713_v18 }
 0x21b   : > { %2506 = vmatpush1.bf16.msra.mxu1 %v3711_v22 }
 0x21c   : > { %2507 = vmatprep.subr.bf16.mxu1 %v3716_v23 }
 0x21f   : > { %2508 = vmatpush1.bf16.msra.mxu1 %v3714_v26  ;;  %v3741_v26 = vld [vmem:[#allocation8 + $0x100] ss:$8 sps:$4 sm:$0xff]  }
 0x220   : > { %2509 = vmatprep.subr.bf16.mxu1 %v3719_v27  ;;  %v3746_v27 = vld [vmem:[#allocation8 + $0x114] ss:$8 sps:$4 sm:$0xff]  }
 0x223   : > { %2510 = vmatpush1.bf16.msra.mxu1 %v3717_v28  ;;  %v3744_v28 = vld [vmem:[#allocation8 + $0x110] ss:$8 sps:$4 sm:$0xff]  }
 0x224   : > { %2511 = vmatprep.subr.bf16.mxu1 %v3722_v29  ;;  %v3749_v29 = vld [vmem:[#allocation8 + $0x124] ss:$8 sps:$4 sm:$0xff]  }
 0x227   : > { %2512 = vmatpush1.bf16.msra.mxu1 %v3720_v30  ;;  %v3747_v30 = vld [vmem:[#allocation8 + $0x120] ss:$8 sps:$4 sm:$0xff]  }
 0x228   : > { %2513 = vmatprep.subr.bf16.mxu1 %v3725_v31  ;;  %v3752_v31 = vld [vmem:[#allocation8 + $0x134] ss:$8 sps:$4 sm:$0xff]  }
 0x22b   : > { %2514 = vmatpush1.bf16.msra.mxu1 %v3723_v32  ;;  %v3750_v32 = vld [vmem:[#allocation8 + $0x130] ss:$8 sps:$4 sm:$0xff]  }
 0x22c   : > { %2515 = vmatprep.subr.bf16.mxu1 %v3728_v33  ;;  %v3755_v33 = vld [vmem:[#allocation8 + $0x144] ss:$8 sps:$4 sm:$0xff]  }
 0x22f   : > { %2516 = vmatpush1.bf16.msra.mxu1 %v3726_v34  ;;  %v3753_v34 = vld [vmem:[#allocation8 + $0x140] ss:$8 sps:$4 sm:$0xff]  }
 0x230   : > { %2517 = vmatprep.subr.bf16.mxu1 %v3731_v35  ;;  %v3758_v35 = vld [vmem:[#allocation8 + $0x154] ss:$8 sps:$4 sm:$0xff]  }
 0x233   : > { %2518 = vmatpush1.bf16.msra.mxu1 %v3729_v49  ;;  %v3756_v49 = vld [vmem:[#allocation8 + $0x150] ss:$8 sps:$4 sm:$0xff]  }
 0x234   : > { %2519 = vmatprep.subr.bf16.mxu1 %v3734_v36  ;;  %v3761_v36 = vld [vmem:[#allocation8 + $0x164] ss:$8 sps:$4 sm:$0xff]  }
 0x237   : > { %2520 = vmatpush1.bf16.msra.mxu1 %v3732_v37  ;;  %v3759_v37 = vld [vmem:[#allocation8 + $0x160] ss:$8 sps:$4 sm:$0xff]  }
 0x238   : > { %2521 = vmatprep.subr.bf16.mxu1 %v3737_v38  ;;  %v3764_v38 = vld [vmem:[#allocation8 + $0x174] ss:$8 sps:$4 sm:$0xff]  }
 0x23b   : > { %2522 = vmatpush1.bf16.msra.mxu1 %v3735_v39  ;;  %v3762_v39 = vld [vmem:[#allocation8 + $0x170] ss:$8 sps:$4 sm:$0xff]  }
 0x23c   : > { %2523 = vmatprep.subr.bf16.mxu1 %v3740_v40  ;;  %v3767_v40 = vld [vmem:[#allocation8 + $0x184] ss:$8 sps:$4 sm:$0xff]  }
 0x23f   : > { %2524 = vmatpush1.bf16.msra.mxu1 %v3738_v41  ;;  %v3765_v41 = vld [vmem:[#allocation8 + $0x180] ss:$8 sps:$4 sm:$0xff]  }
 0x240   : > { %2536 = vmatprep.subr.bf16.mxu1 %v3743_v42  ;;  %v3770_v42 = vld [vmem:[#allocation8 + $0x194] ss:$8 sps:$4 sm:$0xff]  }
 0x2d5   : > { %v1947_v62 = vpop.f32.mrb[0].mxu1  ;;  %v2076_v63 = vpop.f32.mrb[12].mxu0 }
 0x2d6   : > { %v3264_v1 = vadd.f32 %v1947_v62, %v1010_v59  ;;  %v3268_v2 = vadd.f32 %v2076_v63, %v1018_v0  ;;  %v1949_v3 = vpop.f32.mrb[1].mxu1  ;;  %v2078_v4 = vpop.f32.mrb[13].mxu0  ;;  %v3803_v62 = vld [vmem:[#allocation10 + $0x78] sm:$0xff]  }
 0x2d7   : > { %v3265_v5 = vadd.f32 %v1949_v3, %v1014_v60  ;;  %v3269_v6 = vadd.f32 %v2078_v4, %v1022_v61  ;;  %v1951_v7 = vpop.f32.mrb[2].mxu1  ;;  %v2080_v8 = vpop.f32.mrb[14].mxu0  ;;  %v3804_v63 = vld [vmem:[#allocation10 + $0x38] sm:$0xff]  }
 0x2d8   : > { %v3266_v9 = vadd.f32 %v1951_v7, %v1010_v59  ;;  %v3270_v10 = vadd.f32 %v2080_v8, %v1018_v0  ;;  %v1953_v11 = vpop.f32.mrb[3].mxu1  ;;  %v2082_v12 = vpop.f32.mrb[15].mxu0  ;;  %v2085_v14 = vmax.f32 %v3264_v1, 0.0  ;;  %v2087_v15 = vmax.f32 %v3268_v2, 0.0  ;;  %v3786_v59 = vld [vmem:[#allocation8 + $0x1f0] ss:$8 sps:$4 sm:$0xff]  }
 0x2d9   : > { %v3267_v24 = vadd.f32 %v1953_v11, %v1014_v60  ;;  %v3271_v13 = vadd.f32 %v2082_v12, %v1022_v61  ;;  %v2086_v16 = vmax.f32 %v3265_v5, 0.0  ;;  %v2088_v17 = vmax.f32 %v3269_v6, 0.0  ;;  %v3800_v0 = vld [vmem:[#allocation10 + $0x28] sm:$0xff]   ;;  %v3801_v60 = vld [vmem:[#allocation10 + $0x70] sm:$0xff]  }
 0x2da   : > { %v2089_v47 = vmax.f32 %v3266_v9, 0.0  ;;  %v2091_v25 = vmax.f32 %v3270_v10, 0.0  ;;  %3233 = vmatpush3.bf16.msra.mxu0 %v3800_v0  ;;  %v3802_v61 = vld [vmem:[#allocation10 + $0x30] sm:$0xff]  }
 0x2db   : > { %v2090_v19 = vmax.f32 %v3267_v24, 0.0  ;;  %v2092_v20 = vmax.f32 %v3271_v13, 0.0  ;;  %3234 = vmatprep.subr.bf16.mxu0 %v3801_v60  ;;  %v2161_v1 = vld [vmem:[%s4453_s6] sm:$0x3] }
 0x2dc   : > { %v2093_v21 = vpack.c.bf16 %v2089_v47, %v2085_v14  ;;  %v4384_v18 = vpack.c.bf16 %v2091_v25, %v2087_v15  ;;  %v2166_v2 = vrot.slane %v2161_v1, %v4341_v48  ;;  %v2170_v3 = vrot.slane %v2161_v1, %v4349_v50  ;;  %v3180_v50 = vld [vmem:[%s4455_s8] ss:$0 sm:$0xff] }
 0x2dd   : > { %v2094_v22 = vpack.c.bf16 %v2090_v19, %v2086_v16  ;;  %v2096_v23 = vpack.c.bf16 %v2092_v20, %v2088_v17 }
 0x2de   : > { %3235 = vmatpush3.bf16.msra.mxu0 %v3802_v61 }
 0x2df   : > { %2525 = vmatprep.mubr.bf16.mxu1 %v2094_v22  ;;  %3236 = vmatprep.subr.bf16.mxu0 %v3803_v62 }
 0x2e0   : > { %2526 = vmatmul.mubr.bf16.vlgmr.msra.gmra.mrb[4].mxu1 %v2093_v21 }
 0x2e1   : > { %2537 = vmatpush1.bf16.msra.mxu1 %v3741_v26  ;;  %2568 = vmatprep.mubr.bf16.mxu1 %v2096_v23 }
 0x2e2   : > { %2538 = vmatprep.subr.bf16.mxu1 %v3746_v27  ;;  %3237 = vmatpush3.bf16.msra.mxu0 %v3804_v63 }
 0x2e5   : > { %2539 = vmatpush1.bf16.msra.mxu1 %v3744_v28 }
 0x2e6   : > { %2540 = vmatprep.subr.bf16.mxu1 %v3749_v29 }
 0x2e9   : > { %2541 = vmatpush1.bf16.msra.mxu1 %v3747_v30 }
 0x2ea   : > { %2542 = vmatprep.subr.bf16.mxu1 %v3752_v31 }
 0x2ed   : > { %2543 = vmatpush1.bf16.msra.mxu1 %v3750_v32 }
 0x2ee   : > { %2544 = vmatprep.subr.bf16.mxu1 %v3755_v33 }
 0x2f1   : > { %2545 = vmatpush1.bf16.msra.mxu1 %v3753_v34 }
 0x2f2   : > { %2546 = vmatprep.subr.bf16.mxu1 %v3758_v35 }
 0x2f5   : > { %2547 = vmatpush1.bf16.msra.mxu1 %v3756_v49 }
 0x2f6   : > { %2548 = vmatprep.subr.bf16.mxu1 %v3761_v36 }
 0x2f9   : > { %2549 = vmatpush1.bf16.msra.mxu1 %v3759_v37 }
 0x2fa   : > { %2550 = vmatprep.subr.bf16.mxu1 %v3764_v38 }
 0x2fd   : > { %2551 = vmatpush1.bf16.msra.mxu1 %v3762_v39 }
 0x2fe   : > { %2552 = vmatprep.subr.bf16.mxu1 %v3767_v40 }
 0x301   : > { %2553 = vmatpush1.bf16.msra.mxu1 %v3765_v41 }
 0x302   : > { %2554 = vmatprep.subr.bf16.mxu1 %v3770_v42 }
 0x305   : > { %2555 = vmatpush1.bf16.msra.mxu1 %v3768_v43 }
 0x306   : > { %2556 = vmatprep.subr.bf16.mxu1 %v3773_v44 }
 0x309   : > { %2557 = vmatpush1.bf16.msra.mxu1 %v3771_v45 }
 0x30a   : > { %2558 = vmatprep.subr.bf16.mxu1 %v3776_v46 }
 0x30d   : > { %2559 = vmatpush1.bf16.msra.mxu1 %v3774_v51 }
 0x30e   : > { %2560 = vmatprep.subr.bf16.mxu1 %v3779_v52 }
 0x311   : > { %2561 = vmatpush1.bf16.msra.mxu1 %v3777_v53 }
 0x312   : > { %2562 = vmatprep.subr.bf16.mxu1 %v3782_v54 }
 0x315   : > { %2563 = vmatpush1.bf16.msra.mxu1 %v3780_v55 }
 0x316   : > { %2564 = vmatprep.subr.bf16.mxu1 %v3785_v56 }
 0x319   : > { %2565 = vmatpush1.bf16.msra.mxu1 %v3783_v57 }
 0x31a   : > { %2566 = vmatprep.subr.bf16.mxu1 %v3788_v58 }
 0x31d   : > { %2567 = vmatpush1.bf16.msra.mxu1 %v3786_v59 }
 0x320   : > { %2569 = vmatmul.mubr.bf16.vlgmr.msra.gmra.mrb[4].mxu1 %v4384_v18 }
 0x3f3   : > { %v2570_v4 = vpop.f32.mrb[4].mxu1 }
 0x3f4   : > { %v3272_v5 = vadd.f32 %v2570_v4, %v2166_v2  ;;  %v2572_v6 = vpop.f32.mrb[5].mxu1 }
 0x3f5   : > { %v3273_v7 = vadd.f32 %v2572_v6, %v2170_v3  ;;  %v2574_v8 = vpop.f32.mrb[6].mxu1 }
 0x3f6   : > { %v3274_v9 = vadd.f32 %v2574_v8, %v2166_v2  ;;  %v2576_v10 = vpop.f32.mrb[7].mxu1  ;;  %v2579_v12 = vmax.f32 %v3272_v5, 0.0 }
 0x3f7   : > { %v3275_v11 = vadd.f32 %v2576_v10, %v2170_v3  ;;  %v2580_v13 = vmax.f32 %v3273_v7, 0.0 }
 0x3f8   : > { %v2581_v24 = vmax.f32 %v3274_v9, 0.0 }
 0x3f9   : > { %v2582_v14 = vmax.f32 %v3275_v11, 0.0 }
 0x3fa   : > { %v2583_v15 = vpack.c.bf16 %v2581_v24, %v2579_v12 }
 0x3fb   : > { %v2584_v47 = vpack.c.bf16 %v2582_v14, %v2580_v13 }
 0x3fd   : > { %2752 = vmatprep.mubr.bf16.mxu0 %v2584_v47 }
 0x3fe   : > { %2753 = vmatmul.mubr.bf16.vlgmr.msra.gmra.mrb[16].mxu0 %v2583_v15 }
 0x4d1   : > { %v3238_v48 = vpop.f32.mrb[16].mxu0 }
 0x4d2   : > { %v3239_v25 = vpop.f32.mrb[17].mxu0 }
 0x4d3   : > { %v3240_v16 = vadd.f32 %v3239_v25, %v3238_v48  ;;  %v3241_v17 = vpop.f32.mrb[18].mxu0 }
 0x4d4   : > { %v3242_v19 = vpop.f32.mrb[19].mxu0 }
 0x4d5   : > { %v2755_v20 = vadd.f32 %v3240_v16, %v3180_v50  ;;  %v3243_v21 = vadd.f32 %v3242_v19, %v3241_v17 }
 0x4d7   : > { %v2758_v18 = vadd.f32 %v3243_v21, %v3180_v50  ;;  %3805 = vtanh.f32 %v2755_v20 }
 0x4d9   : > { %3807 = vtanh.f32 %v2758_v18 }
 0x4e1   : > { %v3806_v22 = vpop.eup %3805 }
 0x4e3   : > { %v3808_v23 = vpop.eup %3807 }
 0x4e4   : > { %v3211_v26 = vpack.c.bf16 %v3808_v23, %v3806_v22 }
 0x4e6   : > { %3212 = vst [vmem:[%s408_s24] sm:$0xff] %v3211_v26  }
 0x4e7   : > { %3964 = shalt.err (!%p3961_p13)
}
 0x4e8   : > { %s3965_s22 = scalar_lea.hbm %s4401_s15, 128  ;;  %s3969_s29 = scalar_lea.hbm %s4456_s9, 256 }
 0x4e9   : > { %p3966_p9 = scmp.ne.s32.totalorder %s4401_s15, %s3965_s22  ;;  %p3970_p4 = scmp.lt.u32.totalorder %s4401_s15, %s4456_s9 }
 0x4ea   : > { %p3971_p8 = scmp.lt.u32.totalorder %s3969_s29, %s3965_s22  ;;  %p3973_p10 = scmp.lt.u32.totalorder %s3965_s22, %s4401_s15 }
 0x4eb   : > { %p3967_p0 = pnand %p3966_p9, %p4258_p3 }
 0x4ec   : > { %p3972_p6 = por %p3971_p8, %p3970_p4 }
 0x4ed   : > { %p3968_p11 = pneg %p3967_p0 }
 0x4ee   : > { %p3974_p5 = por %p3973_p10, %p3972_p6 }
 0x4f0   : > { %p3975_p7 = pnand %p3974_p5, %p3968_p11 }
 0x4f2   : > { %3978 = shalt.err (!%p3975_p7)
}
 0x4f3   : > { %s4044_s25 = smov 64   ;;  %s4045_s1 = smov 4  }
 0x4f4   : > { %3314 = dma.vmem_to_hbm [thread:$0]  (%p4258_p3), %s4403_s19, 128, %s4401_s15, %s2774_s17, %s4044_s25, %s4044_s25, %s4045_s1  }
 0x4f5 PF: > { %s4480_s16 = sld [smem:[#allocation16_spill]]  ;;  %s4481_s13 = sld [smem:[#allocation17_spill]] }
 0x4f6   : > { %p4483_p2 = scmp.ge.s32.totalorder %s4025_s12, 2 }
 0x4fb   : > { %s2802_s18 = sand.u32 1, %s4480_s16   ;;  %p4482_p12 = scmp.ne.s32.totalorder %s4481_s13, 0 }
 0x4fc   : > { %s2803_s28 = scalar_lea.sflag [#allocation4], %s2802_s18 }
 0x4fd   : > { %p3334_p1 = pnand %p4483_p2, %p4482_p12 }
 0x4ff   : > { %4008 = dma.done.wait (!%p3334_p1), %s2803_s28, 128  }
 0x500   : > { %4010 = vsyncadd (!%p3334_p1), %s2803_s28, 4294967168  ;;  %p24_p13 = scmp.ge.s32.totalorder %s4245_s21, 4   ;;  %s4484_s30 = smov %s4017_s10 }
 0x501   : > { %s4485_s10 = smov %s4021_s11  ;;  %s4486_s11 = smov %s4254_s27 }
 0x502   : > { %s4487_s12 = smov %s4245_s21  ;;  %26 = sbr.rel (!%p24_p13) target bundleno = 9 (0x9), region = 117 }
 0x509   :  { %2808 = vsyncpa [#allocation3], 1 }
 0x50a   :  { %2810 = vsyncpa [#allocation3 + $0x1], 1 }
 0x50b   :  { %2811 = vsyncpa [#allocation6], 1 }
 0x50c   :  { %2812 = vsyncpa [#allocation9], 1 }
 0x50d   :  { %2813 = vsyncpa [#allocation4], 1 }
 0x50e   :  { %2815 = vsyncpa [#allocation4 + $0x1], 1 }

</bundles_post_ra>
